<compile_context>
chip_gen: v7x
topology: tpu7x:2x2x1
jax: 0.10.0
libtpu: 0.0.40
codegen_flags: <defaults>
</compile_context>

<pallas_src>
import functools

import jax
import jax.numpy as jnp
import numpy as np
from jax.experimental import pallas as pl
from jax.experimental.pallas import tpu as pltpu


OMEGA_0 = 30.0


def _diner_kernel(xT_ref,
                  w1_ref, b1_ref,
                  w2_ref, b2_ref,
                  w3_ref, b3_ref,
                  w5_ref, b5_ref,
                  o_ref,
                  *, compute_dtype):
    """One lane-tile of the SIREN MLP. Activations are (features, tile)."""
    x = xT_ref[...]                                           # (2, tile)

    # fc1 (SineLayer, is_first). omega already folded into w1/b1.
    # K=2 contraction -> two broadcast FMAs on the VPU, skip the MXU.
    w1 = w1_ref[...]                                          # (hidden, 2)
    pre = w1[:, 0:1] * x[0:1, :] + w1[:, 1:2] * x[1:2, :] + b1_ref[...]

    # Regime note: this kernel is VALU-bound on the three sin passes over
    # (hidden, tile); the MXU has huge slack, so no effort is spent reshaping
    # the matmuls.  compute_dtype=bf16 halves the sin cost on v6e/v7x.
    # TODO(synk): if trained pre-activations are provably bounded, a cheap
    # bounded-range sine (skip full range reduction) could go behind a flag.
    h = jnp.sin(pre.astype(compute_dtype))                    # (hidden, tile)

    # fc2, fc3 (SineLayers) on the MXU; omega folded into weights/biases.
    h = jnp.sin((jnp.dot(w2_ref[...], h,
                         preferred_element_type=jnp.float32)
                 + b2_ref[...]).astype(compute_dtype))
    h = jnp.sin((jnp.dot(w3_ref[...], h,
                         preferred_element_type=jnp.float32)
                 + b3_ref[...]).astype(compute_dtype))

    # fc5 (plain Linear) + clamp. Output is a lane-dense (out_size, tile) store.
    out = jnp.dot(w5_ref[...], h,
                  preferred_element_type=jnp.float32) + b5_ref[...]
    o_ref[...] = jnp.clip(out, -1.0, 1.0)


@functools.partial(jax.jit,
                   static_argnames=("tile_cols", "channels_last",
                                    "compute_dtype"))
def diner_siren_forward(hash_t, params, *, tile_cols=8192,
                        channels_last=True, compute_dtype=jnp.float32):
    """DinerSiren forward pass (hash=True) with a Pallas kernel.

    hash_t: (2, N) float32 -- the learned hash table stored transposed
            (points on lanes), N = h * w.
    params: dict with weights in (out_features, in_features) layout and
            biases as (out_features, 1).
    Returns (N, out_size) float32 if channels_last else (out_size, N)
    (the latter skips the wrapper-side output transpose entirely).
    """
    h_size, n = hash_t.shape
    hidden = params["w1"].shape[0]
    out_size = params["w5"].shape[0]

    # Chip-generation gating (trace-time, static).
    try:
        kind = jax.devices()[0].device_kind.lower()
    except Exception:  # pragma: no cover
        kind = ""
    cd = jnp.dtype(compute_dtype)
    if cd != jnp.dtype(jnp.float32) and "v5" in kind:
        cd = jnp.dtype(jnp.float32)   # v5 VPU/EUP have no bf16 -> keep f32.

    # Fold omega_0 into the sine layers' affine params (constants -> free).
    w1 = OMEGA_0 * params["w1"]
    b1 = OMEGA_0 * params["b1"]
    w2 = OMEGA_0 * params["w2"]
    b2 = OMEGA_0 * params["b2"]
    w3 = OMEGA_0 * params["w3"]
    b3 = OMEGA_0 * params["b3"]
    w5 = params["w5"]
    b5 = params["b5"]
    if cd != jnp.dtype(jnp.float32):
        # bf16 MXU inputs on v6e/v7x (biases / accumulation stay f32).
        w2 = w2.astype(cd)
        w3 = w3.astype(cd)
        w5 = w5.astype(cd)

    # Points-on-lanes tiling.  Tile is forced to a multiple of 128 (lane
    # divisibility); the ragged last tile (n % tile != 0) is handled by
    # Pallas block masking, so no HBM pad/slice pass is needed.
    n_rounded = ((n + 127) // 128) * 128
    tile = min(((int(tile_cols) + 127) // 128) * 128, n_rounded)
    tiles = pl.cdiv(n, tile)

    # v7x has 2 TensorCores per chip: shard the point tiles across them.
    if "v7" in kind and tiles >= 2:
        dim_sem = (pltpu.CORE_PARALLEL,)
    else:
        dim_sem = ("parallel",)

    # Only raise the scoped-VMEM limit if the tile actually needs it
    # (v5e scoped default is 16 MiB; v6e/v7x 32 MiB).
    weight_bytes = 4 * (hidden * h_size + hidden
                        + 2 * (hidden * hidden + hidden)
                        + out_size * hidden + out_size)
    vmem_est = (4 * (2 * h_size * tile          # hash blocks, double-buffered
                     + 2 * out_size * tile      # output blocks
                     + 8 * hidden * tile)       # live (hidden, tile) temps
                + 2 * weight_bytes)
    vmem_limit = None
    if vmem_est > 12 * (1 << 20):
        vmem_limit = int(min(2 * vmem_est, 64 * (1 << 20)))

    cost = pl.CostEstimate(
        flops=2 * n * (hidden * h_size + 2 * hidden * hidden
                       + out_size * hidden),
        transcendentals=3 * n * hidden,
        bytes_accessed=4 * (h_size * n + out_size * n) + weight_bytes,
    )

    def full_spec(shape):
        return pl.BlockSpec(shape, lambda i: (0, 0))

    out_t = pl.pallas_call(
        functools.partial(_diner_kernel, compute_dtype=cd),
        out_shape=jax.ShapeDtypeStruct((out_size, n), jnp.float32),
        grid_spec=pltpu.PrefetchScalarGridSpec(
            num_scalar_prefetch=0,
            grid=(tiles,),
            in_specs=[
                pl.BlockSpec((h_size, tile), lambda i: (0, i)),   # hash cols
                full_spec((hidden, h_size)),   full_spec((hidden, 1)),   # fc1
                full_spec((hidden, hidden)),   full_spec((hidden, 1)),   # fc2
                full_spec((hidden, hidden)),   full_spec((hidden, 1)),   # fc3
                full_spec((out_size, hidden)), full_spec((out_size, 1)),  # fc5
            ],
            out_specs=pl.BlockSpec((out_size, tile), lambda i: (0, i)),
        ),
        compiler_params=pltpu.CompilerParams(
            dimension_semantics=dim_sem,
            vmem_limit_bytes=vmem_limit),
        cost_estimate=cost,
    )(
        hash_t,
        w1, b1,
        w2, b2,
        w3, b3,
        w5, b5,
    )

    if channels_last:
        return out_t.T                         # (N, out_size), module layout
    return out_t                               # (out_size, N), no extra pass


def init_params(key, *, h_size=2, hidden_size=32, output_size=3, h=16, w=16):
    """Deterministic parameter init matching the PyTorch module's shapes / ranges.

    Weights use the nn.Linear layout (out_features, in_features); biases
    (out, 1).  The hash table is returned transposed as (h_size, h*w) — the
    canonical storage layout for the kernel (points on lanes).
    """
    keys = jax.random.split(key, 10)
    u = jax.random.uniform

    def lin_bias(k, fan_in, out):
        # nn.Linear default bias init: U(-1/sqrt(fan_in), 1/sqrt(fan_in))
        bound = 1.0 / np.sqrt(fan_in)
        return u(k, (out, 1), jnp.float32, -bound, bound)

    # hash: 0.0001 * (rand(h*w, 2) * 2 - 1), stored transposed (2, h*w).
    hash_t = (1e-4 * (u(keys[0], (h * w, h_size), jnp.float32) * 2.0 - 1.0)).T

    # fc1 (is_first): W ~ U(-1/in, 1/in); shape (out, in)
    w1 = u(keys[1], (hidden_size, h_size), jnp.float32,
           -1.0 / h_size, 1.0 / h_size)
    b1 = lin_bias(keys[2], h_size, hidden_size)

    # fc2, fc3: W ~ U(-sqrt(6/in)/30, sqrt(6/in)/30)
    bnd_h = np.sqrt(6.0 / hidden_size) / OMEGA_0
    w2 = u(keys[3], (hidden_size, hidden_size), jnp.float32, -bnd_h, bnd_h)
    b2 = lin_bias(keys[4], hidden_size, hidden_size)
    w3 = u(keys[5], (hidden_size, hidden_size), jnp.float32, -bnd_h, bnd_h)
    b3 = lin_bias(keys[6], hidden_size, hidden_size)

    # fc5: W ~ U(-sqrt(6/64)/30, sqrt(6/64)/30)  (hard-coded 64 in the module)
    bnd_o = np.sqrt(6.0 / 64.0) / OMEGA_0
    w5 = u(keys[7], (output_size, hidden_size), jnp.float32, -bnd_o, bnd_o)
    b5 = lin_bias(keys[8], hidden_size, output_size)

    params = dict(w1=w1, b1=b1, w2=w2, b2=b2, w3=w3, b3=b3, w5=w5, b5=b5)
    return hash_t, params


def reference_forward(hash_t, params):
    """Pure-JAX reference (row-major, un-folded omega) for correctness checking."""
    def lin(x, w, b):
        return x @ w.T + b.reshape(1, -1)

    x = hash_t.T                                # (N, 2)
    x = jnp.sin(OMEGA_0 * lin(x, params["w1"], params["b1"]))
    x = jnp.sin(OMEGA_0 * lin(x, params["w2"], params["b2"]))
    x = jnp.sin(OMEGA_0 * lin(x, params["w3"], params["b3"]))
    x = lin(x, params["w5"], params["b5"])
    return jnp.clip(x, -1.0, 1.0)


if __name__ == "__main__":
    key = jax.random.PRNGKey(0)

    H, W = 16, 16            # spatial grid -> N = 256 hash entries
    HIDDEN, OUT = 32, 3

    hash_t, params = init_params(
        key, h_size=2, hidden_size=HIDDEN, output_size=OUT, h=H, w=W)

    # Note: forward(hash=True) ignores the input coordinates entirely and uses
    # the learned hash table, so no separate `x` input is needed.
    out = diner_siren_forward(hash_t, params)
    out = jax.block_until_ready(out)

    ref = reference_forward(hash_t, params)
    np.testing.assert_allclose(np.asarray(out), np.asarray(ref),
                               rtol=1e-5, atol=1e-5)

    assert out.shape == (H * W, OUT) and out.dtype == jnp.float32
    print("KERNEL_OK")
</pallas_src>

<mosaic_0001>
module attributes {stable_mosaic.version = 11 : i64} {
  func.func @_diner_kernel(%arg0: i32, %arg1: memref<2x256xf32, #tpu.memory_space<vmem>>, %arg2: memref<32x2xf32, #tpu.memory_space<vmem>>, %arg3: memref<32x1xf32, #tpu.memory_space<vmem>>, %arg4: memref<32x32xf32, #tpu.memory_space<vmem>>, %arg5: memref<32x1xf32, #tpu.memory_space<vmem>>, %arg6: memref<32x32xf32, #tpu.memory_space<vmem>>, %arg7: memref<32x1xf32, #tpu.memory_space<vmem>>, %arg8: memref<3x32xf32, #tpu.memory_space<vmem>>, %arg9: memref<3x1xf32, #tpu.memory_space<vmem>>, %arg10: memref<3x256xf32, #tpu.memory_space<vmem>>) attributes {dimension_semantics = [#tpu.dimension_semantics<parallel>], iteration_bounds = array<i64: 1>, scalar_prefetch = 0 : i64, scratch_operands = 0 : i64, tpu.core_type = #tpu.core_type<tc>, window_params = [{transform_indices = @transform_0, window_bounds = array<i64: 2, 256>}, {pipeline_mode = #tpu.pipeline_mode<synchronous>, transform_indices = @transform_1, window_bounds = array<i64: 32, 2>}, {pipeline_mode = #tpu.pipeline_mode<synchronous>, transform_indices = @transform_2, window_bounds = array<i64: 32, 1>}, {pipeline_mode = #tpu.pipeline_mode<synchronous>, transform_indices = @transform_3, window_bounds = array<i64: 32, 32>}, {pipeline_mode = #tpu.pipeline_mode<synchronous>, transform_indices = @transform_4, window_bounds = array<i64: 32, 1>}, {pipeline_mode = #tpu.pipeline_mode<synchronous>, transform_indices = @transform_5, window_bounds = array<i64: 32, 32>}, {pipeline_mode = #tpu.pipeline_mode<synchronous>, transform_indices = @transform_6, window_bounds = array<i64: 32, 1>}, {pipeline_mode = #tpu.pipeline_mode<synchronous>, transform_indices = @transform_7, window_bounds = array<i64: 3, 32>}, {pipeline_mode = #tpu.pipeline_mode<synchronous>, transform_indices = @transform_8, window_bounds = array<i64: 3, 1>}, {transform_indices = @transform_9, window_bounds = array<i64: 3, 256>}]} {
    %c0 = arith.constant 0 : index
    %c0_0 = arith.constant 0 : index
    %0 = vector.load %arg1[%c0, %c0_0] : memref<2x256xf32, #tpu.memory_space<vmem>>, vector<2x256xf32>
    %c0_1 = arith.constant 0 : index
    %c0_2 = arith.constant 0 : index
    %1 = vector.load %arg2[%c0_1, %c0_2] : memref<32x2xf32, #tpu.memory_space<vmem>>, vector<32x2xf32>
    %2 = vector.extract_strided_slice %1 {offsets = [0, 0], sizes = [32, 1], strides = [1, 1]} : vector<32x2xf32> to vector<32x1xf32>
    %3 = vector.extract_strided_slice %0 {offsets = [0, 0], sizes = [1, 256], strides = [1, 1]} : vector<2x256xf32> to vector<1x256xf32>
    %4 = vector.broadcast %2 : vector<32x1xf32> to vector<32x256xf32>
    %5 = vector.broadcast %3 : vector<1x256xf32> to vector<32x256xf32>
    %6 = arith.mulf %4, %5 : vector<32x256xf32>
    %7 = vector.extract_strided_slice %1 {offsets = [0, 1], sizes = [32, 1], strides = [1, 1]} : vector<32x2xf32> to vector<32x1xf32>
    %8 = vector.extract_strided_slice %0 {offsets = [1, 0], sizes = [1, 256], strides = [1, 1]} : vector<2x256xf32> to vector<1x256xf32>
    %9 = vector.broadcast %7 : vector<32x1xf32> to vector<32x256xf32>
    %10 = vector.broadcast %8 : vector<1x256xf32> to vector<32x256xf32>
    %11 = arith.mulf %9, %10 : vector<32x256xf32>
    %12 = arith.addf %6, %11 : vector<32x256xf32>
    %c0_3 = arith.constant 0 : index
    %c0_4 = arith.constant 0 : index
    %13 = vector.load %arg3[%c0_3, %c0_4] : memref<32x1xf32, #tpu.memory_space<vmem>>, vector<32x1xf32>
    %14 = vector.broadcast %13 : vector<32x1xf32> to vector<32x256xf32>
    %15 = arith.addf %12, %14 : vector<32x256xf32>
    %16 = math.sin %15 : vector<32x256xf32>
    %c0_5 = arith.constant 0 : index
    %c0_6 = arith.constant 0 : index
    %17 = vector.load %arg4[%c0_5, %c0_6] : memref<32x32xf32, #tpu.memory_space<vmem>>, vector<32x32xf32>
    %cst = arith.constant dense<0.000000e+00> : vector<32x256xf32>
    %18 = tpu.matmul %17, %16, %cst {dimension_numbers = #tpu.dot_dimension_numbers<[1], [0], [0], [1], [0, 0, 1, 1], [], []>} : vector<32x32xf32>, vector<32x256xf32>, vector<32x256xf32> -> vector<32x256xf32>
    %c0_7 = arith.constant 0 : index
    %c0_8 = arith.constant 0 : index
    %19 = vector.load %arg5[%c0_7, %c0_8] : memref<32x1xf32, #tpu.memory_space<vmem>>, vector<32x1xf32>
    %20 = vector.broadcast %19 : vector<32x1xf32> to vector<32x256xf32>
    %21 = arith.addf %18, %20 : vector<32x256xf32>
    %22 = math.sin %21 : vector<32x256xf32>
    %c0_9 = arith.constant 0 : index
    %c0_10 = arith.constant 0 : index
    %23 = vector.load %arg6[%c0_9, %c0_10] : memref<32x32xf32, #tpu.memory_space<vmem>>, vector<32x32xf32>
    %cst_11 = arith.constant dense<0.000000e+00> : vector<32x256xf32>
    %24 = tpu.matmul %23, %22, %cst_11 {dimension_numbers = #tpu.dot_dimension_numbers<[1], [0], [0], [1], [0, 0, 1, 1], [], []>} : vector<32x32xf32>, vector<32x256xf32>, vector<32x256xf32> -> vector<32x256xf32>
    %c0_12 = arith.constant 0 : index
    %c0_13 = arith.constant 0 : index
    %25 = vector.load %arg7[%c0_12, %c0_13] : memref<32x1xf32, #tpu.memory_space<vmem>>, vector<32x1xf32>
    %26 = vector.broadcast %25 : vector<32x1xf32> to vector<32x256xf32>
    %27 = arith.addf %24, %26 : vector<32x256xf32>
    %28 = math.sin %27 : vector<32x256xf32>
    %c0_14 = arith.constant 0 : index
    %c0_15 = arith.constant 0 : index
    %29 = vector.load %arg8[%c0_14, %c0_15] : memref<3x32xf32, #tpu.memory_space<vmem>>, vector<3x32xf32>
    %cst_16 = arith.constant dense<0.000000e+00> : vector<3x256xf32>
    %30 = tpu.matmul %29, %28, %cst_16 {dimension_numbers = #tpu.dot_dimension_numbers<[1], [0], [0], [1], [0, 0, 1, 1], [], []>} : vector<3x32xf32>, vector<32x256xf32>, vector<3x256xf32> -> vector<3x256xf32>
    %c0_17 = arith.constant 0 : index
    %c0_18 = arith.constant 0 : index
    %31 = vector.load %arg9[%c0_17, %c0_18] : memref<3x1xf32, #tpu.memory_space<vmem>>, vector<3x1xf32>
    %32 = vector.broadcast %31 : vector<3x1xf32> to vector<3x256xf32>
    %33 = arith.addf %30, %32 : vector<3x256xf32>
    %cst_19 = arith.constant -1.000000e+00 : f32
    %cst_20 = arith.constant 1.000000e+00 : f32
    %34 = vector.broadcast %cst_19 : f32 to vector<3x256xf32>
    %35 = arith.maximumf %34, %33 : vector<3x256xf32>
    %36 = vector.broadcast %cst_20 : f32 to vector<3x256xf32>
    %37 = arith.minimumf %36, %35 : vector<3x256xf32>
    %c0_21 = arith.constant 0 : index
    %c0_22 = arith.constant 0 : index
    %38 = vector.load %arg10[%c0_21, %c0_22] : memref<3x256xf32, #tpu.memory_space<vmem>>, vector<3x256xf32>
    tpu.vector_store %arg10[%c0_21, %c0_22], %37 {strides = array<i32>} : memref<3x256xf32, #tpu.memory_space<vmem>>, vector<3x256xf32>,
    return
  }
  func.func @transform_0(%arg0: i32) -> (i32, i32) {
    %c0_i32 = arith.constant 0 : i32
    %c0_i32_0 = arith.constant 0 : i32
    return %c0_i32, %arg0 : i32, i32
  }
  func.func @transform_1(%arg0: i32) -> (i32, i32) {
    %c0_i32 = arith.constant 0 : i32
    %c0_i32_0 = arith.constant 0 : i32
    %c0_i32_1 = arith.constant 0 : i32
    return %c0_i32, %c0_i32_0 : i32, i32
  }
  func.func @transform_2(%arg0: i32) -> (i32, i32) {
    %c0_i32 = arith.constant 0 : i32
    %c0_i32_0 = arith.constant 0 : i32
    %c0_i32_1 = arith.constant 0 : i32
    return %c0_i32, %c0_i32_0 : i32, i32
  }
  func.func @transform_3(%arg0: i32) -> (i32, i32) {
    %c0_i32 = arith.constant 0 : i32
    %c0_i32_0 = arith.constant 0 : i32
    %c0_i32_1 = arith.constant 0 : i32
    return %c0_i32, %c0_i32_0 : i32, i32
  }
  func.func @transform_4(%arg0: i32) -> (i32, i32) {
    %c0_i32 = arith.constant 0 : i32
    %c0_i32_0 = arith.constant 0 : i32
    %c0_i32_1 = arith.constant 0 : i32
    return %c0_i32, %c0_i32_0 : i32, i32
  }
  func.func @transform_5(%arg0: i32) -> (i32, i32) {
    %c0_i32 = arith.constant 0 : i32
    %c0_i32_0 = arith.constant 0 : i32
    %c0_i32_1 = arith.constant 0 : i32
    return %c0_i32, %c0_i32_0 : i32, i32
  }
  func.func @transform_6(%arg0: i32) -> (i32, i32) {
    %c0_i32 = arith.constant 0 : i32
    %c0_i32_0 = arith.constant 0 : i32
    %c0_i32_1 = arith.constant 0 : i32
    return %c0_i32, %c0_i32_0 : i32, i32
  }
  func.func @transform_7(%arg0: i32) -> (i32, i32) {
    %c0_i32 = arith.constant 0 : i32
    %c0_i32_0 = arith.constant 0 : i32
    %c0_i32_1 = arith.constant 0 : i32
    return %c0_i32, %c0_i32_0 : i32, i32
  }
  func.func @transform_8(%arg0: i32) -> (i32, i32) {
    %c0_i32 = arith.constant 0 : i32
    %c0_i32_0 = arith.constant 0 : i32
    %c0_i32_1 = arith.constant 0 : i32
    return %c0_i32, %c0_i32_0 : i32, i32
  }
  func.func @transform_9(%arg0: i32) -> (i32, i32) {
    %c0_i32 = arith.constant 0 : i32
    %c0_i32_0 = arith.constant 0 : i32
    return %c0_i32, %arg0 : i32, i32
  }
}

</mosaic_0001>

<bundles_post_ra>
// kernel: diner_siren_forward.1
= control target key start
LH: loop header
LB: loop body
LE: loop exit
PB: predicated region body
PF: predicated region fallthrough
CT: control target
= control target key end

     0   :  { %v3389_v2 = vmov 1   ;;  %v3390_v4 = vmov 0   ;;  %s5895_s0 = inlined_call_operand.vmem [shape: f32[2,256], index: 0, kind: input, shape index: {}]   ;;  %s5896_s1 = inlined_call_operand.vmem [shape: f32[32,2], index: 1, kind: input, shape index: {}]   ;;  %s5897_s2 = inlined_call_operand.vmem [shape: f32[32,1], index: 2, kind: input, shape index: {}]   ;;  %s5898_s3 = inlined_call_operand.vmem [shape: f32[32,32], index: 3, kind: input, shape index: {}]   ;;  %s5899_s4 = inlined_call_operand.vmem [shape: f32[32,1], index: 4, kind: input, shape index: {}]   ;;  %s5900_s5 = inlined_call_operand.vmem [shape: f32[32,32], index: 5, kind: input, shape index: {}]   ;;  %s5901_s6 = inlined_call_operand.vmem [shape: f32[32,1], index: 6, kind: input, shape index: {}]   ;;  %s5902_s7 = inlined_call_operand.vmem [shape: f32[3,32], index: 7, kind: input, shape index: {}]   ;;  %s5903_s8 = inlined_call_operand.vmem [shape: f32[3,1], index: 8, kind: input, shape index: {}]   ;;  %s5904_s9 = inlined_call_operand.hbm [shape: f32[3,256], index: 9, kind: output, shape index: {}]  }
   0x1   :  { %v36_v0 = vld [vmem:[%s5896_s1 + $0x10] sm:$0xff]  ;;  %v34_v1 = vld [vmem:[%s5896_s1] sm:$0xff]  ;;  %3265 = vset.pattern.permute.xlu0 %v3389_v2  ;;  %3263 = vset.pattern.permute.xlu1 %v3389_v2  ;;  %v35_v3 = vld [vmem:[%s5896_s1 + $0x8] sm:$0xff] }
   0x2   :  { %94 = vperm.xlu0 %3265, %v36_v0   ;;  %86 = vperm.xlu1 %3263, %v34_v1  }
   0x6   :  { %3266 = vset.pattern.permute.xlu0 %v3390_v4  ;;  %90 = vperm.xlu1 %3263, %v35_v3  }
   0x7   :  { %14 = vsyncpa [#allocation3], 0  ;;  %40 = vperm.xlu0 %3266, %v34_v1   ;;  %v37_v5 = vld [vmem:[%s5896_s1 + $0x18] sm:$0xff]  ;;  %v136_v6 = vld [vmem:[%s5897_s2 + $0x8] sm:$0xff]  ;;  %v59_v21 = vlaneseq  ;;  %s3398_s12 = smov [#allocation2]  }
   0x8   :  { %v135_v7 = vld [vmem:[%s5897_s2] sm:$0xff]  ;;  %v137_v9 = vld [vmem:[%s5897_s2 + $0x10] sm:$0xff]  ;;  %v138_v11 = vld [vmem:[%s5897_s2 + $0x18] sm:$0xff]  ;;  %s3018_s13 = sshll.u32 %s3398_s12, 4  ;;  %s3019_s13 = int_to_ptr.vmem [resolvable:$true] %s3018_s13 }
   0x9   :  { %v1003_v8 = vld [vmem:[%s5899_s4] sm:$0xff]  ;;  %v1005_v10 = vld [vmem:[%s5899_s4 + $0x10] sm:$0xff]  ;;  %v1004_v13 = vld [vmem:[%s5899_s4 + $0x8] sm:$0xff]  ;;  %v60_v24 = vshrl.u32 %v59_v21, 7  ;;  %s3365_s14 = scalar_lea.vmem %s3019_s13, 128  ;;  %p3370_p1 = scmp.lt.s32.totalorder %s3019_s13, %s3019_s13 }
   0xa   :  { %3264 = vset.pattern.permute.xlu1 %v3390_v4  ;;  %v1965_v12 = vld [vmem:[%s5901_s6] sm:$0xff]  ;;  %v1967_v14 = vld [vmem:[%s5901_s6 + $0x10] sm:$0xff]  ;;  %v1006_v15 = vld [vmem:[%s5899_s4 + $0x18] sm:$0xff]  ;;  %p3366_p0 = scmp.ne.s32.totalorder %s3019_s13, %s3365_s14  ;;  %p3371_p2 = scmp.lt.s32.totalorder %s3365_s14, %s3365_s14 }
   0xb   :  { %45 = vperm.xlu0 %3266, %v35_v3   ;;  %55 = vperm.xlu1 %3264, %v37_v5   ;;  %v2923_v16 = vld [vmem:[%s5903_s8] sm:$0x7]  ;;  %v1966_v17 = vld [vmem:[%s5901_s6 + $0x8] sm:$0xff]  ;;  %v1968_v18 = vld [vmem:[%s5901_s6 + $0x18] sm:$0xff]  ;;  %v61_v25 = vsub.s32 0, %v60_v24  ;;  %v103_v28 = vsub.s32 1, %v60_v24 }
   0xc   :  { %v33_v29 = vld [vmem:[%s5895_s0] sm:$0xf]  ;;  %v65_v35 = vsub.s32 2, %v60_v24  ;;  %v107_v39 = vsub.s32 3, %v60_v24  ;;  %p3372_p3 = por %p3371_p2, %p3370_p1 }
   0xd   :  { %v62_v30 = vrot.slane %v33_v29, %v61_v25  ;;  %v104_v32 = vrot.slane %v33_v29, %v103_v28 }
   0xe   :  { %v66_v41 = vrot.slane %v33_v29, %v65_v35  ;;  %v108_v44 = vrot.slane %v33_v29, %v107_v39  ;;  %v5940_v39 = vmov 2131351028   ;;  %p3373_p4 = pnand %p3372_p3, %p3366_p0 }
   0xf   :  { %50 = vperm.xlu0 %3266, %v36_v0   ;;  %3267 = vset.pattern.permute.xlu1 %v3389_v2  ;;  %v72_v34 = vrot.slane %v62_v30, %v61_v25  ;;  %v114_v36 = vrot.slane %v104_v32, %v103_v28 }
  0x10   :  { %98 = vperm.xlu1 %3267, %v37_v5   ;;  %v76_v47 = vrot.slane %v66_v41, %v61_v25  ;;  %v118_v49 = vrot.slane %v108_v44, %v103_v28 }
  0x13   :  { %146 = vperm.xlu0 %3266, %v136_v6  }
  0x14   :  { %3268 = vset.pattern.permute.xlu1 %v3390_v4 }
  0x15   :  { %141 = vperm.xlu1 %3268, %v135_v7  }
  0x17   :  { %1009 = vperm.xlu0 %3266, %v1003_v8  }
  0x19   :  { %151 = vperm.xlu1 %3268, %v137_v9  }
  0x1b   :  { %1019 = vperm.xlu0 %3266, %v1005_v10  }
  0x1d   :  { %156 = vperm.xlu1 %3268, %v138_v11  }
  0x1f   :  { %1971 = vperm.xlu0 %3266, %v1965_v12  }
  0x21   :  { %1014 = vperm.xlu1 %3268, %v1004_v13  }
  0x23   :  { %1981 = vperm.xlu0 %3266, %v1967_v14  }
  0x25   :  { %1024 = vperm.xlu1 %3268, %v1006_v15  }
  0x27   :  { %2926 = vperm.xlu0 %3266, %v2923_v16  }
  0x29   :  { %1976 = vperm.xlu1 %3268, %v1966_v17  }
  0x2d   :  { %1986 = vperm.xlu1 %3268, %v1968_v18  }
  0x81   :  { %v87_v19 = vpop.permute.xlu1 %86  ;;  %v95_v20 = vpop.permute.xlu0 %94 }
  0x82   :  { %v123_v40 = vmul.f32 %v114_v36, %v95_v20  ;;  %v119_v60 = vmul.f32 %v114_v36, %v87_v19  ;;  %v120_v63 = vmul.f32 %v118_v49, %v87_v19  ;;  %v124_v1 = vmul.f32 %v118_v49, %v95_v20 }
  0x85   :  { %v91_v22 = vpop.permute.xlu1 %90 }
  0x86   :  { %v41_v23 = vpop.permute.xlu0 %40  ;;  %v121_v48 = vmul.f32 %v114_v36, %v91_v22  ;;  %v122_v54 = vmul.f32 %v118_v49, %v91_v22 }
  0x87   :  { %v77_v56 = vmul.f32 %v72_v34, %v41_v23  ;;  %v78_v58 = vmul.f32 %v76_v47, %v41_v23 }
  0x89   :  { %v127_v2 = vadd.f32 %v119_v60, %v77_v56  ;;  %v128_v3 = vadd.f32 %v120_v63, %v78_v58 }
  0x8a   :  { %v56_v26 = vpop.permute.xlu1 %55  ;;  %v46_v27 = vpop.permute.xlu0 %45 }
  0x8b   :  { %v79_v45 = vmul.f32 %v72_v34, %v46_v27  ;;  %v80_v50 = vmul.f32 %v76_v47, %v46_v27  ;;  %v83_v16 = vmul.f32 %v72_v34, %v56_v26  ;;  %v84_v19 = vmul.f32 %v76_v47, %v56_v26 }
  0x8c   :  { %v5916_v26 = vmov 683565275  }
  0x8d   :  { %v129_v52 = vadd.f32 %v121_v48, %v79_v45  ;;  %v130_v57 = vadd.f32 %v122_v54, %v80_v50  ;;  %v5912_v45 = vmov 920167782  }
  0x8e   :  { %v51_v33 = vpop.permute.xlu0 %50 }
  0x8f   :  { %v99_v31 = vpop.permute.xlu1 %98  ;;  %v81_v37 = vmul.f32 %v72_v34, %v51_v33  ;;  %v82_v61 = vmul.f32 %v76_v47, %v51_v33 }
  0x90   :  { %v125_v12 = vmul.f32 %v114_v36, %v99_v31  ;;  %v126_v13 = vmul.f32 %v118_v49, %v99_v31  ;;  %v5934_v36 = vmov 2475754826   ;;  %v5910_v49 = vmov 1326507024  }
  0x91   :  { %v131_v43 = vadd.f32 %v123_v40, %v81_v37  ;;  %v132_v7 = vadd.f32 %v124_v1, %v82_v61 }
  0x92   :  { %v147_v51 = vpop.permute.xlu0 %146  ;;  %v133_v27 = vadd.f32 %v125_v12, %v83_v16  ;;  %v3522_v28 = vadd.f32 %v126_v13, %v84_v19 }
  0x93   :  { %v3506_v55 = vadd.f32 %v147_v51, %v129_v52  ;;  %v3508_v62 = vadd.f32 %v147_v51, %v130_v57 }
  0x94   :  { %v142_v38 = vpop.permute.xlu1 %141 }
  0x95   :  { %5987 = vst [vmem:[#allocation6_spill] sm:$0xff] %v3506_v55  ;;  %v378_v0 = vand.u32 2139095040, %v3506_v55  ;;  %v482_v5 = vand.u32 2139095040, %v3508_v62  ;;  %v3512_v6 = vadd.f32 %v142_v38, %v127_v2  ;;  %v3514_v9 = vadd.f32 %v142_v38, %v128_v3 }
  0x97   :  { %v379_v8 = vshrl.u32 %v378_v0, 23  ;;  %5988 = vst [vmem:[#allocation7_spill] sm:$0xff] %v3514_v9  ;;  %v483_v14 = vshrl.u32 %v482_v5, 23  ;;  %v170_v15 = vand.u32 2139095040, %v3512_v6  ;;  %v274_v18 = vand.u32 2139095040, %v3514_v9 }
  0x98   :  { %v152_v42 = vpop.permute.xlu1 %151 }
  0x99   :  { %v3503_v46 = vadd.f32 %v152_v42, %v131_v43  ;;  %v3516_v10 = vadd.f32 %v152_v42, %v132_v7  ;;  %v3034_v17 = vadd.s32 4294967169, %v379_v8  ;;  %v3038_v24 = vadd.s32 4294967169, %v483_v14 }
  0x9a   :  { %v171_v25 = vshrl.u32 %v170_v15, 23  ;;  %v275_v30 = vshrl.u32 %v274_v18, 23  ;;  %v5914_v42 = vmov 2102212464  }
  0x9b   :  { %5986 = vst [vmem:[#allocation5_spill] sm:$0xff] %v3503_v46  ;;  %v586_v53 = vand.u32 2139095040, %v3503_v46  ;;  %5989 = vst [vmem:[#allocation8_spill] sm:$0xff] %v3516_v10  ;;  %v5905_v20 = vand.u32 2147483647, %v3503_v46  ;;  %v690_v22 = vand.u32 2139095040, %v3516_v10 }
  0x9c   :  { %v385_v29 = vadd.s32 1, %v3034_v17  ;;  %v5907_v58 = vand.u32 2147483647, %v3516_v10  ;;  %v489_v2 = vadd.s32 1, %v3038_v24  ;;  %v157_v5 = vpop.permute.xlu1 %156  ;;  %v3030_v12 = vadd.s32 4294967169, %v275_v30 }
  0x9d   :  { %v587_v59 = vshrl.u32 %v586_v53, 23  ;;  %v691_v32 = vshrl.u32 %v690_v22, 23  ;;  %v590_v33 = vand.u32 8388607, %v5905_v20  ;;  %v3549_v18 = vadd.f32 %v157_v5, %v133_v27 }
  0x9e   :  { %vm386_vm6 = vcmp.gt.s32.totalorder %v385_v29, 0  ;;  %v694_v16 = vand.u32 8388607, %v5907_v58  ;;  %v3026_v24 = vadd.s32 4294967169, %v171_v25  ;;  %vm490_vm7 = vcmp.gt.s32.totalorder %v489_v2, 0 }
  0x9f   :  { %v3042_v4 = vadd.s32 4294967169, %v587_v59  ;;  %v3046_v54 = vadd.s32 4294967169, %v691_v32  ;;  %v591_v59 = vor.u32 8388608, %v590_v33  ;;  %5990 = vst [vmem:[#allocation9_spill] sm:$0xff] %v3549_v18  ;;  %v5908_v32 = vand.u32 2147483647, %v3514_v9 }
  0xa0   :  { %v387_v33 = vsel %vm386_vm6, %v385_v29, 0  ;;  %v6000_v9 = vmov 1326507024  }
  0xa1   :  { %v593_v11 = vadd.s32 1, %v3042_v4  ;;  %v697_v1 = vadd.s32 1, %v3046_v54  ;;  %v3544_v14 = vshll.u32 %v591_v59, 8 }
  0xa3   :  { %vm594_vm0 = vcmp.gt.s32.totalorder %v593_v11, 0  ;;  %vm698_vm5 = vcmp.gt.s32.totalorder %v697_v1, 0 }
  0xa4   :  { %v595_v21 = vsel %vm594_vm0, %v593_v11, 0  ;;  %v699_v17 = vsel %vm698_vm5, %v697_v1, 0 }
  0xa5   :  { %v597_v23 = vand.u32 31, %v595_v21  ;;  %v596_v34 = vshrl.u32 %v595_v21, 5 }
  0xa7   :  { %v598_v31 = vsub.s32 32, %v597_v23  ;;  %v600_v35 = vshll.u32 %v5916_v26, %v597_v23  ;;  %v603_v37 = vshll.u32 %v5934_v36, %v597_v23  ;;  %v606_v41 = vshll.u32 %v5940_v39, %v597_v23 }
  0xa8   :  { %v609_v44 = vshll.u32 %v5914_v42, %v597_v23  ;;  %v612_v48 = vshll.u32 %v5912_v45, %v597_v23  ;;  %vm615_vm1 = vcmp.lt.s32.totalorder %v596_v34, 1  ;;  %vm617_vm2 = vcmp.lt.s32.totalorder %v596_v34, 3 }
  0xa9   :  { %v601_v38 = vshrl.u32 %v5934_v36, %v598_v31  ;;  %v604_v40 = vshrl.u32 %v5940_v39, %v598_v31  ;;  %v607_v43 = vshrl.u32 %v5914_v42, %v598_v31  ;;  %v610_v47 = vshrl.u32 %v5912_v45, %v598_v31 }
  0xaa   :  { %v613_v50 = vshrl.u32 %v5910_v49, %v598_v31  ;;  %vm618_vm3 = vcmp.lt.s32.totalorder %v596_v34, 4  ;;  %vm616_vm4 = vcmp.lt.s32.totalorder %v596_v34, 2  ;;  %v599_v7 = vshrl.u32 %v5916_v26, %v598_v31 }
  0xab   :  { %v602_v51 = vor.u32 %v601_v38, %v600_v35  ;;  %v605_v52 = vor.u32 %v604_v40, %v603_v37  ;;  %v608_v53 = vor.u32 %v607_v43, %v606_v41  ;;  %v611_v56 = vor.u32 %v610_v47, %v609_v44 }
  0xac   :  { %v614_v57 = vor.u32 %v613_v50, %v612_v48  ;;  %v701_v23 = vand.u32 31, %v699_v17  ;;  %v3562_v35 = vadd.s32 1, %v3030_v12  ;;  %v695_v38 = vor.u32 8388608, %v694_v16 }
  0xad   :  { %v623_v60 = vsel %vm615_vm1, %v602_v51, %v605_v52  ;;  %v624_v61 = vsel %vm618_vm3, %v611_v56, 920167782  ;;  %v627_v63 = vsel %vm615_vm1, %v605_v52, %v608_v53  ;;  %v620_v8 = vsel %vm618_vm3, %v608_v53, 2102212464 }
  0xae   :  { %v628_v0 = vsel %vm618_vm3, %v614_v57, 1326507024  ;;  %v625_v3 = vsel %vm617_vm2, %v608_v53, %v624_v61  ;;  %v619_v15 = vsel %vm615_vm1, %v599_v7, %v602_v51  ;;  %v621_v19 = vsel %vm617_vm2, %v605_v52, %v620_v8 }
  0xaf   :  { %v629_v4 = vsel %vm617_vm2, %v611_v56, %v628_v0  ;;  %v626_v11 = vsel %vm616_vm4, %v623_v60, %v625_v3  ;;  %v702_v27 = vsub.s32 32, %v701_v23  ;;  %v622_v37 = vsel %vm616_vm4, %v619_v15, %v621_v19 }
  0xb0   :  { %v630_v13 = vsel %vm616_vm4, %v627_v63, %v629_v4  ;;  %v3553_v21 = vmul.u32.u64.low %v3544_v14, %v626_v11  ;;  %v3554_v22 = vmul.u32.u64.high %v3544_v14, %v626_v11, %v3553_v21  ;;  %v3565_v40 = vshrl.u32 %v699_v17, 5 }
  0xb1   :  { %v3558_v30 = vmul.u32.u64.low %v3544_v14, %v630_v13  ;;  %v3559_v31 = vmul.u32.u64.high %v3544_v14, %v630_v13, %v3558_v30  ;;  %v794_v41 = vand.u32 2139095040, %v3549_v18  ;;  %v704_v25 = vshll.u32 %v5916_v26, %v701_v23 }
  0xb2   :  { %v705_v43 = vshrl.u32 %v5934_v36, %v702_v27  ;;  %v707_v44 = vshll.u32 %v5934_v36, %v701_v23  ;;  %v708_v47 = vshrl.u32 %v5940_v39, %v702_v27  ;;  %v710_v29 = vshll.u32 %v5940_v39, %v701_v23 }
  0xb3   :  { %v711_v48 = vshrl.u32 %v5914_v42, %v702_v27  ;;  %v713_v34 = vshll.u32 %v5914_v42, %v701_v23  ;;  %v714_v50 = vshrl.u32 %v5912_v45, %v702_v27  ;;  %v716_v53 = vshll.u32 %v5912_v45, %v701_v23 }
  0xb4   :  { %v706_v51 = vor.u32 %v705_v43, %v704_v25  ;;  %v709_v52 = vor.u32 %v708_v47, %v707_v44  ;;  %v717_v54 = vshrl.u32 %v5910_v49, %v702_v27  ;;  %v3578_v59 = vshll.u32 %v695_v38, 8 }
  0xb5   :  { %v712_v56 = vor.u32 %v711_v48, %v710_v29  ;;  %v715_v57 = vor.u32 %v714_v50, %v713_v34  ;;  %v795_v60 = vshrl.u32 %v794_v41, 23  ;;  %v641_v61 = vadd.s32 1, %v3554_v22 }
  0xb6   :  { %v718_v63 = vor.u32 %v717_v54, %v716_v53  ;;  %vm719_vm8 = vcmp.lt.s32.totalorder %v3565_v40, 1  ;;  %vm722_vm9 = vcmp.lt.s32.totalorder %v3565_v40, 4  ;;  %vm640_vm10 = vc.u32 %v3559_v31, %v3553_v21 }
  0xb7   :  { %vm721_vm11 = vcmp.lt.s32.totalorder %v3565_v40, 3  ;;  %v727_v0 = vsel %vm719_vm8, %v706_v51, %v709_v52  ;;  %v728_v1 = vsel %vm722_vm9, %v715_v57, 920167782  ;;  %vm720_vm12 = vcmp.lt.s32.totalorder %v3565_v40, 2 }
  0xb8   :  { %v729_v3 = vsel %vm721_vm11, %v712_v56, %v728_v1  ;;  %v731_v4 = vsel %vm719_vm8, %v709_v52, %v712_v56  ;;  %v732_v7 = vsel %vm722_vm9, %v718_v63, 1326507024  ;;  %v491_v8 = vsel %vm490_vm7, %v489_v2, 0 }
  0xb9   :  { %v730_v11 = vsel %vm720_vm12, %v727_v0, %v729_v3  ;;  %v733_v12 = vsel %vm721_vm11, %v715_v57, %v732_v7  ;;  %v3603_v13 = vadd.f32 %v157_v5, %v3522_v28  ;;  %v642_v15 = vsel %vm640_vm10, %v641_v61, %v3554_v22 }
  0xba   :  { %v734_v16 = vsel %vm720_vm12, %v731_v4, %v733_v12  ;;  %v3609_v17 = vmul.u32.u64.low %v3578_v59, %v730_v11  ;;  %v3610_v19 = vmul.u32.u64.high %v3578_v59, %v730_v11, %v3609_v17  ;;  %v638_v2 = vmul.u32 %v3544_v14, %v622_v37 }
  0xbb   :  { %5991 = vst [vmem:[#allocation10_spill] sm:$0xff] %v3603_v13  ;;  %v3615_v23 = vmul.u32.u64.low %v3578_v59, %v734_v16  ;;  %v3616_v30 = vmul.u32.u64.high %v3578_v59, %v734_v16, %v3615_v23  ;;  %v3050_v38 = vadd.s32 4294967169, %v795_v60  ;;  %v3618_v41 = vand.u32 31, %v387_v33 }
  0xbc   :  { %v177_v28 = vadd.s32 1, %v3026_v24  ;;  %v724_v5 = vsel %vm722_vm9, %v712_v56, 2102212464  ;;  %v3623_v25 = vadd.s32 %v642_v15, %v638_v2  ;;  %v703_v43 = vshrl.u32 %v5916_v26, %v702_v27 }
  0xbd   :  { %5992 = vst [vmem:[#allocation11_spill] sm:$0xff] %v3618_v41  ;;  %v801_v44 = vadd.s32 1, %v3050_v38  ;;  %v3628_v14 = vand.u32 8388607, %v5908_v32  ;;  %v3630_v37 = vshrl.u32 %v387_v33, 5  ;;  %v3632_v47 = vshrl.u32 %v491_v8, 5 }
  0xbe   :  { %v3634_v29 = vand.u32 31, %v491_v8  ;;  %vm282_vm13 = vcmp.gt.s32.totalorder %v3562_v35, 0  ;;  %v723_v24 = vsel %vm719_vm8, %v703_v43, %v706_v51  ;;  %v725_v48 = vsel %vm721_vm11, %v709_v52, %v724_v5 }
  0xbf   :  { %vm802_vm14 = vcmp.gt.s32.totalorder %v801_v44, 0  ;;  %v898_v27 = vand.u32 2139095040, %v3603_v13  ;;  %v3643_v34 = vsub.s32 32, %v3618_v41  ;;  %v3647_v33 = vshll.u32 %v5914_v42, %v3618_v41 }
  0xc0   :  { %vm178_vm15 = vcmp.gt.s32.totalorder %v177_v28, 0  ;;  %v803_v50 = vsel %vm802_vm14, %v801_v44, 0  ;;  %v3650_v53 = vsel %vm282_vm13, %v3562_v35, 0  ;;  %v644_v51 = vadd.s32 536870912, %v3623_v25 }
  0xc1   :  { %5993 = vst [vmem:[#allocation12_spill] sm:$0xff] %v3643_v34  ;;  %v745_v54 = vadd.s32 1, %v3610_v19  ;;  %v805_v52 = vand.u32 31, %v803_v50  ;;  %v3656_v56 = vshll.u32 %v5912_v45, %v3618_v41  ;;  %v3659_v57 = vsub.s32 32, %v3634_v29 }
  0xc2   :  { %v726_v60 = vsel %vm720_vm12, %v723_v24, %v725_v48  ;;  %vm744_vm0 = vc.u32 %v3616_v30, %v3609_v17  ;;  %v3667_v35 = vshll.u32 %v5914_v42, %v3634_v29  ;;  %v3671_v61 = vshll.u32 %v5912_v45, %v3634_v29 }
  0xc3   :  { %v3673_v63 = vsub.s32 32, %v805_v52  ;;  %v899_v0 = vshrl.u32 %v898_v27, 23  ;;  %v3677_v1 = vshrl.u32 %v5912_v45, %v3643_v34  ;;  %v3681_v40 = vshrl.u32 %v5910_v49, %v3643_v34 }
  0xc4   :  { %v3684_v3 = vand.u32 31, %v3650_v53  ;;  %v5906_v4 = vand.u32 2147483647, %v3549_v18  ;;  %v3687_v7 = vshrl.u32 %v644_v51, 30  ;;  %v742_v8 = vmul.u32 %v3578_v59, %v726_v60 }
  0xc5   :  { %v746_v11 = vsel %vm744_vm0, %v745_v54, %v3610_v19  ;;  %v809_v12 = vshrl.u32 %v5934_v36, %v3673_v63  ;;  %v812_v15 = vshrl.u32 %v5940_v39, %v3673_v63  ;;  %v815_v16 = vshrl.u32 %v5914_v42, %v3673_v63 }
  0xc6   :  { %5994 = vst [vmem:[#allocation13_spill] sm:$0xff] %v3687_v7  ;;  %v817_v2 = vshll.u32 %v5914_v42, %v805_v52  ;;  %v818_v23 = vshrl.u32 %v5912_v45, %v3673_v63  ;;  %v3700_v38 = vshrl.u32 %v803_v50, 5  ;;  %v808_v59 = vshll.u32 %v5916_v26, %v805_v52 }
  0xc7   :  { %v811_v19 = vshll.u32 %v5934_v36, %v805_v52  ;;  %v3054_v5 = vadd.s32 4294967169, %v899_v0  ;;  %v3704_v43 = vadd.s32 %v746_v11, %v742_v8  ;;  %v798_v44 = vand.u32 8388607, %v5906_v4 }
  0xc8   :  { %v814_v24 = vshll.u32 %v5940_v39, %v805_v52  ;;  %v819_v48 = vor.u32 %v818_v23, %v817_v2  ;;  %v810_v27 = vor.u32 %v809_v12, %v808_v59  ;;  %v820_v54 = vshll.u32 %v5912_v45, %v805_v52 }
  0xc9   :  { %v813_v51 = vor.u32 %v812_v15, %v811_v19  ;;  %v821_v50 = vshrl.u32 %v5910_v49, %v3673_v63  ;;  %v179_v60 = vsel %vm178_vm15, %v177_v28, 0  ;;  %v3714_v20 = vsub.s32 32, %v3684_v3 }
  0xca   :  { %v646_v0 = vshll.u32 %v3687_v7, 30  ;;  %v816_v8 = vor.u32 %v815_v16, %v814_v24  ;;  %v506_v11 = vshrl.u32 %v5912_v45, %v3659_v57  ;;  %vm826_vm1 = vcmp.lt.s32.totalorder %v3700_v38, 4 }
  0xcb   :  { %v822_v4 = vor.u32 %v821_v50, %v820_v54  ;;  %v905_v12 = vadd.s32 1, %v3054_v5  ;;  %v3722_v52 = vshrl.u32 %v5910_v49, %v3659_v57  ;;  %vm823_vm2 = vcmp.lt.s32.totalorder %v3700_v38, 1 }
  0xcc   :  { %v832_v28 = vsel %vm826_vm1, %v819_v48, 920167782  ;;  %v5909_v15 = vand.u32 2147483647, %v3603_v13  ;;  %v748_v16 = vadd.s32 536870912, %v3704_v43  ;;  %v799_v2 = vor.u32 8388608, %v798_v44 }
  0xcd   :  { %vm825_vm3 = vcmp.lt.s32.totalorder %v3700_v38, 3  ;;  %v831_v23 = vsel %vm823_vm2, %v810_v27, %v813_v51  ;;  %v298_v59 = vshrl.u32 %v5912_v45, %v3714_v20  ;;  %v3735_v19 = vsub.s32 %v3623_v25, %v646_v0 }
  0xce   :  { %v833_v5 = vsel %vm825_vm3, %v816_v8, %v832_v28  ;;  %v836_v24 = vsel %vm826_vm1, %v822_v4, 1326507024  ;;  %vm824_vm4 = vcmp.lt.s32.totalorder %v3700_v38, 2  ;;  %v835_v44 = vsel %vm823_vm2, %v813_v51, %v816_v8 }
  0xcf   :  { %v837_v54 = vsel %vm825_vm3, %v819_v48, %v836_v24  ;;  %vm906_vm5 = vcmp.gt.s32.totalorder %v905_v12, 0  ;;  %v3746_v50 = vshrl.u32 %v179_v60, 5  ;;  %v297_v25 = vshll.u32 %v5914_v42, %v3684_v3 }
  0xd0   :  { %v834_v0 = vsel %vm824_vm4, %v831_v23, %v833_v5  ;;  %v902_v4 = vand.u32 8388607, %v5909_v15  ;;  %v3754_v28 = vand.u32 31, %v179_v60  ;;  %v3757_v58 = vshrl.u32 %v3650_v53, 5 }
  0xd1   :  { %v3759_v32 = vshrl.u32 %v748_v16, 30  ;;  %v3761_v48 = vshll.u32 %v799_v2, 8  ;;  %v3763_v24 = vor.u32 %v298_v59, %v297_v25  ;;  %v3767_v22 = vshrl.u32 %v5910_v49, %v3714_v20 }
  0xd2   :  { %v838_v23 = vsel %vm824_vm4, %v835_v44, %v837_v54  ;;  %v907_v5 = vsel %vm906_vm5, %v905_v12, 0  ;;  %v649_v60 = vsub.s32 0, %v3735_v19  ;;  %v3779_v2 = vor.u32 %v3677_v1, %v3647_v33 }
  0xd3   :  { %5995 = vst [vmem:[#allocation14_spill] sm:$0xff] %v3759_v32  ;;  %v3773_v15 = vmul.u32.u64.low %v3761_v48, %v834_v0  ;;  %v3774_v53 = vmul.u32.u64.high %v3761_v48, %v834_v0, %v3773_v15  ;;  %v909_v16 = vand.u32 31, %v907_v5  ;;  %v3785_v25 = vshll.u32 %v5912_v45, %v3684_v3 }
  0xd4   :  { %v903_v12 = vor.u32 8388608, %v902_v4  ;;  %v750_v44 = vshll.u32 %v3759_v32, 30  ;;  %v828_v54 = vsel %vm826_vm1, %v816_v8, 2102212464  ;;  %v3795_v33 = vor.u32 %v506_v11, %v3667_v35 }
  0xd5   :  { %5996 = vst [vmem:[#allocation15_spill] sm:$0xff] %v3773_v15  ;;  %v3791_v0 = vmul.u32.u64.low %v3761_v48, %v838_v23  ;;  %v3792_v49 = vmul.u32.u64.high %v3761_v48, %v838_v23, %v3791_v0  ;;  %vm306_vm6 = vcmp.lt.s32.totalorder %v3757_v58, 4  ;;  %v807_v1 = vshrl.u32 %v5916_v26, %v3673_v63 }
  0xd6   :  { %v910_v59 = vsub.s32 32, %v909_v16  ;;  %v3805_v8 = vsel %vm306_vm6, %v3763_v24, 920167782  ;;  %v3808_v23 = vmin.u32 %v649_v60, %v3735_v19  ;;  %v288_v35 = vshll.u32 %v5916_v26, %v3684_v3 }
  0xd7   :  { %v827_v11 = vsel %vm823_vm2, %v807_v1, %v810_v27  ;;  %v829_v63 = vsel %vm825_vm3, %v813_v51, %v828_v54  ;;  %v3816_v0 = vshll.u32 %v903_v12, 8  ;;  %v289_v4 = vshrl.u32 %v5934_v36, %v3714_v20 }
  0xd8   :  { %v3821_v45 = vsub.s32 %v3704_v43, %v750_v44  ;;  %v913_v60 = vshrl.u32 %v5934_v36, %v910_v59  ;;  %v291_v42 = vshll.u32 %v5934_v36, %v3684_v3  ;;  %v292_v26 = vshrl.u32 %v5940_v39, %v3714_v20 }
  0xd9   :  { %v5997_v27 = vmov 683565275   ;;  %v915_v51 = vshll.u32 %v5934_v36, %v909_v16  ;;  %v916_v12 = vshrl.u32 %v5940_v39, %v910_v59  ;;  %v5998_v54 = vmov 2102212464  }
  0xda   :  { %v912_v1 = vshll.u32 %v5997_v27, %v909_v16  ;;  %v919_v7 = vshrl.u32 %v5998_v54, %v910_v59  ;;  %v830_v43 = vsel %vm824_vm4, %v827_v11, %v829_v63  ;;  %v849_v44 = vadd.s32 1, %v3774_v53 }
  0xdb   :  { %v908_v32 = vshrl.u32 %v907_v5, 5  ;;  %v918_v13 = vshll.u32 %v5940_v39, %v909_v16  ;;  %v917_v46 = vor.u32 %v916_v12, %v915_v51  ;;  %v921_v10 = vshll.u32 %v5998_v54, %v909_v16 }
  0xdc   :  { %v914_v18 = vor.u32 %v913_v60, %v912_v1  ;;  %v5999_v34 = vmov 920167782   ;;  %vm848_vm7 = vc.u32 %v3792_v49, %v3773_v15  ;;  %v925_v38 = vshrl.u32 %v6000_v9, %v910_v59 }
  0xdd   :  { %v922_v41 = vshrl.u32 %v5999_v34, %v910_v59  ;;  %v920_v36 = vor.u32 %v919_v7, %v918_v13  ;;  %v924_v55 = vshll.u32 %v5999_v34, %v909_v16  ;;  %v753_v11 = vsub.s32 0, %v3821_v45 }
  0xde   :  { %v846_v5 = vmul.u32 %v3761_v48, %v830_v43  ;;  %v290_v39 = vor.u32 %v289_v4, %v288_v35  ;;  %vm927_vm8 = vcmp.lt.s32.totalorder %v908_v32, 1  ;;  %vm930_vm9 = vcmp.lt.s32.totalorder %v908_v32, 4 }
  0xdf   :  { %v923_v63 = vor.u32 %v922_v41, %v921_v10  ;;  %v926_v60 = vor.u32 %v925_v38, %v924_v55  ;;  %v295_v1 = vshrl.u32 %v5998_v54, %v3714_v20  ;;  %v850_v51 = vsel %vm848_vm7, %v849_v44, %v3774_v53 }
  0xe0   :  { %vm929_vm10 = vcmp.lt.s32.totalorder %v908_v32, 3  ;;  %v935_v13 = vsel %vm927_vm8, %v914_v18, %v917_v46  ;;  %vm928_vm11 = vcmp.lt.s32.totalorder %v908_v32, 2  ;;  %v932_v16 = vsel %vm930_vm9, %v920_v36, 2102212464 }
  0xe1   :  { %v936_v7 = vsel %vm930_vm9, %v923_v63, 920167782  ;;  %v939_v15 = vsel %vm927_vm8, %v917_v46, %v920_v36  ;;  %v911_v10 = vshrl.u32 %v5997_v27, %v910_v59  ;;  %v940_v41 = vsel %vm930_vm9, %v926_v60, 1326507024 }
  0xe2   :  { %v937_v12 = vsel %vm929_vm10, %v920_v36, %v936_v7  ;;  %v6001_v48 = vmov 2131351028   ;;  %v3853_v35 = vadd.s32 %v850_v51, %v846_v5  ;;  %v941_v53 = vsel %vm929_vm10, %v923_v63, %v940_v41 }
  0xe3   :  { %v938_v55 = vsel %vm928_vm11, %v935_v13, %v937_v12  ;;  %v294_v4 = vshll.u32 %v6001_v48, %v3684_v3  ;;  %v931_v38 = vsel %vm927_vm8, %v911_v10, %v914_v18  ;;  %v933_v7 = vsel %vm929_vm10, %v917_v46, %v932_v16 }
  0xe4   :  { %v3856_v43 = vmul.u32.u64.low %v3816_v0, %v938_v55  ;;  %v3857_v44 = vmul.u32.u64.high %v3816_v0, %v938_v55, %v3856_v43  ;;  %v942_v36 = vsel %vm928_vm11, %v939_v15, %v941_v53  ;;  %v293_v59 = vor.u32 %v292_v26, %v291_v42 }
  0xe5   :  { %vm410_vm12 = vcmp.lt.s32.totalorder %v3630_v37, 4  ;;  %v3047_v60 = vmin.u32 %v753_v11, %v3821_v45  ;;  %v3865_v3 = vmul.u32.u64.low %v3816_v0, %v942_v36  ;;  %v3866_v5 = vmul.u32.u64.high %v3816_v0, %v942_v36, %v3865_v3 }
  0xe6   :  { %v296_v63 = vor.u32 %v295_v1, %v294_v4  ;;  %v510_v51 = vor.u32 %v3722_v52, %v3671_v61  ;;  %v6002_v13 = vor.u32 %v3767_v22, %v3785_v25  ;;  %v279_v26 = vor.u32 8388608, %v3628_v14 }
  0xe7   :  { %vm303_vm13 = vcmp.lt.s32.totalorder %v3757_v58, 1  ;;  %v852_v42 = vadd.s32 536870912, %v3853_v35  ;;  %v934_v18 = vsel %vm928_vm11, %v931_v38, %v933_v7  ;;  %v953_v15 = vadd.s32 1, %v3857_v44 }
  0xe8   :  { %v316_v46 = vsel %vm306_vm6, %v6002_v13, 1326507024  ;;  %vm305_vm14 = vcmp.lt.s32.totalorder %v3757_v58, 3  ;;  %vm514_vm15 = vcmp.lt.s32.totalorder %v3632_v47, 4  ;;  %v287_v22 = vshrl.u32 %v5997_v27, %v3714_v20 }
  0xe9   :  { %v311_v61 = vsel %vm303_vm13, %v290_v39, %v293_v59  ;;  %v313_v14 = vsel %vm305_vm14, %v296_v63, %v3805_v8  ;;  %v315_v32 = vsel %vm303_vm13, %v293_v59, %v296_v63  ;;  %v651_v52 = vclz %v3808_v23 }
  0xea   :  { %v755_v25 = vclz %v3047_v60  ;;  %vm952_vm0 = vc.u32 %v3866_v5, %v3856_v43  ;;  %v308_v11 = vsel %vm306_vm6, %v296_v63, 2102212464  ;;  %v950_v20 = vmul.u32 %v3816_v0, %v934_v18 }
  0xeb   :  { %v954_v1 = vsel %vm952_vm0, %v953_v15, %v3857_v44  ;;  %vm304_vm1 = vcmp.lt.s32.totalorder %v3757_v58, 2  ;;  %v317_v8 = vsel %vm305_vm14, %v3763_v24, %v316_v46  ;;  %v3902_v16 = vshrl.u32 %v852_v42, 30 }
  0xec   :  { %v314_v23 = vsel %vm304_vm1, %v311_v61, %v313_v14  ;;  %v318_v12 = vsel %vm304_vm1, %v315_v32, %v317_v8  ;;  %v319_v10 = vshll.u32 %v279_v26, 8  ;;  %v3909_v55 = vsub.s32 32, %v3754_v28 }
  0xed   :  { %v3911_v0 = vadd.s32 %v954_v1, %v950_v20  ;;  %v307_v41 = vsel %vm303_vm13, %v287_v22, %v290_v39  ;;  %v309_v24 = vsel %vm305_vm14, %v293_v59, %v308_v11  ;;  %v3919_v4 = vshll.u32 %v5998_v54, %v3754_v28 }
  0xee   :  { %v3044_v53 = vadd.s32 4294967294, %v651_v52  ;;  %v3921_v44 = vmul.u32.u64.low %v319_v10, %v318_v12  ;;  %v3922_v38 = vmul.u32.u64.high %v319_v10, %v318_v12, %v3921_v44  ;;  %v3927_v7 = vsel %vm410_vm12, %v3779_v2, 920167782 }
  0xef   :  { %v3048_v36 = vadd.s32 4294967294, %v755_v25  ;;  %v3929_v60 = vmul.u32.u64.low %v319_v10, %v314_v23  ;;  %v3930_v3 = vmul.u32.u64.high %v319_v10, %v314_v23, %v3929_v60  ;;  %v854_v39 = vshll.u32 %v3902_v16, 30 }
  0xf0   :  { %v310_v59 = vsel %vm304_vm1, %v307_v41, %v309_v24  ;;  %v6003_v63 = vand.u32 2147483647, %v3508_v62  ;;  %v6004_v46 = vmov 2475754826   ;;  %v956_v42 = vadd.s32 536870912, %v3911_v0 }
  0xf1   :  { %v497_v26 = vshrl.u32 %v6004_v46, %v3659_v57  ;;  %v496_v18 = vshll.u32 %v5997_v27, %v3634_v29  ;;  %v499_v15 = vshll.u32 %v6004_v46, %v3634_v29  ;;  %v500_v22 = vshrl.u32 %v6001_v48, %v3659_v57 }
  0xf2   :  { %v486_v13 = vand.u32 8388607, %v6003_v63  ;;  %v524_v58 = vsel %vm514_vm15, %v510_v51, 1326507024  ;;  %v3951_v61 = vshll.u32 %v5999_v34, %v3754_v28  ;;  %vm3045_vm2 = vcmp.lt.s32.totalorder %v3044_v53, 0 }
  0xf3   :  { %vm328_vm3 = vc.u32 %v3922_v38, %v3929_v60  ;;  %vm3049_vm4 = vcmp.lt.s32.totalorder %v3048_v36, 0  ;;  %v329_v14 = vadd.s32 1, %v3930_v3  ;;  %v498_v32 = vor.u32 %v497_v26, %v496_v18 }
  0xf4   :  { %v501_v52 = vor.u32 %v500_v22, %v499_v15  ;;  %v3957_v25 = vsub.s32 %v3853_v35, %v854_v39  ;;  %v326_v11 = vmul.u32 %v319_v10, %v310_v59  ;;  %v502_v51 = vshll.u32 %v6001_v48, %v3634_v29 }
  0xf5   :  { %v503_v20 = vshrl.u32 %v5998_v54, %v3659_v57  ;;  %v520_v1 = vsel %vm514_vm15, %v3795_v33, 920167782  ;;  %v3966_v8 = vshrl.u32 %v956_v42, 30  ;;  %v330_v23 = vsel %vm328_vm3, %v329_v14, %v3930_v3 }
  0xf6   :  { %v487_v12 = vor.u32 8388608, %v486_v13  ;;  %v331_v41 = vadd.s32 %v330_v23, %v326_v11  ;;  %vm511_vm5 = vcmp.lt.s32.totalorder %v3632_v47, 1  ;;  %vm513_vm6 = vcmp.lt.s32.totalorder %v3632_v47, 3 }
  0xf7   :  { %v504_v24 = vor.u32 %v503_v20, %v502_v51  ;;  %v654_v29 = vsel %vm3045_vm2, 0, %v3044_v53  ;;  %v3973_v35 = vsel %vm3049_vm4, 0, %v3048_v36  ;;  %v519_v10 = vsel %vm511_vm5, %v498_v32, %v501_v52 }
  0xf8   :  { %v525_v44 = vsel %vm513_vm6, %v3795_v33, %v524_v58  ;;  %v857_v3 = vsub.s32 0, %v3957_v25  ;;  %v332_v39 = vadd.s32 536870912, %v331_v41  ;;  %v495_v59 = vshrl.u32 %v5997_v27, %v3659_v57 }
  0xf9   :  { %v521_v63 = vsel %vm513_vm6, %v504_v24, %v520_v1  ;;  %vm512_vm7 = vcmp.lt.s32.totalorder %v3632_v47, 2  ;;  %v516_v53 = vsel %vm514_vm15, %v504_v24, 2102212464  ;;  %v523_v36 = vsel %vm511_vm5, %v501_v52, %v504_v24 }
  0xfa   :  { %v527_v13 = vshll.u32 %v487_v12, 8  ;;  %v958_v33 = vshll.u32 %v3966_v8, 30  ;;  %v3991_v26 = vshrl.u32 %v332_v39, 30  ;;  %v522_v42 = vsel %vm512_vm7, %v519_v10, %v521_v63 }
  0xfb   :  { %v526_v57 = vsel %vm512_vm7, %v523_v36, %v525_v44  ;;  %v659_v18 = vsub.s32 4294967266, %v654_v29  ;;  %v763_v15 = vsub.s32 4294967266, %v3973_v35  ;;  %v3051_v14 = vmin.u32 %v857_v3, %v3957_v25 }
  0xfc   :  { %v3998_v22 = vmul.u32.u64.low %v527_v13, %v526_v57  ;;  %v3999_v58 = vmul.u32.u64.high %v527_v13, %v526_v57, %v3998_v22  ;;  %v334_v11 = vshll.u32 %v3991_v26, 30  ;;  %v515_v51 = vsel %vm511_vm5, %v495_v59, %v498_v32 }
  0xfd   :  { %v517_v20 = vsel %vm513_vm6, %v501_v52, %v516_v53  ;;  %v194_v1 = vshrl.u32 %v5999_v34, %v3909_v55  ;;  %v197_v23 = vshrl.u32 %v6000_v9, %v3909_v55  ;;  %vm202_vm8 = vcmp.lt.s32.totalorder %v3746_v50, 4 }
  0xfe   :  { %v4011_v12 = vmul.u32.u64.low %v527_v13, %v522_v42  ;;  %v4012_v24 = vmul.u32.u64.high %v527_v13, %v522_v42, %v4011_v12  ;;  %v655_v10 = vsub.s32 32, %v654_v29  ;;  %v4017_v44 = vsub.s32 %v3911_v0, %v958_v33 }
  0xff   :  { %v4019_v32 = vsub.s32 %v331_v41, %v334_v11  ;;  %v660_v3 = vadd.s32 127, %v659_v18  ;;  %v759_v52 = vsub.s32 32, %v3973_v35  ;;  %v764_v39 = vadd.s32 127, %v763_v15 }
 0x100   :  { %v518_v59 = vsel %vm512_vm7, %v515_v51, %v517_v20  ;;  %v639_v63 = vadd.s32 %v3553_v21, %v3559_v31  ;;  %v859_v53 = vclz %v3051_v14  ;;  %vm536_vm9 = vc.u32 %v3999_v58, %v4011_v12 }
 0x101   :  { %v337_v36 = vsub.s32 0, %v4019_v32  ;;  %v4030_v0 = vor.u32 %v194_v1, %v3919_v4  ;;  %v198_v41 = vor.u32 %v197_v23, %v3951_v61  ;;  %v743_v33 = vadd.s32 %v3609_v17, %v3616_v30 }
 0x102   :  { %v537_v47 = vadd.s32 1, %v4012_v24  ;;  %v657_v42 = vshrl.u32 %v639_v63, %v655_v10  ;;  %v961_v57 = vsub.s32 0, %v4017_v44  ;;  %v534_v31 = vmul.u32 %v527_v13, %v518_v59 }
 0x103   :  { %v3031_v21 = vmin.u32 %v337_v36, %v4019_v32  ;;  %v661_v18 = vshll.u32 %v660_v3, 23  ;;  %v761_v15 = vshrl.u32 %v743_v33, %v759_v52  ;;  %v765_v22 = vshll.u32 %v764_v39, 23 }
 0x104   :  { %v538_v14 = vsel %vm536_vm9, %v537_v47, %v4012_v24  ;;  %v656_v4 = vshll.u32 %v3735_v19, %v654_v29  ;;  %v3052_v11 = vadd.s32 4294967294, %v859_v53  ;;  %v6005_v17 = vor.u32 %v3681_v40, %v3656_v56 }
 0x105   :  { %v339_v61 = vclz %v3031_v21  ;;  %v539_v51 = vadd.s32 %v538_v14, %v534_v31  ;;  %v208_v13 = vsel %vm202_vm8, %v4030_v0, 920167782  ;;  %v212_v20 = vsel %vm202_vm8, %v198_v41, 1326507024 }
 0x106   :  { %v4045_v30 = vsel %vm410_vm12, %v6005_v17, 1326507024  ;;  %v760_v19 = vshll.u32 %v3821_v45, %v3973_v35  ;;  %v4054_v29 = vor.u32 %v657_v42, %v656_v4  ;;  %v3055_v1 = vmin.u32 %v961_v57, %v4017_v44 }
 0x107   :  { %v3032_v23 = vadd.s32 4294967294, %v339_v61  ;;  %v540_v56 = vadd.s32 536870912, %v539_v51  ;;  %v4057_v40 = vor.u32 4788187, %v661_v18  ;;  %v766_v10 = vor.u32 4788187, %v765_v22 }
 0x108   :  { %v762_v24 = vor.u32 %v761_v15, %v760_v19  ;;  %v167_v3 = vand.u32 2147483647, %v3512_v6  ;;  %vm3053_vm10 = vcmp.lt.s32.totalorder %v3052_v11, 0  ;;  %v191_v39 = vshrl.u32 %v5998_v54, %v3909_v55 }
 0x109   :  { %vm3033_vm11 = vcmp.lt.s32.totalorder %v3032_v23, 0  ;;  %v4060_v52 = vshrl.u32 %v540_v56, 30  ;;  %v327_v45 = vadd.s32 %v3929_v60, %v3922_v38  ;;  %v185_v59 = vshrl.u32 %v6004_v46, %v3909_v55  ;;  %v6006_v56 = vld [vmem:[#allocation7_spill] sm:$0xff] }
 0x10a   :  { %v342_v35 = vsel %vm3033_vm11, 0, %v3032_v23  ;;  %v188_v63 = vshrl.u32 %v6001_v48, %v3909_v55  ;;  %v963_v53 = vclz %v3055_v1  ;;  %v190_v33 = vshll.u32 %v6001_v48, %v3754_v28 }
 0x10b   :  { %v343_v36 = vsub.s32 32, %v342_v35  ;;  %v347_v41 = vsub.s32 4294967266, %v342_v35  ;;  %v542_v47 = vshll.u32 %v4060_v52, 30  ;;  %v174_v42 = vand.u32 8388607, %v167_v3 }
 0x10c   :  { %v184_v38 = vshll.u32 %v5997_v27, %v3754_v28  ;;  %v187_v60 = vshll.u32 %v6004_v46, %v3754_v28  ;;  %v344_v57 = vshll.u32 %v4019_v32, %v342_v35  ;;  %v192_v18 = vor.u32 %v191_v39, %v190_v33 }
 0x10d   :  { %v345_v21 = vshrl.u32 %v327_v45, %v343_v36  ;;  %v348_v31 = vadd.s32 127, %v347_v41  ;;  %v769_v15 = vcvt.s32.f32 %v762_v24  ;;  %v4080_v22 = vsub.s32 %v539_v51, %v542_v47 }
 0x10e   :  { %v186_v14 = vor.u32 %v185_v59, %v184_v38  ;;  %v189_v4 = vor.u32 %v188_v63, %v187_v60  ;;  %v767_v61 = vand.u32 2147483647, %v766_v10  ;;  %v4083_v17 = vsel %vm3053_vm10, 0, %v3052_v11 }
 0x10f   :  { %v346_v19 = vor.u32 %v345_v21, %v344_v57  ;;  %v349_v1 = vshll.u32 %v348_v31, 23  ;;  %v4085_v23 = vadd.s32 4294967294, %v963_v53  ;;  %vm273_vm13 = vcmp.lt.s32.totalorder %v6006_v56, 0 }
 0x110   :  { %v357_v28 = vsub.s32 4, %v3991_v26  ;;  %v545_v32 = vsub.s32 0, %v4080_v22  ;;  %v183_v51 = vshrl.u32 %v5997_v27, %v3909_v55  ;;  %v6007_v24 = vand.u32 2147483647, %v6006_v56 }
 0x111   :  { %v350_v11 = vor.u32 4788187, %v349_v1  ;;  %v175_v39 = vor.u32 8388608, %v174_v42  ;;  %vm199_vm15 = vcmp.lt.s32.totalorder %v3746_v50, 1  ;;  %v204_v45 = vsel %vm202_vm8, %v192_v18, 2102212464 }
 0x112   :  { %vm4094_vm14 = vcmp.le.f32.partialorder %v6007_v24, 0.7853982  ;;  %v353_v35 = vcvt.s32.f32 %v346_v19  ;;  %v3039_v59 = vmin.u32 %v545_v32, %v4080_v22  ;;  %vm201_vm0 = vcmp.lt.s32.totalorder %v3746_v50, 3  ;;  %v6010_v19 = vld [vmem:[#allocation15_spill] sm:$0xff] }
 0x113   :  { %v207_v63 = vsel %vm199_vm15, %v186_v14, %v189_v4  ;;  %v351_v55 = vand.u32 2147483647, %v350_v11  ;;  %v209_v53 = vsel %vm201_vm0, %v192_v18, %v208_v13  ;;  %v211_v36 = vsel %vm199_vm15, %v189_v4, %v192_v18 }
 0x114   :  { %v213_v41 = vsel %vm201_vm0, %v4030_v0, %v212_v20  ;;  %v547_v33 = vclz %v3039_v59  ;;  %vm200_vm1 = vcmp.lt.s32.totalorder %v3746_v50, 2  ;;  %v203_v47 = vsel %vm199_vm15, %v183_v51, %v186_v14  ;;  %v6011_v50 = vld [vmem:[#allocation6_spill] sm:$0xff] }
 0x115   :  { %v205_v42 = vsel %vm201_vm0, %v189_v4, %v204_v45  ;;  %v354_v38 = vmul.f32 %v353_v35, %v351_v55  ;;  %v210_v60 = vsel %vm200_vm1, %v207_v63, %v209_v53  ;;  %v214_v57 = vsel %vm200_vm1, %v211_v36, %v213_v41  ;;  %v6012_v36 = vld [vmem:[#allocation11_spill] sm:$0xff] }
 0x116   :  { %v215_v21 = vshll.u32 %v175_v39, 8  ;;  %v4105_v31 = vmul.f32 %v769_v15, %v767_v61  ;;  %v4109_v1 = vadd.s32 %v6010_v19, %v3792_v49  ;;  %v863_v13 = vsub.s32 32, %v4083_v17 }
 0x117   :  { %v3040_v18 = vadd.s32 4294967294, %v547_v33  ;;  %v355_v32 = vxor.u32 2147483648, %v354_v38  ;;  %v375_v14 = vand.u32 2147483647, %v6011_v50  ;;  %v206_v4 = vsel %vm200_vm1, %v203_v47, %v205_v42 }
 0x118   :  { %v4112_v0 = vmul.u32.u64.low %v215_v21, %v214_v57  ;;  %v4113_v20 = vmul.u32.u64.high %v215_v21, %v214_v57, %v4112_v0  ;;  %v4116_v51 = vmul.u32.u64.low %v215_v21, %v210_v60  ;;  %v4117_v24 = vmul.u32.u64.high %v215_v21, %v210_v60, %v4116_v51 }
 0x119   :  { %vm3041_vm2 = vcmp.lt.s32.totalorder %v3040_v18, 0  ;;  %vm3057_vm3 = vcmp.lt.s32.totalorder %v4085_v23, 0  ;;  %v356_v49 = vsel %vm273_vm13, %v355_v32, %v354_v38  ;;  %v4126_v15 = vsel %vm273_vm13, %v357_v28, %v3991_v26 }
 0x11a   :  { %v550_v61 = vsel %vm3041_vm2, 0, %v3040_v18  ;;  %v359_v11 = vsel %vm4094_vm14, %v6006_v56, %v356_v49  ;;  %v535_v39 = vadd.s32 %v4011_v12, %v3999_v58  ;;  %v222_v63 = vmul.u32 %v215_v21, %v206_v4  ;;  %v6013_v58 = vld [vmem:[#allocation12_spill] sm:$0xff] }
 0x11b   :  { %v551_v45 = vsub.s32 32, %v550_v61  ;;  %v555_v35 = vsub.s32 4294967266, %v550_v61  ;;  %v552_v59 = vshll.u32 %v4080_v22, %v550_v61  ;;  %vm224_vm4 = vc.u32 %v4113_v20, %v4116_v51 }
 0x11c   :  { %v382_v26 = vand.u32 8388607, %v375_v14  ;;  %3269 = vcosq.f32 %v359_v11  ;;  %v225_v53 = vadd.s32 1, %v4117_v24  ;;  %v392_v41 = vshll.u32 %v5997_v27, %v6012_v36 }
 0x11d   :  { %v553_v28 = vshrl.u32 %v535_v39, %v551_v45  ;;  %v556_v55 = vadd.s32 127, %v555_v35  ;;  %v393_v12 = vshrl.u32 %v6004_v46, %v6013_v58  ;;  %v395_v22 = vshll.u32 %v6004_v46, %v6012_v36 }
 0x11e   :  { %v396_v33 = vshrl.u32 %v6001_v48, %v6013_v58  ;;  %v226_v38 = vsel %vm224_vm4, %v225_v53, %v4117_v24  ;;  %v398_v60 = vshll.u32 %v6001_v48, %v6012_v36  ;;  %vm481_vm5 = vcmp.lt.s32.totalorder %v3508_v62, 0 }
 0x11f   :  { %v554_v47 = vor.u32 %v553_v28, %v552_v59  ;;  %v557_v42 = vshll.u32 %v556_v55, 23  ;;  %v227_v57 = vadd.s32 %v226_v38, %v222_v63  ;;  %v394_v21 = vor.u32 %v393_v12, %v392_v41 }
 0x120   :  { %v397_v19 = vor.u32 %v396_v33, %v395_v22  ;;  %v399_v18 = vshrl.u32 %v5998_v54, %v6013_v58  ;;  %v4156_v32 = vsel %vm3057_vm3, 0, %v4085_v23  ;;  %3271 = vsinq.f32 %v359_v11 }
 0x121   :  { %v6014_v0 = vand.u32 2147483647, %v3508_v62  ;;  %v558_v24 = vor.u32 4788187, %v557_v42  ;;  %v383_v49 = vor.u32 8388608, %v382_v26  ;;  %v565_v61 = vsub.s32 4, %v4060_v52 }
 0x122   :  { %v228_v39 = vadd.s32 536870912, %v227_v57  ;;  %v400_v45 = vor.u32 %v399_v18, %v398_v60  ;;  %vm409_vm7 = vcmp.lt.s32.totalorder %v3630_v37, 3  ;;  %v561_v59 = vcvt.s32.f32 %v554_v47 }
 0x123   :  { %vm4160_vm6 = vcmp.le.f32.partialorder %v6014_v0, 0.7853982  ;;  %v559_v35 = vand.u32 2147483647, %v558_v24  ;;  %vm407_vm8 = vcmp.lt.s32.totalorder %v3630_v37, 1  ;;  %v421_v23 = vsel %vm409_vm7, %v3779_v2, %v4045_v30 }
 0x124   :  { %v4171_v11 = vshrl.u32 %v228_v39, 30  ;;  %vm408_vm9 = vcmp.lt.s32.totalorder %v3630_v37, 2  ;;  %v415_v63 = vsel %vm407_vm8, %v394_v21, %v397_v19  ;;  %v419_v26 = vsel %vm407_vm8, %v397_v19, %v400_v45 }
 0x125   :  { %v562_v28 = vmul.f32 %v561_v59, %v559_v35  ;;  %v417_v55 = vsel %vm409_vm7, %v400_v45, %v3927_v7  ;;  %v422_v53 = vsel %vm408_vm9, %v419_v26, %v421_v23  ;;  %v423_v36 = vshll.u32 %v383_v49, 8 }
 0x126   :  { %v951_v2 = vadd.s32 %v3856_v43, %v3866_v5  ;;  %v971_v30 = vsub.s32 4294967266, %v4156_v32  ;;  %v360_v41 = vsel %vm4094_vm14, 0, %v4126_v15  ;;  %v230_v12 = vshll.u32 %v4171_v11, 30  ;;  %v3270_v22 = vpop.eup %3269 }
 0x127   :  { %v563_v33 = vxor.u32 2147483648, %v562_v28  ;;  %v412_v7 = vsel %vm410_vm12, %v400_v45, 2102212464  ;;  %v4192_v47 = vmul.u32.u64.low %v423_v36, %v422_v53  ;;  %v4193_v42 = vmul.u32.u64.high %v423_v36, %v422_v53, %v4192_v47 }
 0x128   :  { %v867_v38 = vsub.s32 4294967266, %v4083_v17  ;;  %v4196_v60 = vsub.s32 %v227_v57, %v230_v12  ;;  %v391_v43 = vshrl.u32 %v5997_v27, %v6013_v58  ;;  %v418_v5 = vsel %vm408_vm9, %v415_v63, %v417_v55 }
 0x129   :  { %v865_v10 = vshrl.u32 %v4109_v1, %v863_v13  ;;  %v364_v15 = vadd.s32 3, %v360_v41  ;;  %v564_v18 = vsel %vm481_vm5, %v563_v33, %v562_v28  ;;  %v566_v0 = vsel %vm481_vm5, %v565_v61, %v4060_v52 }
 0x12a   :  { %v567_v57 = vsel %vm4160_vm6, %v3508_v62, %v564_v18  ;;  %v233_v58 = vsub.s32 0, %v4196_v60  ;;  %v411_v24 = vsel %vm407_vm8, %v391_v43, %v394_v21  ;;  %v413_v1 = vsel %vm409_vm7, %v397_v19, %v412_v7  ;;  %v3272_v13 = vpop.eup %3271 }
 0x12b   :  { %v972_v49 = vadd.s32 127, %v971_v30  ;;  %3273 = vcosq.f32 %v567_v57  ;;  %v4218_v39 = vmul.u32.u64.low %v423_v36, %v418_v5  ;;  %v4219_v45 = vmul.u32.u64.high %v423_v36, %v418_v5, %v4218_v39 }
 0x12c   :  { %v868_v52 = vadd.s32 127, %v867_v38  ;;  %v568_v61 = vsel %vm4160_vm6, 0, %v566_v0  ;;  %3275 = vsinq.f32 %v567_v57  ;;  %v3027_v35 = vmin.u32 %v233_v58, %v4196_v60 }
 0x12d   :  { %v864_v21 = vshll.u32 %v3957_v25, %v4083_v17  ;;  %v967_v59 = vsub.s32 32, %v4156_v32  ;;  %v365_v19 = vand.u32 3, %v364_v15  ;;  %v414_v23 = vsel %vm408_vm9, %v411_v24, %v413_v1 }
 0x12e   :  { %v368_v63 = vxor.u32 2147483648, %v3272_v13  ;;  %v371_v26 = vxor.u32 2147483648, %v3270_v22  ;;  %v235_v28 = vclz %v3027_v35  ;;  %vm432_vm12 = vc.u32 %v4193_v42, %v4218_v39 }
 0x12f   :  { %v4232_v4 = vor.u32 %v865_v10, %v864_v21  ;;  %v973_v55 = vshll.u32 %v972_v49, 23  ;;  %v572_v53 = vadd.s32 3, %v568_v61  ;;  %v433_v30 = vadd.s32 1, %v4219_v45 }
 0x130   :  { %v869_v41 = vshll.u32 %v868_v52, 23  ;;  %v968_v25 = vshll.u32 %v4017_v44, %v4156_v32  ;;  %vm363_vm10 = vweird.f32 %v6006_v56  ;;  %v3028_v37 = vadd.s32 4294967294, %v235_v28 }
 0x131   :  { %v430_v17 = vmul.u32 %v423_v36, %v414_v23  ;;  %v969_v12 = vshrl.u32 %v951_v2, %v967_v59  ;;  %vm367_vm11 = vcmp.eq.s32.totalorder %v365_v19, 0  ;;  %vm370_vm13 = vcmp.eq.s32.totalorder %v365_v19, 2 }
 0x132   :  { %v434_v33 = vsel %vm432_vm12, %v433_v30, %v4219_v45  ;;  %v369_v7 = vsel %vm367_vm11, %v3270_v22, %v368_v63  ;;  %v372_v47 = vsel %vm370_vm13, %v371_v26, %v3272_v13  ;;  %vm571_vm14 = vweird.f32 %v3508_v62 }
 0x133   :  { %vm3029_vm15 = vcmp.lt.s32.totalorder %v3028_v37, 0  ;;  %v435_v38 = vadd.s32 %v434_v33, %v430_v17  ;;  %v974_v43 = vor.u32 4788187, %v973_v55  ;;  %vm366_vm0 = vcmp.lt.s32.totalorder %v365_v19, 2  ;;  %v6017_v33 = vld [vmem:[#allocation8_spill] sm:$0xff] }
 0x134   :  { %v573_v5 = vand.u32 3, %v572_v53  ;;  %v238_v10 = vsel %vm3029_vm15, 0, %v3028_v37  ;;  %v223_v44 = vadd.s32 %v4116_v51, %v4113_v20  ;;  %v870_v18 = vor.u32 4788187, %v869_v41 }
 0x135   :  { %v239_v32 = vsub.s32 32, %v238_v10  ;;  %v243_v36 = vsub.s32 4294967266, %v238_v10  ;;  %v436_v2 = vadd.s32 536870912, %v435_v38  ;;  %v3274_v15 = vpop.eup %3273  ;;  %v970_v0 = vor.u32 %v969_v12, %v968_v25 }
 0x136   :  { %v373_v57 = vsel %vm366_vm0, %v369_v7, %v372_v47  ;;  %v240_v22 = vshll.u32 %v4196_v60, %v238_v10  ;;  %v3276_v58 = vpop.eup %3275  ;;  %v579_v24 = vxor.u32 2147483648, %v3274_v15  ;;  %v975_v45 = vand.u32 2147483647, %v974_v43 }
 0x137   :  { %v241_v1 = vshrl.u32 %v223_v44, %v239_v32  ;;  %v244_v13 = vadd.s32 127, %v243_v36  ;;  %v4243_v49 = vshrl.u32 %v436_v2, 30  ;;  %vm575_vm1 = vcmp.eq.s32.totalorder %v573_v5, 0  ;;  %v6022_v2 = vld [vmem:[#allocation9_spill] sm:$0xff] }
 0x138   :  { %v576_v52 = vxor.u32 2147483648, %v3276_v58  ;;  %vm578_vm2 = vcmp.eq.s32.totalorder %v573_v5, 2  ;;  %v977_v21 = vcvt.s32.f32 %v970_v0  ;;  %v374_v59 = vsel %vm363_vm10, nan, %v373_v57  ;;  %v6026_v0 = vld [vmem:[#allocation10_spill] sm:$0xff] }
 0x139   :  { %v580_v20 = vsel %vm578_vm2, %v579_v24, %v3276_v58  ;;  %v242_v51 = vor.u32 %v241_v1, %v240_v22  ;;  %v245_v61 = vshll.u32 %v244_v13, 23  ;;  %v438_v35 = vshll.u32 %v4243_v49, 30 }
 0x13a   :  { %vm574_vm3 = vcmp.lt.s32.totalorder %v573_v5, 2  ;;  %v577_v60 = vsel %vm575_vm1, %v3274_v15, %v576_v52  ;;  %v663_v19 = vand.u32 2147483647, %v4057_v40  ;;  %v771_v28 = vxor.u32 2147483648, %v4105_v31 }
 0x13b   :  { %v581_v23 = vsel %vm574_vm3, %v577_v60, %v580_v20  ;;  %v246_v63 = vor.u32 4788187, %v245_v61  ;;  %v439_v26 = vsub.s32 %v435_v38, %v438_v35  ;;  %v871_v55 = vand.u32 2147483647, %v870_v18 }
 0x13c   :  { %v978_v53 = vmul.f32 %v977_v21, %v975_v45  ;;  %v582_v30 = vsel %vm571_vm14, nan, %v581_v23  ;;  %v249_v37 = vcvt.s32.f32 %v242_v51  ;;  %v873_v56 = vcvt.s32.f32 %v4232_v4  ;;  %v6032_v23 = vld [vmem:[#allocation14_spill] sm:$0xff] }
 0x13d   :  { %v3133_v41 = vpack.c.bf16 %v582_v30, %v374_v59  ;;  %v247_v25 = vand.u32 2147483647, %v246_v63  ;;  %v441_v17 = vsub.s32 0, %v439_v26  ;;  %v665_v12 = vcvt.s32.f32 %v4054_v29  ;;  %v6021_v29 = vld [vmem:[#allocation5_spill] sm:$0xff] }
 0x13e   :  { %vm689_vm4 = vcmp.lt.s32.totalorder %v6017_v33, 0  ;;  %v874_v38 = vmul.f32 %v873_v56, %v871_v55  ;;  %v979_v43 = vxor.u32 2147483648, %v978_v53  ;;  %v6018_v10 = vand.u32 2147483647, %v6017_v33 }
 0x13f   :  { %3134 = vmatprep.subr.bf16.mxu0 %v3133_v41  ;;  %v250_v40 = vmul.f32 %v249_v37, %v247_v25  ;;  %v3035_v7 = vmin.u32 %v441_v17, %v439_v26  ;;  %v772_v47 = vsel %vm689_vm4, %v771_v28, %v4105_v31  ;;  %v666_v62 = vmul.f32 %v665_v12, %v663_v19 }
 0x140   :  { %vm4260_vm5 = vcmp.le.f32.partialorder %v6018_v10, 0.7853982  ;;  %vm585_vm6 = vcmp.lt.s32.totalorder %v6021_v29, 0  ;;  %v6023_v31 = vand.u32 2147483647, %v6022_v2  ;;  %vm793_vm8 = vcmp.lt.s32.totalorder %v6022_v2, 0 }
 0x141   :  { %v443_v5 = vclz %v3035_v7  ;;  %v775_v4 = vsel %vm4260_vm5, %v6017_v33, %v772_v47  ;;  %v251_v32 = vxor.u32 2147483648, %v250_v40  ;;  %v875_v18 = vxor.u32 2147483648, %v874_v38 }
 0x142   :  { %vm4270_vm7 = vcmp.le.f32.partialorder %v6023_v31, 0.7853982  ;;  %vm897_vm9 = vcmp.lt.s32.totalorder %v6026_v0, 0  ;;  %v667_v57 = vxor.u32 2147483648, %v666_v62  ;;  %v6027_v22 = vand.u32 2147483647, %v6026_v0 }
 0x143   :  { %v3036_v36 = vadd.s32 4294967294, %v443_v5  ;;  %v980_v24 = vsel %vm897_vm9, %v979_v43, %v978_v53  ;;  %3277 = vcosq.f32 %v775_v4  ;;  %vm169_vm11 = vcmp.lt.s32.totalorder %v3512_v6, 0  ;;  %v6036_v5 = vld [vmem:[#allocation13_spill] sm:$0xff] }
 0x144   :  { %vm4278_vm12 = vcmp.le.f32.partialorder %v6027_v22, 0.7853982  ;;  %v253_v1 = vsub.s32 4, %v4171_v11  ;;  %v252_v45 = vsel %vm169_vm11, %v251_v32, %v250_v40  ;;  %v431_v52 = vadd.s32 %v4218_v39, %v4193_v42 }
 0x145   :  { %vm3037_vm10 = vcmp.lt.s32.totalorder %v3036_v36, 0  ;;  %v876_v61 = vsel %vm793_vm8, %v875_v18, %v874_v38  ;;  %v983_v35 = vsel %vm4278_vm12, %v6026_v0, %v980_v24  ;;  %vm4297_vm13 = vcmp.le.f32.partialorder %v167_v3, 0.7853982 }
 0x146   :  { %v446_v13 = vsel %vm3037_vm10, 0, %v3036_v36  ;;  %v773_v42 = vsub.s32 4, %v6032_v23  ;;  %v5943_v39 = vmov 0.0   ;;  %v668_v63 = vsel %vm585_vm6, %v667_v57, %v666_v62 }
 0x147   :  { %v447_v20 = vsub.s32 32, %v446_v13  ;;  %v451_v51 = vsub.s32 4294967266, %v446_v13  ;;  %v448_v59 = vshll.u32 %v439_v26, %v446_v13  ;;  %1104 = vmatprep.mubr.f32.mxu0 %v5943_v39  ;;  %2065 = vmatprep.mubr.f32.mxu1 %v5943_v39  ;;  %3279 = vsinq.f32 %v775_v4 }
 0x148   :  { %v255_v3 = vsel %vm4297_vm13, %v3512_v6, %v252_v45  ;;  %v981_v28 = vsub.s32 4, %v3966_v8  ;;  %3281 = vcosq.f32 %v983_v35  ;;  %v254_v26 = vsel %vm169_vm11, %v253_v1, %v4171_v11 }
 0x149   :  { %v449_v60 = vshrl.u32 %v431_v52, %v447_v20  ;;  %v452_v19 = vadd.s32 127, %v451_v51  ;;  %v6033_v30 = vand.u32 2147483647, %v6021_v29  ;;  %v879_v25 = vsel %vm4270_vm7, %v6022_v2, %v876_v61 }
 0x14a   :  { %3283 = vsinq.f32 %v983_v35  ;;  %v774_v11 = vsel %vm689_vm4, %v773_v42, %v6032_v23  ;;  %v256_v56 = vsel %vm4297_vm13, 0, %v254_v26  ;;  %v982_v12 = vsel %vm897_vm9, %v981_v28, %v3966_v8 }
 0x14b   :  { %v450_v55 = vor.u32 %v449_v60, %v448_v59  ;;  %v453_v53 = vshll.u32 %v452_v19, 23  ;;  %vm4315_vm14 = vcmp.le.f32.partialorder %v6033_v30, 0.7853982  ;;  %3285 = vcosq.f32 %v255_v3 }
 0x14c   :  { %v671_v37 = vsel %vm4315_vm14, %v6021_v29, %v668_v63  ;;  %3287 = vsinq.f32 %v255_v3  ;;  %v877_v40 = vsub.s32 4, %v3902_v16  ;;  %v461_v38 = vsub.s32 4, %v4243_v49 }
 0x14d   :  { %v454_v17 = vor.u32 4788187, %v453_v53  ;;  %3289 = vcosq.f32 %v879_v25  ;;  %v457_v47 = vcvt.s32.f32 %v450_v55  ;;  %v3278_v62 = vpop.eup %3277  ;;  %v776_v43 = vsel %vm4260_vm5, 0, %v774_v11 }
 0x14e   :  { %3291 = vsinq.f32 %v879_v25  ;;  %v669_v10 = vsub.s32 4, %v6036_v5  ;;  %v260_v4 = vadd.s32 3, %v256_v56  ;;  %v984_v8 = vsel %vm4278_vm12, 0, %v982_v12 }
 0x14f   :  { %v455_v7 = vand.u32 2147483647, %v454_v17  ;;  %3293 = vcosq.f32 %v671_v37  ;;  %vm377_vm15 = vcmp.lt.s32.totalorder %v6011_v50, 0  ;;  %v878_v36 = vsel %vm793_vm8, %v877_v40, %v3902_v16 }
 0x150   :  { %3295 = vsinq.f32 %v671_v37  ;;  %v462_v18 = vsel %vm377_vm15, %v461_v38, %v4243_v49  ;;  %v780_v44 = vadd.s32 3, %v776_v43  ;;  %v988_v22 = vadd.s32 3, %v984_v8 }
 0x151   :  { %v458_v32 = vmul.f32 %v457_v47, %v455_v7  ;;  %v3280_v57 = vpop.eup %3279  ;;  %v670_v24 = vsel %vm585_vm6, %v669_v10, %v6036_v5  ;;  %v4348_v58 = vand.u32 3, %v260_v4  ;;  %vm4352_vm0 = vcmp.le.f32.partialorder %v375_v14, 0.7853982 }
 0x152   :  { %v3282_v1 = vpop.eup %3281  ;;  %v880_v49 = vsel %vm4270_vm7, 0, %v878_v36  ;;  %v464_v20 = vsel %vm4352_vm0, 0, %v462_v18  ;;  %v781_v61 = vand.u32 3, %v780_v44  ;;  %v784_v35 = vxor.u32 2147483648, %v3280_v57 }
 0x153   :  { %v459_v31 = vxor.u32 2147483648, %v458_v32  ;;  %v672_v14 = vsel %vm4315_vm14, 0, %v670_v24  ;;  %v787_v59 = vxor.u32 2147483648, %v3278_v62  ;;  %v989_v15 = vand.u32 3, %v988_v22 }
 0x154   :  { %v3284_v45 = vpop.eup %3283  ;;  %v884_v60 = vadd.s32 3, %v880_v49  ;;  %vm262_vm1 = vcmp.lt.s32.totalorder %v4348_v58, 2  ;;  %vm263_vm2 = vcmp.eq.s32.totalorder %v4348_v58, 0  ;;  %v468_v23 = vadd.s32 3, %v464_v20 }
 0x155   :  { %v460_v16 = vsel %vm377_vm15, %v459_v31, %v458_v32  ;;  %v3286_v51 = vpop.eup %3285  ;;  %vm266_vm3 = vcmp.eq.s32.totalorder %v4348_v58, 2  ;;  %v992_v63 = vxor.u32 2147483648, %v3284_v45  ;;  %v995_v3 = vxor.u32 2147483648, %v3282_v1 }
 0x156   :  { %v463_v52 = vsel %vm4352_vm0, %v6011_v50, %v460_v16  ;;  %v3288_v21 = vpop.eup %3287  ;;  %v676_v28 = vadd.s32 3, %v672_v14  ;;  %v267_v53 = vxor.u32 2147483648, %v3286_v51  ;;  %vm783_vm4 = vcmp.eq.s32.totalorder %v781_v61, 0  ;;  %v1010_v14 = vpop.permute.xlu0 %1009 }
 0x157   :  { %3297 = vcosq.f32 %v463_v52  ;;  %v3290_v19 = vpop.eup %3289  ;;  %v264_v55 = vxor.u32 2147483648, %v3288_v21  ;;  %vm786_vm5 = vcmp.eq.s32.totalorder %v781_v61, 2  ;;  %vm987_vm6 = vweird.f32 %v6026_v0 }
 0x158   :  { %3299 = vsinq.f32 %v463_v52  ;;  %v3292_v42 = vpop.eup %3291  ;;  %vm259_vm7 = vweird.f32 %v3512_v6  ;;  %v785_v41 = vsel %vm783_vm4, %v3278_v62, %v784_v35  ;;  %v788_v25 = vsel %vm786_vm5, %v787_v59, %v3280_v57 }
 0x159   :  { %v3294_v26 = vpop.eup %3293  ;;  %vm991_vm8 = vcmp.eq.s32.totalorder %v989_v15, 0  ;;  %v885_v37 = vand.u32 3, %v884_v60  ;;  %v469_v17 = vand.u32 3, %v468_v23  ;;  %vm779_vm9 = vweird.f32 %v6017_v33  ;;  %v999_v33 = vld [vmem:[%s5898_s3] sm:$0xff] }
 0x15a   :  { %v3296_v30 = vpop.eup %3295  ;;  %vm994_vm12 = vcmp.eq.s32.totalorder %v989_v15, 2  ;;  %v888_v11 = vxor.u32 2147483648, %v3292_v42  ;;  %v891_v56 = vxor.u32 2147483648, %v3290_v19  ;;  %vm467_vm10 = vweird.f32 %v6011_v50  ;;  %v1000_v50 = vld [vmem:[%s5898_s3 + $0x8] sm:$0xff] }
 0x15b   :  { %vm782_vm11 = vcmp.lt.s32.totalorder %v781_v61, 2  ;;  %v993_v12 = vsel %vm991_vm8, %v3282_v1, %v992_v63  ;;  %v996_v40 = vsel %vm994_vm12, %v995_v3, %v3284_v45  ;;  %v677_v7 = vand.u32 3, %v676_v28 }
 0x15c   :  { %v265_v47 = vsel %vm263_vm2, %v3286_v51, %v264_v55  ;;  %v268_v38 = vsel %vm266_vm3, %v267_v53, %v3288_v21  ;;  %v680_v62 = vxor.u32 2147483648, %v3296_v30  ;;  %v683_v43 = vxor.u32 2147483648, %v3294_v26 }
 0x15d   :  { %v789_v5 = vsel %vm782_vm11, %v785_v41, %v788_v25  ;;  %vm990_vm13 = vcmp.lt.s32.totalorder %v989_v15, 2  ;;  %vm887_vm14 = vcmp.eq.s32.totalorder %v885_v37, 0  ;;  %vm890_vm15 = vcmp.eq.s32.totalorder %v885_v37, 2 }
 0x15e   :  { %vm474_vm0 = vcmp.eq.s32.totalorder %v469_v17, 2  ;;  %v997_v4 = vsel %vm990_vm13, %v993_v12, %v996_v40  ;;  %v889_v32 = vsel %vm887_vm14, %v3290_v19, %v888_v11  ;;  %v892_v8 = vsel %vm890_vm15, %v891_v56, %v3292_v42  ;;  %v1015_v19 = vpop.permute.xlu1 %1014 }
 0x15f   :  { %v269_v31 = vsel %vm262_vm1, %v265_v47, %v268_v38  ;;  %vm679_vm2 = vcmp.eq.s32.totalorder %v677_v7, 0  ;;  %vm682_vm4 = vcmp.eq.s32.totalorder %v677_v7, 2  ;;  %vm886_vm3 = vcmp.lt.s32.totalorder %v885_v37, 2 }
 0x160   :  { %v681_v57 = vsel %vm679_vm2, %v3294_v26, %v680_v62  ;;  %v684_v22 = vsel %vm682_vm4, %v683_v43, %v3296_v30  ;;  %vm471_vm5 = vcmp.eq.s32.totalorder %v469_v17, 0  ;;  %v998_v1 = vsel %vm987_vm6, nan, %v997_v4 }
 0x161   :  { %v3298_v10 = vpop.eup %3297  ;;  %v893_v13 = vsel %vm886_vm3, %v889_v32, %v892_v8  ;;  %v270_v16 = vsel %vm259_vm7, nan, %v269_v31  ;;  %vm470_vm8 = vcmp.lt.s32.totalorder %v469_v17, 2  ;;  %vm678_vm12 = vcmp.lt.s32.totalorder %v677_v7, 2 }
 0x162   :  { %v3300_v36 = vpop.eup %3299  ;;  %v475_v18 = vxor.u32 2147483648, %v3298_v10  ;;  %v790_v45 = vsel %vm779_vm9, nan, %v789_v5  ;;  %v685_v52 = vsel %vm678_vm12, %v681_v57, %v684_v22  ;;  %vm883_vm1 = vweird.f32 %v6022_v2  ;;  %v1002_v2 = vld [vmem:[%s5898_s3 + $0x18] sm:$0xff] }
 0x163   :  { %v472_v44 = vxor.u32 2147483648, %v3300_v36  ;;  %v3137_v51 = vpack.c.bf16 %v998_v1, %v790_v45  ;;  %v894_v0 = vsel %vm883_vm1, nan, %v893_v13  ;;  %vm675_vm6 = vweird.f32 %v6021_v29  ;;  %v1001_v29 = vld [vmem:[%s5898_s3 + $0x10] sm:$0xff] }
 0x164   :  { %v476_v24 = vsel %vm474_vm0, %v475_v18, %v3300_v36  ;;  %v686_v6 = vsel %vm675_vm6, nan, %v685_v52  ;;  %vm5981_vm7 = vcmask 261120  }
 0x165   :  { %v473_v49 = vsel %vm471_vm5, %v3298_v10, %v472_v44  ;;  %v3139_v35 = vpack.c.bf16 %v894_v0, %v686_v6 }
 0x166   :  { %v477_v58 = vsel %vm470_vm8, %v473_v49, %v476_v24 }
 0x167   :  { %v478_v20 = vsel %vm467_vm10, nan, %v477_v58 }
 0x168   :  { %v3135_v61 = vpack.c.bf16 %v478_v20, %v270_v16 }
 0x16a   :  { %3136 = vmatpush1.bf16.msra.mxu0 %v3135_v61 }
 0x16b   :  { %3138 = vmatprep.subr.bf16.mxu0 %v3137_v51 }
 0x16e   :  { %3140 = vmatpush1.bf16.msra.mxu0 %v3139_v35 }
 0x171   :  { %3058 = vmatmul.mubr.msk.f32.vlgmr.msra.gmra.mrb[0].mxu0 %vm5981_vm7, %v999_v33 }
 0x172   :  { %1110 = vmatprep.mubr.f32.mxu0 %v5943_v39 }
 0x175   :  { %3059 = vmatmul.mubr.msk.f32.gmra.mrb[2].mxu0 %vm5981_vm7, %v1000_v50 }
 0x176   :  { %1116 = vmatprep.mubr.f32.mxu0 %v5943_v39 }
 0x179   :  { %3060 = vmatmul.mubr.msk.f32.gmra.mrb[4].mxu0 %vm5981_vm7, %v1001_v29 }
 0x17a   :  { %1122 = vmatprep.mubr.f32.mxu0 %v5943_v39 }
 0x17d   :  { %3061 = vmatmul.mubr.msk.f32.gmra.mrb[6].mxu0 %vm5981_vm7, %v1002_v2 }
 0x17e   :  { %2996 = vmatprep.mubr.f32.mxu0 %v5943_v39 }
 0x244   :  { %v1106_v21 = vpop.f32.mrb[0].mxu0 }
 0x245   :  { %v4408_v59 = vadd.f32 %v1106_v21, %v1010_v14  ;;  %v1108_v15 = vpop.f32.mrb[1].mxu0 }
 0x246   :  { %v4419_v25 = vadd.f32 %v1108_v15, %v1010_v14 }
 0x247   :  { %6039 = vst [vmem:[#allocation7_spill] sm:$0xff] %v4408_v59  ;;  %v1132_v60 = vand.u32 2139095040, %v4408_v59  ;;  %v5947_v41 = vand.u32 2147483647, %v4408_v59 }
 0x248   :  { %v1112_v23 = vpop.f32.mrb[2].mxu0  ;;  %6041 = vst [vmem:[#allocation6_spill] sm:$0xff] %v4419_v25  ;;  %v1236_v47 = vand.u32 2139095040, %v4419_v25 }
 0x249   :  { %v1133_v42 = vshrl.u32 %v1132_v60, 23  ;;  %v4411_v63 = vadd.f32 %v1112_v23, %v1015_v19  ;;  %v1114_v3 = vpop.f32.mrb[3].mxu0  ;;  %v1136_v40 = vand.u32 8388607, %v5947_v41 }
 0x24a   :  { %v1237_v45 = vshrl.u32 %v1236_v47, 23  ;;  %v4453_v23 = vadd.f32 %v1114_v3, %v1015_v19 }
 0x24b   :  { %6040 = vst [vmem:[#allocation15_spill] sm:$0xff] %v4411_v63  ;;  %v3062_v28 = vadd.s32 4294967169, %v1133_v42  ;;  %v1340_v26 = vand.u32 2139095040, %v4411_v63  ;;  %v1137_v57 = vor.u32 8388608, %v1136_v40  ;;  %v5945_v60 = vand.u32 2147483647, %v4411_v63 }
 0x24c   :  { %v4414_v55 = vpop.f32.mrb[4].mxu0  ;;  %v1444_v19 = vand.u32 2139095040, %v4453_v23 }
 0x24d   :  { %v1139_v53 = vadd.s32 1, %v3062_v28  ;;  %v4416_v30 = vpop.f32.mrb[5].mxu0  ;;  %v1341_v17 = vshrl.u32 %v1340_v26, 23  ;;  %v1177_v6 = vshll.u32 %v1137_v57, 8  ;;  %v1344_v40 = vand.u32 8388607, %v5945_v60 }
 0x24f   :  { %vm1140_vm9 = vcmp.gt.s32.totalorder %v1139_v53, 0  ;;  %v3070_v5 = vadd.s32 4294967169, %v1341_v17  ;;  %v3066_v17 = vadd.s32 4294967169, %v1237_v45 }
 0x250   :  { %v1141_v37 = vsel %vm1140_vm9, %v1139_v53, 0  ;;  %v4421_v11 = vpop.f32.mrb[6].mxu0 }
 0x251   :  { %v1143_v56 = vand.u32 31, %v1141_v37  ;;  %v4423_v12 = vpop.f32.mrb[7].mxu0  ;;  %v1142_v38 = vshrl.u32 %v1141_v37, 5  ;;  %v1347_v51 = vadd.s32 1, %v3070_v5 }
 0x253   :  { %v1144_v7 = vsub.s32 32, %v1143_v56  ;;  %v1146_v62 = vshll.u32 %v5997_v27, %v1143_v56  ;;  %v1149_v43 = vshll.u32 %v6004_v46, %v1143_v56  ;;  %v1152_v32 = vshll.u32 %v6001_v48, %v1143_v56 }
 0x254   :  { %v1155_v36 = vshll.u32 %v5998_v54, %v1143_v56  ;;  %v1158_v18 = vshll.u32 %v5999_v34, %v1143_v56  ;;  %vm1161_vm10 = vcmp.lt.s32.totalorder %v1142_v38, 1  ;;  %vm1164_vm11 = vcmp.lt.s32.totalorder %v1142_v38, 4 }
 0x255   :  { %v1147_v10 = vshrl.u32 %v6004_v46, %v1144_v7  ;;  %v1150_v4 = vshrl.u32 %v6001_v48, %v1144_v7  ;;  %v1153_v8 = vshrl.u32 %v5998_v54, %v1144_v7  ;;  %v1156_v31 = vshrl.u32 %v5999_v34, %v1144_v7 }
 0x256   :  { %v1159_v44 = vshrl.u32 %v6000_v9, %v1144_v7  ;;  %vm1163_vm13 = vcmp.lt.s32.totalorder %v1142_v38, 3  ;;  %vm1162_vm14 = vcmp.lt.s32.totalorder %v1142_v38, 2  ;;  %v1145_v35 = vshrl.u32 %v5997_v27, %v1144_v7 }
 0x257   :  { %v1148_v22 = vor.u32 %v1147_v10, %v1146_v62  ;;  %v1151_v24 = vor.u32 %v1150_v4, %v1149_v43  ;;  %v1154_v1 = vor.u32 %v1153_v8, %v1152_v32  ;;  %v1157_v13 = vor.u32 %v1156_v31, %v1155_v36 }
 0x258   :  { %v1160_v16 = vor.u32 %v1159_v44, %v1158_v18  ;;  %vm1348_vm15 = vcmp.gt.s32.totalorder %v1347_v51, 0  ;;  %v1345_v44 = vor.u32 8388608, %v1344_v40 }
 0x259   :  { %v1169_v49 = vsel %vm1161_vm10, %v1148_v22, %v1151_v24  ;;  %v1173_v58 = vsel %vm1161_vm10, %v1151_v24, %v1154_v1  ;;  %v1170_v52 = vsel %vm1164_vm11, %v1157_v13, 920167782  ;;  %v1166_v33 = vsel %vm1164_vm11, %v1154_v1, 2102212464 }
 0x25a   :  { %v1174_v20 = vsel %vm1164_vm11, %v1160_v16, 1326507024  ;;  %v1171_v0 = vsel %vm1163_vm13, %v1154_v1, %v1170_v52  ;;  %v1165_v42 = vsel %vm1161_vm10, %v1145_v35, %v1148_v22  ;;  %v1167_v28 = vsel %vm1163_vm13, %v1151_v24, %v1166_v33  ;;  %v1020_v24 = vpop.permute.xlu0 %1019 }
 0x25b   :  { %v1175_v61 = vsel %vm1163_vm13, %v1157_v13, %v1174_v20  ;;  %v1172_v50 = vsel %vm1162_vm14, %v1169_v49, %v1171_v0  ;;  %v1349_v26 = vsel %vm1348_vm15, %v1347_v51, 0  ;;  %v1168_v56 = vsel %vm1162_vm14, %v1165_v42, %v1167_v28 }
 0x25c   :  { %v1176_v29 = vsel %vm1162_vm14, %v1173_v58, %v1175_v61  ;;  %v4448_v21 = vmul.u32.u64.low %v1177_v6, %v1172_v50  ;;  %v4449_v15 = vmul.u32.u64.high %v1177_v6, %v1172_v50, %v4448_v21  ;;  %v1351_v53 = vand.u32 31, %v1349_v26 }
 0x25d   :  { %v4445_v2 = vmul.u32.u64.low %v1177_v6, %v1176_v29  ;;  %v4446_v14 = vmul.u32.u64.high %v1177_v6, %v1176_v29, %v4445_v2  ;;  %v4464_v3 = vshrl.u32 %v1349_v26, 5  ;;  %v1184_v18 = vmul.u32 %v1177_v6, %v1168_v56 }
 0x25e   :  { %v1187_v37 = vadd.s32 1, %v4449_v15  ;;  %v1352_v7 = vsub.s32 32, %v1351_v53  ;;  %v1354_v47 = vshll.u32 %v5997_v27, %v1351_v53  ;;  %v1357_v62 = vshll.u32 %v6004_v46, %v1351_v53 }
 0x25f   :  { %vm1186_vm0 = vc.u32 %v4446_v14, %v4448_v21  ;;  %v1360_v43 = vshll.u32 %v6001_v48, %v1351_v53  ;;  %v1363_v4 = vshll.u32 %v5998_v54, %v1351_v53  ;;  %v1366_v36 = vshll.u32 %v5999_v34, %v1351_v53 }
 0x260   :  { %v1188_v5 = vsel %vm1186_vm0, %v1187_v37, %v4449_v15  ;;  %v1355_v10 = vshrl.u32 %v6004_v46, %v1352_v7  ;;  %v1358_v38 = vshrl.u32 %v6001_v48, %v1352_v7  ;;  %v1361_v32 = vshrl.u32 %v5998_v54, %v1352_v7 }
 0x261   :  { %v1364_v8 = vshrl.u32 %v5999_v34, %v1352_v7  ;;  %v1367_v31 = vshrl.u32 %v6000_v9, %v1352_v7  ;;  %vm1369_vm2 = vcmp.lt.s32.totalorder %v4464_v3, 1  ;;  %v1189_v49 = vadd.s32 %v1188_v5, %v1184_v18 }
 0x262   :  { %v1356_v57 = vor.u32 %v1355_v10, %v1354_v47  ;;  %v1359_v22 = vor.u32 %v1358_v38, %v1357_v62  ;;  %v1362_v1 = vor.u32 %v1361_v32, %v1360_v43  ;;  %vm1372_vm4 = vcmp.lt.s32.totalorder %v4464_v3, 4 }
 0x263   :  { %v1365_v13 = vor.u32 %v1364_v8, %v1363_v4  ;;  %v1368_v16 = vor.u32 %v1367_v31, %v1366_v36  ;;  %v4482_v45 = vadd.f32 %v4414_v55, %v1020_v24  ;;  %vm1371_vm3 = vcmp.lt.s32.totalorder %v4464_v3, 3 }
 0x264   :  { %v1377_v58 = vsel %vm1369_vm2, %v1356_v57, %v1359_v22  ;;  %v1381_v20 = vsel %vm1369_vm2, %v1359_v22, %v1362_v1  ;;  %v1243_v0 = vadd.s32 1, %v3066_v17  ;;  %vm1370_vm5 = vcmp.lt.s32.totalorder %v4464_v3, 2 }
 0x265   :  { %6042 = vst [vmem:[#allocation11_spill] sm:$0xff] %v4482_v45  ;;  %v1378_v52 = vsel %vm1372_vm4, %v1365_v13, 920167782  ;;  %v1382_v51 = vsel %vm1372_vm4, %v1368_v16, 1326507024  ;;  %v1385_v33 = vshll.u32 %v1345_v44, 8  ;;  %v1353_v40 = vshrl.u32 %v5997_v27, %v1352_v7 }
 0x266   :  { %v1379_v61 = vsel %vm1371_vm3, %v1362_v1, %v1378_v52  ;;  %v1383_v55 = vsel %vm1371_vm3, %v1365_v13, %v1382_v51  ;;  %v1190_v50 = vadd.s32 536870912, %v1189_v49  ;;  %v1445_v15 = vshrl.u32 %v1444_v19, 23 }
 0x267   :  { %v1380_v6 = vsel %vm1370_vm5, %v1377_v58, %v1379_v61  ;;  %v1384_v35 = vsel %vm1370_vm5, %v1381_v20, %v1383_v55  ;;  %vm1244_vm8 = vcmp.gt.s32.totalorder %v1243_v0, 0  ;;  %v1548_v26 = vand.u32 2139095040, %v4482_v45 }
 0x268   :  { %v4500_v29 = vmul.u32.u64.low %v1385_v33, %v1380_v6  ;;  %v4501_v2 = vmul.u32.u64.high %v1385_v33, %v1380_v6, %v4500_v29  ;;  %v4504_v42 = vmul.u32.u64.low %v1385_v33, %v1384_v35  ;;  %v4505_v28 = vmul.u32.u64.high %v1385_v33, %v1384_v35, %v4504_v42 }
 0x269   :  { %v4508_v53 = vshrl.u32 %v1190_v50, 30  ;;  %v4510_v37 = vsel %vm1244_vm8, %v1243_v0, 0  ;;  %v1374_v17 = vsel %vm1372_vm4, %v1362_v1, 2102212464  ;;  %v1549_v56 = vshrl.u32 %v1548_v26, 23 }
 0x26a   :  { %v3074_v47 = vadd.s32 4294967169, %v1445_v15  ;;  %v4516_v62 = vadd.f32 %v4416_v30, %v1020_v24  ;;  %v4519_v43 = vand.u32 31, %v4510_v37  ;;  %v1373_v5 = vsel %vm1369_vm2, %v1353_v40, %v1356_v57  ;;  %v4569_v40 = vpop.permute.xlu1 %1024 }
 0x26b   :  { %6043 = vst [vmem:[#allocation12_spill] sm:$0xff] %v4508_v53  ;;  %v3078_v19 = vadd.s32 4294967169, %v1549_v56  ;;  %v1375_v10 = vsel %vm1371_vm3, %v1359_v22, %v1374_v17  ;;  %v1192_v38 = vshll.u32 %v4508_v53, 30  ;;  %v1395_v4 = vadd.s32 1, %v4501_v2 }
 0x26c   :  { %6044 = vst [vmem:[#allocation8_spill] sm:$0xff] %v4516_v62  ;;  %vm1394_vm12 = vc.u32 %v4505_v28, %v4500_v29  ;;  %v1451_v30 = vadd.s32 1, %v3074_v47  ;;  %v1652_v7 = vand.u32 2139095040, %v4516_v62  ;;  %v1376_v8 = vsel %vm1370_vm5, %v1373_v5, %v1375_v10 }
 0x26d   :  { %v1555_v32 = vadd.s32 1, %v3078_v19  ;;  %v4533_v36 = vsub.s32 32, %v4519_v43  ;;  %v4535_v31 = vsub.s32 %v1189_v49, %v1192_v38  ;;  %v1396_v18 = vsel %vm1394_vm12, %v1395_v4, %v4501_v2 }
 0x26e   :  { %v5949_v44 = vand.u32 2147483647, %v4482_v45  ;;  %v1392_v22 = vmul.u32 %v1385_v33, %v1376_v8  ;;  %vm1452_vm6 = vcmp.gt.s32.totalorder %v1451_v30, 0  ;;  %v1653_v24 = vshrl.u32 %v1652_v7, 23 }
 0x26f   :  { %vm1556_vm1 = vcmp.gt.s32.totalorder %v1555_v32, 0  ;;  %6045 = vst [vmem:[#allocation5_spill] sm:$0xff] %v4535_v31  ;;  %v5946_v13 = vand.u32 2147483647, %v4419_v25  ;;  %v4542_v3 = vshll.u32 %v5998_v54, %v4519_v43  ;;  %v4546_v16 = vshrl.u32 %v5999_v34, %v4533_v36 }
 0x270   :  { %v1557_v57 = vsel %vm1556_vm1, %v1555_v32, 0  ;;  %v4550_v49 = vshrl.u32 %v6000_v9, %v4533_v36  ;;  %v4552_v58 = vadd.s32 %v1396_v18, %v1392_v22  ;;  %v1195_v52 = vsub.s32 0, %v4535_v31 }
 0x271   :  { %v1559_v1 = vand.u32 31, %v1557_v57  ;;  %v4555_v20 = vsel %vm1452_vm6, %v1451_v30, 0  ;;  %v1552_v51 = vand.u32 8388607, %v5949_v44  ;;  %v1558_v61 = vshrl.u32 %v1557_v57, 5 }
 0x272   :  { %v3082_v35 = vadd.s32 4294967169, %v1653_v24  ;;  %v1398_v42 = vadd.s32 536870912, %v4552_v58  ;;  %v4573_v38 = vmin.u32 %v1195_v52, %v4535_v31  ;;  %v5948_v32 = vand.u32 2147483647, %v4516_v62 }
 0x273   :  { %v1560_v0 = vsub.s32 32, %v1559_v1  ;;  %v1562_v55 = vshll.u32 %v5997_v27, %v1559_v1  ;;  %v1565_v6 = vshll.u32 %v6004_v46, %v1559_v1  ;;  %v1568_v2 = vshll.u32 %v6001_v48, %v1559_v1 }
 0x274   :  { %v1571_v26 = vshll.u32 %v5998_v54, %v1559_v1  ;;  %v1574_v56 = vshll.u32 %v5999_v34, %v1559_v1  ;;  %v4578_v30 = vadd.f32 %v4421_v11, %v4569_v40  ;;  %v1553_v7 = vor.u32 8388608, %v1552_v51 }
 0x275   :  { %v1563_v33 = vshrl.u32 %v6004_v46, %v1560_v0  ;;  %v1566_v50 = vshrl.u32 %v6001_v48, %v1560_v0  ;;  %v1569_v15 = vshrl.u32 %v5998_v54, %v1560_v0  ;;  %v1572_v17 = vshrl.u32 %v5999_v34, %v1560_v0 }
 0x276   :  { %v1575_v10 = vshrl.u32 %v6000_v9, %v1560_v0  ;;  %6046 = vst [vmem:[#allocation9_spill] sm:$0xff] %v4578_v30  ;;  %vm1577_vm9 = vcmp.lt.s32.totalorder %v1558_v61, 1  ;;  %v1659_v18 = vadd.s32 1, %v3082_v35  ;;  %v4580_v57 = vshrl.u32 %v1398_v42, 30 }
 0x277   :  { %v1564_v47 = vor.u32 %v1563_v33, %v1562_v55  ;;  %v1567_v19 = vor.u32 %v1566_v50, %v1565_v6  ;;  %v1570_v5 = vor.u32 %v1569_v15, %v1568_v2  ;;  %v1573_v4 = vor.u32 %v1572_v17, %v1571_v26 }
 0x278   :  { %v1576_v8 = vor.u32 %v1575_v10, %v1574_v56  ;;  %6047 = vst [vmem:[#allocation10_spill] sm:$0xff] %v4580_v57  ;;  %vm1579_vm10 = vcmp.lt.s32.totalorder %v1558_v61, 3  ;;  %vm1580_vm11 = vcmp.lt.s32.totalorder %v1558_v61, 4  ;;  %v1561_v6 = vshrl.u32 %v5997_v27, %v1560_v0 }
 0x279   :  { %v1585_v22 = vsel %vm1577_vm9, %v1564_v47, %v1567_v19  ;;  %v1582_v24 = vsel %vm1580_vm11, %v1570_v5, 2102212464  ;;  %v1586_v1 = vsel %vm1580_vm11, %v1573_v4, 920167782  ;;  %v1589_v52 = vsel %vm1577_vm9, %v1567_v19, %v1570_v5 }
 0x27a   :  { %v1590_v55 = vsel %vm1580_vm11, %v1576_v8, 1326507024  ;;  %vm1578_vm13 = vcmp.lt.s32.totalorder %v1558_v61, 2  ;;  %v1587_v11 = vsel %vm1579_vm10, %v1570_v5, %v1586_v1  ;;  %v1756_v51 = vand.u32 2139095040, %v4578_v30 }
 0x27b   :  { %v1588_v35 = vsel %vm1578_vm13, %v1585_v22, %v1587_v11  ;;  %v1591_v33 = vsel %vm1579_vm10, %v1573_v4, %v1590_v55  ;;  %v1593_v50 = vshll.u32 %v1553_v7, 8  ;;  %vm1660_vm14 = vcmp.gt.s32.totalorder %v1659_v18, 0 }
 0x27c   :  { %v1581_v2 = vsel %vm1577_vm9, %v1561_v6, %v1564_v47  ;;  %v1583_v15 = vsel %vm1579_vm10, %v1567_v19, %v1582_v24  ;;  %v1592_v42 = vsel %vm1578_vm13, %v1589_v52, %v1591_v33  ;;  %v1656_v0 = vand.u32 8388607, %v5948_v32 }
 0x27d   :  { %v4594_v26 = vmul.u32.u64.low %v1593_v50, %v1592_v42  ;;  %v4595_v17 = vmul.u32.u64.high %v1593_v50, %v1592_v42, %v4594_v26  ;;  %v4597_v56 = vmul.u32.u64.low %v1593_v50, %v1588_v35  ;;  %v4598_v5 = vmul.u32.u64.high %v1593_v50, %v1588_v35, %v4597_v56 }
 0x27e   :  { %v4603_v10 = vshll.u32 %v5999_v34, %v4519_v43  ;;  %v1400_v47 = vshll.u32 %v4580_v57, 30  ;;  %v1661_v4 = vsel %vm1660_vm14, %v1659_v18, 0  ;;  %v1757_v19 = vshrl.u32 %v1756_v51, 23 }
 0x27f   :  { %v4607_v7 = vshrl.u32 %v4510_v37, 5  ;;  %v1584_v8 = vsel %vm1578_vm13, %v1581_v2, %v1583_v15  ;;  %v1663_v22 = vand.u32 31, %v1661_v4  ;;  %v4612_v24 = vand.u32 8388607, %v5946_v13 }
 0x280   :  { %v4617_v52 = vor.u32 %v4546_v16, %v4542_v3  ;;  %v1264_v18 = vor.u32 %v4550_v49, %v4603_v10  ;;  %v4622_v55 = vand.u32 31, %v4555_v20  ;;  %vm1602_vm15 = vc.u32 %v4595_v17, %v4597_v56 }
 0x281   :  { %v1603_v37 = vadd.s32 1, %v4598_v5  ;;  %v1657_v61 = vor.u32 8388608, %v1656_v0  ;;  %v1664_v6 = vsub.s32 32, %v1663_v22  ;;  %v4628_v11 = vsub.s32 %v4552_v58, %v1400_v47 }
 0x282   :  { %v1600_v51 = vmul.u32 %v1593_v50, %v1584_v8  ;;  %v1666_v3 = vshll.u32 %v5997_v27, %v1663_v22  ;;  %v3086_v16 = vadd.s32 4294967169, %v1757_v19  ;;  %v1669_v33 = vshll.u32 %v6004_v46, %v1663_v22 }
 0x283   :  { %6048 = vst [vmem:[#allocation14_spill] sm:$0xff] %v4628_v11  ;;  %v1604_v35 = vsel %vm1602_vm15, %v1603_v37, %v4598_v5  ;;  %v1667_v49 = vshrl.u32 %v6004_v46, %v1664_v6  ;;  %v1670_v2 = vshrl.u32 %v6001_v48, %v1664_v6  ;;  %v1662_v42 = vshrl.u32 %v1661_v4, 5 }
 0x284   :  { %v1605_v15 = vadd.s32 %v1604_v35, %v1600_v51  ;;  %v1672_v0 = vshll.u32 %v6001_v48, %v1663_v22  ;;  %v1673_v26 = vshrl.u32 %v5998_v54, %v1664_v6  ;;  %v1675_v50 = vshll.u32 %v5998_v54, %v1663_v22 }
 0x285   :  { %v1668_v58 = vor.u32 %v1667_v49, %v1666_v3  ;;  %v1671_v10 = vor.u32 %v1670_v2, %v1669_v33  ;;  %v1676_v47 = vshrl.u32 %v5999_v34, %v1664_v6  ;;  %v1697_v8 = vshll.u32 %v1657_v61, 8 }
 0x286   :  { %v1606_v19 = vadd.s32 536870912, %v1605_v15  ;;  %v1674_v5 = vor.u32 %v1673_v26, %v1672_v0  ;;  %v5950_v37 = vand.u32 2147483647, %v4578_v30  ;;  %v1403_v39 = vsub.s32 0, %v4628_v11 }
 0x287   :  { %v1677_v60 = vor.u32 %v1676_v47, %v1675_v50  ;;  %v1678_v4 = vshll.u32 %v5999_v34, %v1663_v22  ;;  %v1679_v51 = vshrl.u32 %v6000_v9, %v1664_v6  ;;  %vm1681_vm0 = vcmp.lt.s32.totalorder %v1662_v42, 1 }
 0x288   :  { %v4643_v35 = vshrl.u32 %v1606_v19, 30  ;;  %vm1684_vm2 = vcmp.lt.s32.totalorder %v1662_v42, 4  ;;  %v1763_v3 = vadd.s32 1, %v3086_v16  ;;  %v1665_v49 = vshrl.u32 %v5997_v27, %v1664_v6 }
 0x289   :  { %v1680_v33 = vor.u32 %v1679_v51, %v1678_v4  ;;  %v1686_v2 = vsel %vm1684_vm2, %v1674_v5, 2102212464  ;;  %v1689_v0 = vsel %vm1681_vm0, %v1668_v58, %v1671_v10  ;;  %vm1682_vm4 = vcmp.lt.s32.totalorder %v1662_v42, 2 }
 0x28a   :  { %6049 = vst [vmem:[#allocation13_spill] sm:$0xff] %v4643_v35  ;;  %v1608_v61 = vshll.u32 %v4643_v35, 30  ;;  %vm1683_vm3 = vcmp.lt.s32.totalorder %v1662_v42, 3  ;;  %v1690_v26 = vsel %vm1684_vm2, %v1677_v60, 920167782  ;;  %v1685_v50 = vsel %vm1681_vm0, %v1665_v49, %v1668_v58 }
 0x28b   :  { %v1691_v47 = vsel %vm1683_vm3, %v1674_v5, %v1690_v26  ;;  %v1693_v22 = vsel %vm1681_vm0, %v1671_v10, %v1674_v5  ;;  %v1694_v13 = vsel %vm1684_vm2, %v1680_v33, 1326507024  ;;  %v1687_v19 = vsel %vm1683_vm3, %v1671_v10, %v1686_v2 }
 0x28c   :  { %v4647_v41 = vsub.s32 %v1605_v15, %v1608_v61  ;;  %v1692_v32 = vsel %vm1682_vm4, %v1689_v0, %v1691_v47  ;;  %v1695_v16 = vsel %vm1683_vm3, %v1677_v60, %v1694_v13  ;;  %vm1764_vm5 = vcmp.gt.s32.totalorder %v1763_v3, 0 }
 0x28d   :  { %v1696_v6 = vsel %vm1682_vm4, %v1693_v22, %v1695_v16  ;;  %v4651_v4 = vmul.u32.u64.low %v1697_v8, %v1692_v32  ;;  %v4652_v51 = vmul.u32.u64.high %v1697_v8, %v1692_v32, %v4651_v4  ;;  %v3071_v44 = vmin.u32 %v1403_v39, %v4628_v11 }
 0x28e   :  { %v4656_v1 = vmul.u32.u64.low %v1697_v8, %v1696_v6  ;;  %v4657_v58 = vmul.u32.u64.high %v1697_v8, %v1696_v6, %v4656_v1  ;;  %v1765_v5 = vsel %vm1764_vm5, %v1763_v3, 0  ;;  %vm1268_vm8 = vcmp.lt.s32.totalorder %v4607_v7, 4 }
 0x28f   :  { %v1688_v15 = vsel %vm1682_vm4, %v1685_v50, %v1687_v19  ;;  %v1760_v60 = vand.u32 8388607, %v5950_v37  ;;  %v1767_v13 = vand.u32 31, %v1765_v5  ;;  %v4666_v32 = vsel %vm1268_vm8, %v4617_v52, 920167782 }
 0x290   :  { %v4670_v39 = vsel %vm1268_vm8, %v1264_v18, 1326507024  ;;  %v1611_v1 = vsub.s32 0, %v4647_v41  ;;  %v6050_v42 = vclz %v4573_v38  ;;  %v4679_v49 = vsub.s32 32, %v4622_v55 }
 0x291   :  { %v1707_v33 = vadd.s32 1, %v4652_v51  ;;  %v1768_v2 = vsub.s32 32, %v1767_v13  ;;  %v1405_v0 = vclz %v3071_v44  ;;  %v1704_v61 = vmul.u32 %v1697_v8, %v1688_v15 }
 0x292   :  { %v4676_v3 = vadd.s32 4294967294, %v6050_v42  ;;  %vm1706_vm12 = vc.u32 %v4657_v58, %v4651_v4  ;;  %v4686_v18 = vadd.f32 %v4423_v12, %v4569_v40  ;;  %v1761_v38 = vor.u32 8388608, %v1760_v60 }
 0x293   :  { %v1708_v26 = vsel %vm1706_vm12, %v1707_v33, %v4652_v51  ;;  %v1771_v50 = vshrl.u32 %v6004_v46, %v1768_v2  ;;  %v1774_v47 = vshrl.u32 %v6001_v48, %v1768_v2  ;;  %v3079_v22 = vmin.u32 %v1611_v1, %v4647_v41 }
 0x294   :  { %6051 = vst [vmem:[#allocation16_spill] sm:$0xff] %v4686_v18  ;;  %v1709_v19 = vadd.s32 %v1708_v26, %v1704_v61  ;;  %v1770_v44 = vshll.u32 %v5997_v27, %v1767_v13  ;;  %v1777_v8 = vshrl.u32 %v5998_v54, %v1768_v2  ;;  %v1773_v16 = vshll.u32 %v6004_v46, %v1767_v13 }
 0x295   :  { %v1776_v6 = vshll.u32 %v6001_v48, %v1767_v13  ;;  %v1779_v12 = vshll.u32 %v5998_v54, %v1767_v13  ;;  %v1780_v40 = vshrl.u32 %v5999_v34, %v1768_v2  ;;  %v1766_v15 = vshrl.u32 %v1765_v5, 5 }
 0x296   :  { %v1710_v51 = vadd.s32 536870912, %v1709_v19  ;;  %v1772_v60 = vor.u32 %v1771_v50, %v1770_v44  ;;  %v1783_v42 = vshrl.u32 %v6000_v9, %v1768_v2  ;;  %v1775_v33 = vor.u32 %v1774_v47, %v1773_v16 }
 0x297   :  { %v1778_v1 = vor.u32 %v1777_v8, %v1776_v6  ;;  %v1781_v61 = vor.u32 %v1780_v40, %v1779_v12  ;;  %v1782_v26 = vshll.u32 %v5999_v34, %v1767_v13  ;;  %v4702_v37 = vadd.s32 %v4448_v21, %v4446_v14 }
 0x298   :  { %v4705_v10 = vshrl.u32 %v4555_v20, 5  ;;  %v1468_v35 = vshrl.u32 %v5999_v34, %v4679_v49  ;;  %v1613_v57 = vclz %v3079_v22  ;;  %vm3065_vm1 = vcmp.lt.s32.totalorder %v4676_v3, 0 }
 0x299   :  { %v1471_v5 = vshrl.u32 %v6000_v9, %v4679_v49  ;;  %v1784_v50 = vor.u32 %v1783_v42, %v1782_v26  ;;  %v1860_v47 = vand.u32 2139095040, %v4686_v18  ;;  %v3072_v13 = vadd.s32 4294967294, %v1405_v0 }
 0x29a   :  { %v4713_v44 = vshrl.u32 %v1710_v51, 30  ;;  %vm1785_vm6 = vcmp.lt.s32.totalorder %v1766_v15, 1  ;;  %vm1788_vm9 = vcmp.lt.s32.totalorder %v1766_v15, 4  ;;  %v1801_v8 = vshll.u32 %v1761_v38, 8 }
 0x29b   :  { %v1790_v14 = vsel %vm1788_vm9, %v1778_v1, 2102212464  ;;  %v1793_v21 = vsel %vm1785_vm6, %v1772_v60, %v1775_v33  ;;  %v1794_v20 = vsel %vm1788_vm9, %v1781_v61, 920167782  ;;  %v3080_v16 = vadd.s32 4294967294, %v1613_v57 }
 0x29c   :  { %6052 = vst [vmem:[#allocation17_spill] sm:$0xff] %v4713_v44  ;;  %v1769_v22 = vshrl.u32 %v5997_v27, %v1768_v2  ;;  %vm1786_vm10 = vcmp.lt.s32.totalorder %v1766_v15, 2  ;;  %vm1787_vm11 = vcmp.lt.s32.totalorder %v1766_v15, 3  ;;  %v1797_v12 = vsel %vm1785_vm6, %v1775_v33, %v1778_v1 }
 0x29d   :  { %v1795_v6 = vsel %vm1787_vm11, %v1778_v1, %v1794_v20  ;;  %v1798_v40 = vsel %vm1788_vm9, %v1784_v50, 1326507024  ;;  %v1861_v42 = vshrl.u32 %v1860_v47, 23  ;;  %v1712_v26 = vshll.u32 %v4713_v44, 30 }
 0x29e   :  { %v1789_v0 = vsel %vm1785_vm6, %v1769_v22, %v1772_v60  ;;  %v1791_v51 = vsel %vm1787_vm11, %v1775_v33, %v1790_v14  ;;  %v1796_v25 = vsel %vm1786_vm10, %v1793_v21, %v1795_v6  ;;  %v1799_v30 = vsel %vm1787_vm11, %v1781_v61, %v1798_v40 }
 0x29f   :  { %v4718_v53 = vmul.u32.u64.low %v1801_v8, %v1796_v25  ;;  %v4719_v63 = vmul.u32.u64.high %v1801_v8, %v1796_v25, %v4718_v53  ;;  %v3090_v57 = vadd.s32 4294967169, %v1861_v42  ;;  %v1467_v2 = vshll.u32 %v5998_v54, %v4622_v55 }
 0x2a0   :  { %v1470_v38 = vshll.u32 %v5999_v34, %v4622_v55  ;;  %vm1476_vm13 = vcmp.lt.s32.totalorder %v4705_v10, 4  ;;  %v1800_v1 = vsel %vm1786_vm10, %v1797_v12, %v1799_v30  ;;  %v4731_v60 = vsel %vm3065_vm1, 0, %v4676_v3 }
 0x2a1   :  { %6053 = vst [vmem:[#allocation18_spill] sm:$0xff] %v4718_v53  ;;  %6054 = vst [vmem:[#allocation19_spill] sm:$0xff] %v4731_v60  ;;  %v4733_v33 = vmul.u32.u64.low %v1801_v8, %v1800_v1  ;;  %v4734_v25 = vmul.u32.u64.high %v1801_v8, %v1800_v1, %v4733_v33  ;;  %v1867_v61 = vadd.s32 1, %v3090_v57  ;;  %v4736_v50 = vor.u32 %v1468_v35, %v1467_v2 }
 0x2a2   :  { %v1472_v47 = vor.u32 %v1471_v5, %v1470_v38  ;;  %v4738_v14 = vsub.s32 %v1709_v19, %v1712_v26  ;;  %v1792_v21 = vsel %vm1786_vm10, %v1789_v0, %v1791_v51  ;;  %vm3073_vm14 = vcmp.lt.s32.totalorder %v3072_v13, 0 }
 0x2a3   :  { %6055 = vst [vmem:[#allocation20_spill] sm:$0xff] %v4734_v25  ;;  %vm3081_vm15 = vcmp.lt.s32.totalorder %v3080_v16, 0  ;;  %v1811_v30 = vadd.s32 1, %v4719_v63  ;;  %vm1868_vm0 = vcmp.gt.s32.totalorder %v1867_v61, 0  ;;  %v1201_v20 = vsub.s32 32, %v4731_v60 }
 0x2a4   :  { %v4745_v3 = vadd.s32 %v4500_v29, %v4505_v28  ;;  %v5963_v22 = vand.u32 2147483647, %v4686_v18  ;;  %v1869_v35 = vsel %vm1868_vm0, %v1867_v61, 0  ;;  %v1205_v5 = vsub.s32 4294967266, %v4731_v60 }
 0x2a5   :  { %v1808_v19 = vmul.u32 %v1801_v8, %v1792_v21  ;;  %vm1810_vm2 = vc.u32 %v4734_v25, %v4718_v53  ;;  %v1871_v15 = vand.u32 31, %v1869_v35  ;;  %v4751_v6 = vsel %vm3073_vm14, 0, %v3072_v13 }
 0x2a6   :  { %v4753_v12 = vsel %vm3081_vm15, 0, %v3080_v16  ;;  %v1715_v40 = vsub.s32 0, %v4738_v14  ;;  %v1812_v42 = vsel %vm1810_vm2, %v1811_v30, %v4719_v63  ;;  %v4760_v29 = vsel %vm1476_vm13, %v4736_v50, 920167782 }
 0x2a7   :  { %v4764_v28 = vsel %vm1476_vm13, %v1472_v47, 1326507024  ;;  %v1813_v8 = vadd.s32 %v1812_v42, %v1808_v19  ;;  %v1872_v26 = vsub.s32 32, %v1871_v15  ;;  %v4769_v16 = vshrl.u32 %v4702_v37, %v1201_v20 }
 0x2a8   :  { %v1864_v63 = vand.u32 8388607, %v5963_v22  ;;  %v4775_v0 = vshrl.u32 %v5997_v27, %v4533_v36  ;;  %v4777_v51 = vadd.s32 127, %v1205_v5  ;;  %v1413_v57 = vsub.s32 4294967266, %v4751_v6 }
 0x2a9   :  { %6056 = vst [vmem:[#allocation21_spill] sm:$0xff] %v4769_v16  ;;  %v4782_v2 = vadd.s32 %v4597_v56, %v4595_v17  ;;  %v1621_v38 = vsub.s32 4294967266, %v4753_v12  ;;  %v3083_v37 = vmin.u32 %v1715_v40, %v4738_v14  ;;  %v1814_v1 = vadd.s32 536870912, %v1813_v8 }
 0x2aa   :  { %v1874_v33 = vshll.u32 %v5997_v27, %v1871_v15  ;;  %v1875_v61 = vshrl.u32 %v6004_v46, %v1872_v26  ;;  %v1877_v47 = vshll.u32 %v6004_v46, %v1871_v15  ;;  %v1878_v21 = vshrl.u32 %v6001_v48, %v1872_v26 }
 0x2ab   :  { %v1880_v30 = vshll.u32 %v6001_v48, %v1871_v15  ;;  %v1881_v20 = vshrl.u32 %v5998_v54, %v1872_v26  ;;  %v1865_v5 = vor.u32 8388608, %v1864_v63  ;;  %v1870_v17 = vshrl.u32 %v1869_v35, 5 }
 0x2ac   :  { %v1876_v56 = vor.u32 %v1875_v61, %v1874_v33  ;;  %v1250_v19 = vshll.u32 %v5997_v27, %v4519_v43  ;;  %v1879_v40 = vor.u32 %v1878_v21, %v1877_v47  ;;  %v1883_v22 = vshll.u32 %v5998_v54, %v1871_v15 }
 0x2ad   :  { %v1882_v42 = vor.u32 %v1881_v20, %v1880_v30  ;;  %v1884_v13 = vshrl.u32 %v5999_v34, %v1872_v26  ;;  %v1617_v44 = vsub.s32 32, %v4753_v12  ;;  %v1622_v18 = vadd.s32 127, %v1621_v38 }
 0x2ae   :  { %v1886_v59 = vshll.u32 %v5999_v34, %v1871_v15  ;;  %v1887_v53 = vshrl.u32 %v6000_v9, %v1872_v26  ;;  %v1717_v25 = vclz %v3083_v37  ;;  %v4799_v63 = vshrl.u32 %v1814_v1, 30 }
 0x2af   :  { %v1885_v35 = vor.u32 %v1884_v13, %v1883_v22  ;;  %v1251_v33 = vshrl.u32 %v6004_v46, %v4533_v36  ;;  %vm1889_vm4 = vcmp.lt.s32.totalorder %v1870_v17, 1  ;;  %vm1892_vm3 = vcmp.lt.s32.totalorder %v1870_v17, 4 }
 0x2b0   :  { %v1888_v61 = vor.u32 %v1887_v53, %v1886_v59  ;;  %v1905_v47 = vshll.u32 %v1865_v5, 8  ;;  %v1894_v21 = vsel %vm1892_vm3, %v1882_v42, 2102212464  ;;  %v1897_v30 = vsel %vm1889_vm4, %v1876_v56, %v1879_v40 }
 0x2b1   :  { %v1253_v38 = vshll.u32 %v6004_v46, %v4519_v43  ;;  %v1254_v15 = vshrl.u32 %v6001_v48, %v4533_v36  ;;  %v1873_v37 = vshrl.u32 %v5997_v27, %v1872_v26  ;;  %vm1891_vm5 = vcmp.lt.s32.totalorder %v1870_v17, 3 }
 0x2b2   :  { %v1898_v1 = vsel %vm1892_vm3, %v1885_v35, 920167782  ;;  %v1901_v22 = vsel %vm1889_vm4, %v1879_v40, %v1882_v42  ;;  %v1816_v13 = vshll.u32 %v4799_v63, 30  ;;  %vm1890_vm12 = vcmp.lt.s32.totalorder %v1870_v17, 2 }
 0x2b3   :  { %v1899_v59 = vsel %vm1891_vm5, %v1882_v42, %v1898_v1  ;;  %v1902_v53 = vsel %vm1892_vm3, %v1888_v61, 1326507024  ;;  %v1893_v20 = vsel %vm1889_vm4, %v1873_v37, %v1876_v56  ;;  %v1895_v5 = vsel %vm1891_vm5, %v1879_v40, %v1894_v21 }
 0x2b4   :  { %v1900_v9 = vsel %vm1890_vm12, %v1897_v30, %v1899_v59  ;;  %v1903_v34 = vsel %vm1891_vm5, %v1885_v35, %v1902_v53  ;;  %v3084_v62 = vadd.s32 4294967294, %v1717_v25  ;;  %v1256_v31 = vshll.u32 %v6001_v48, %v4519_v43 }
 0x2b5   :  { %v1904_v45 = vsel %vm1890_vm12, %v1901_v22, %v1903_v34  ;;  %v4809_v11 = vmul.u32.u64.low %v1905_v47, %v1900_v9  ;;  %v4810_v16 = vmul.u32.u64.high %v1905_v47, %v1900_v9, %v4809_v11  ;;  %v1257_v17 = vshrl.u32 %v5998_v54, %v4533_v36 }
 0x2b6   :  { %v4813_v60 = vmul.u32.u64.low %v1905_v47, %v1904_v45  ;;  %v4814_v26 = vmul.u32.u64.high %v1905_v47, %v1904_v45, %v4813_v60  ;;  %v4820_v42 = vsub.s32 %v1813_v8, %v1816_v13  ;;  %v1896_v56 = vsel %vm1890_vm12, %v1893_v20, %v1895_v5 }
 0x2b7   :  { %v1252_v40 = vor.u32 %v1251_v33, %v1250_v19  ;;  %v1255_v35 = vor.u32 %v1254_v15, %v1253_v38  ;;  %v1207_v34 = vshll.u32 %v4777_v51, 23  ;;  %v1409_v9 = vsub.s32 32, %v4751_v6 }
 0x2b8   :  { %v4824_v25 = vadd.s32 127, %v1413_v57  ;;  %v1258_v61 = vor.u32 %v1257_v17, %v1256_v31  ;;  %v1618_v45 = vshll.u32 %v4647_v41, %v4753_v12  ;;  %v1619_v43 = vshrl.u32 %v4782_v2, %v1617_v44 }
 0x2b9   :  { %v1623_v60 = vshll.u32 %v1622_v18, 23  ;;  %v1915_v36 = vadd.s32 1, %v4810_v16  ;;  %vm3085_vm1 = vcmp.lt.s32.totalorder %v3084_v62, 0  ;;  %v1912_v8 = vmul.u32 %v1905_v47, %v1896_v56 }
 0x2ba   :  { %vm1914_vm6 = vc.u32 %v4814_v26, %v4809_v11  ;;  %vm1265_vm9 = vcmp.lt.s32.totalorder %v4607_v7, 1  ;;  %v1819_v51 = vsub.s32 0, %v4820_v42  ;;  %vm1267_vm10 = vcmp.lt.s32.totalorder %v4607_v7, 3 }
 0x2bb   :  { %v1916_v57 = vsel %vm1914_vm6, %v1915_v36, %v4810_v16  ;;  %v1273_v41 = vsel %vm1265_vm9, %v1252_v40, %v1255_v35  ;;  %v1270_v18 = vsel %vm1268_vm8, %v1258_v61, 2102212464  ;;  %v1275_v44 = vsel %vm1267_vm10, %v1258_v61, %v4666_v32 }
 0x2bc   :  { %v1917_v31 = vadd.s32 %v1916_v57, %v1912_v8  ;;  %v1277_v12 = vsel %vm1265_vm9, %v1255_v35, %v1258_v61  ;;  %v4845_v2 = vor.u32 %v1619_v43, %v1618_v45  ;;  %v4847_v19 = vor.u32 4788187, %v1623_v60 }
 0x2bd   :  { %v4849_v16 = vsel %vm3085_vm1, 0, %v3084_v62  ;;  %vm1266_vm11 = vcmp.lt.s32.totalorder %v4607_v7, 2  ;;  %v1279_v32 = vsel %vm1267_vm10, %v4617_v52, %v4670_v39  ;;  %v6057_v21 = vor.u32 8388608, %v4612_v24 }
 0x2be   :  { %v1918_v33 = vadd.s32 536870912, %v1917_v31  ;;  %v1276_v47 = vsel %vm1266_vm11, %v1273_v41, %v1275_v44  ;;  %v3087_v38 = vmin.u32 %v1819_v51, %v4820_v42  ;;  %v1269_v62 = vsel %vm1265_vm9, %v4775_v0, %v1252_v40 }
 0x2bf   :  { %v1281_v30 = vshll.u32 %v6057_v21, 8  ;;  %v1271_v15 = vsel %vm1267_vm10, %v1255_v35, %v1270_v18  ;;  %v1280_v37 = vsel %vm1266_vm11, %v1277_v12, %v1279_v32  ;;  %v1441_v24 = vand.u32 2147483647, %v4453_v23 }
 0x2c0   :  { %v4868_v1 = vshrl.u32 %v1918_v33, 30  ;;  %v4874_v52 = vor.u32 4788187, %v1207_v34  ;;  %v4877_v39 = vshrl.u32 %v4745_v3, %v1409_v9  ;;  %v1415_v53 = vshll.u32 %v4824_v25, 23 }
 0x2c1   :  { %v4870_v22 = vmul.u32.u64.low %v1281_v30, %v1280_v37  ;;  %v4871_v13 = vmul.u32.u64.high %v1281_v30, %v1280_v37, %v4870_v22  ;;  %v4879_v59 = vmul.u32.u64.low %v1281_v30, %v1276_v47  ;;  %v4880_v0 = vmul.u32.u64.high %v1281_v30, %v1276_v47, %v4879_v59 }
 0x2c2   :  { %v1627_v20 = vcvt.s32.f32 %v4845_v2  ;;  %v1705_v5 = vadd.s32 %v4651_v4, %v4657_v58  ;;  %v1920_v17 = vshll.u32 %v4868_v1, 30  ;;  %v1625_v56 = vand.u32 2147483647, %v4847_v19 }
 0x2c3   :  { %v1725_v40 = vsub.s32 4294967266, %v4849_v16  ;;  %v1272_v3 = vsel %vm1266_vm11, %v1269_v62, %v1271_v15  ;;  %v1459_v35 = vshrl.u32 %v6004_v46, %v4679_v49  ;;  %v1821_v34 = vclz %v3087_v38 }
 0x2c4   :  { %v4894_v9 = vsub.s32 %v1917_v31, %v1920_v17  ;;  %vm1290_vm8 = vc.u32 %v4871_v13, %v4879_v59  ;;  %v1448_v4 = vand.u32 8388607, %v1441_v24  ;;  %v1291_v58 = vadd.s32 1, %v4880_v0 }
 0x2c5   :  { %v1458_v61 = vshll.u32 %v5997_v27, %v4622_v55  ;;  %v1461_v7 = vshll.u32 %v6004_v46, %v4622_v55  ;;  %v1462_v45 = vshrl.u32 %v6001_v48, %v4679_v49  ;;  %v1288_v60 = vmul.u32 %v1281_v30, %v1272_v3 }
 0x2c6   :  { %v1923_v43 = vsub.s32 0, %v4894_v9  ;;  %v1464_v36 = vshll.u32 %v6001_v48, %v4622_v55  ;;  %v1465_v8 = vshrl.u32 %v5998_v54, %v4679_v49  ;;  %v1726_v51 = vadd.s32 127, %v1725_v40 }
 0x2c7   :  { %v1292_v57 = vsel %vm1290_vm8, %v1291_v58, %v4880_v0  ;;  %v1460_v41 = vor.u32 %v1459_v35, %v1458_v61  ;;  %v1463_v31 = vor.u32 %v1462_v45, %v1461_v7  ;;  %v1721_v18 = vsub.s32 32, %v4849_v16 }
 0x2c8   :  { %v3091_v44 = vmin.u32 %v1923_v43, %v4894_v9  ;;  %v1293_v12 = vadd.s32 %v1292_v57, %v1288_v60  ;;  %v1466_v19 = vor.u32 %v1465_v8, %v1464_v36  ;;  %v1722_v33 = vshll.u32 %v4738_v14, %v4849_v16  ;;  %v6058_v36 = vld [vmem:[#allocation5_spill] sm:$0xff]  ;;  %v6059_v8 = vld [vmem:[#allocation19_spill] sm:$0xff] }
 0x2c9   :  { %v3088_v47 = vadd.s32 4294967294, %v1821_v34  ;;  %v1449_v32 = vor.u32 8388608, %v1448_v4  ;;  %vm1475_vm14 = vcmp.lt.s32.totalorder %v4705_v10, 3  ;;  %vm1473_vm15 = vcmp.lt.s32.totalorder %v4705_v10, 1  ;;  %v6061_v57 = vld [vmem:[#allocation21_spill] sm:$0xff] }
 0x2ca   :  { %v1925_v55 = vclz %v3091_v44  ;;  %v1294_v21 = vadd.s32 536870912, %v1293_v12  ;;  %v1487_v30 = vsel %vm1475_vm14, %v4736_v50, %v4764_v28  ;;  %v1727_v38 = vshll.u32 %v1726_v51, 23  ;;  %v6062_v44 = vld [vmem:[#allocation14_spill] sm:$0xff] }
 0x2cb   :  { %v1481_v62 = vsel %vm1473_vm15, %v1460_v41, %v1463_v31  ;;  %v1483_v14 = vsel %vm1475_vm14, %v1466_v19, %v4760_v29  ;;  %v1485_v16 = vsel %vm1473_vm15, %v1463_v31, %v1466_v19  ;;  %v1723_v15 = vshrl.u32 %v1705_v5, %v1721_v18 }
 0x2cc   :  { %v3092_v37 = vadd.s32 4294967294, %v1925_v55  ;;  %v4930_v22 = vshrl.u32 %v1294_v21, 30  ;;  %vm1474_vm0 = vcmp.lt.s32.totalorder %v4705_v10, 2  ;;  %vm3089_vm2 = vcmp.lt.s32.totalorder %v3088_v47, 0 }
 0x2cd   :  { %v1478_v50 = vsel %vm1476_vm13, %v1466_v19, 2102212464  ;;  %v1488_v28 = vsel %vm1474_vm0, %v1485_v16, %v1487_v30  ;;  %v1489_v0 = vshll.u32 %v1449_v32, 8  ;;  %v1457_v17 = vshrl.u32 %v5997_v27, %v4679_v49  ;;  %v6063_v19 = vld [vmem:[#allocation11_spill] sm:$0xff]  ;;  %v6067_v16 = vld [vmem:[#allocation8_spill] sm:$0xff] }
 0x2ce   :  { %vm3093_vm4 = vcmp.lt.s32.totalorder %v3092_v37, 0  ;;  %v1296_v29 = vshll.u32 %v4930_v22, 30  ;;  %v1484_v5 = vsel %vm1474_vm0, %v1481_v62, %v1483_v14  ;;  %v1728_v40 = vor.u32 4788187, %v1727_v38 }
 0x2cf   :  { %v4942_v3 = vsel %vm3093_vm4, 0, %v3092_v37  ;;  %v4944_v35 = vmul.u32.u64.low %v1489_v0, %v1488_v28  ;;  %v4945_v34 = vmul.u32.u64.high %v1489_v0, %v1488_v28, %v4944_v35  ;;  %v4947_v4 = vsel %vm3089_vm2, 0, %v3088_v47 }
 0x2d0   :  { %v4949_v58 = vsub.s32 %v1293_v12, %v1296_v29  ;;  %v1477_v61 = vsel %vm1473_vm15, %v1457_v17, %v1460_v41  ;;  %v1479_v7 = vsel %vm1475_vm14, %v1463_v31, %v1478_v50  ;;  %v1724_v49 = vor.u32 %v1723_v15, %v1722_v33 }
 0x2d1   :  { %v1933_v45 = vsub.s32 4294967266, %v4942_v3  ;;  %v4956_v43 = vmul.u32.u64.low %v1489_v0, %v1484_v5  ;;  %v4957_v60 = vmul.u32.u64.high %v1489_v0, %v1484_v5, %v4956_v43  ;;  %v6060_v51 = vshll.u32 %v6058_v36, %v6059_v8 }
 0x2d2   :  { %v1410_v12 = vshll.u32 %v6062_v44, %v4751_v6  ;;  %v1628_v41 = vmul.f32 %v1627_v20, %v1625_v56  ;;  %v1299_v31 = vsub.s32 0, %v4949_v58  ;;  %vm1547_vm13 = vcmp.lt.s32.totalorder %v6063_v19, 0 }
 0x2d3   :  { %v1204_v18 = vor.u32 %v6061_v57, %v6060_v51  ;;  %v1729_v33 = vand.u32 2147483647, %v1728_v40  ;;  %v1829_v47 = vsub.s32 4294967266, %v4947_v4  ;;  %v1480_v32 = vsel %vm1474_vm0, %v1477_v61, %v1479_v7  ;;  %v6068_v7 = vld [vmem:[#allocation20_spill] sm:$0xff] }
 0x2d4   :  { %v1209_v55 = vand.u32 2147483647, %v4874_v52  ;;  %v1412_v21 = vor.u32 %v4877_v39, %v1410_v12  ;;  %v3067_v30 = vmin.u32 %v1299_v31, %v4949_v58  ;;  %vm1498_vm3 = vc.u32 %v4945_v34, %v4956_v43 }
 0x2d5   :  { %v1416_v6 = vor.u32 4788187, %v1415_v53  ;;  %v6064_v2 = vand.u32 2147483647, %v6063_v19  ;;  %v1731_v10 = vcvt.s32.f32 %v1724_v49  ;;  %v1934_v56 = vadd.s32 127, %v1933_v45  ;;  %v6069_v49 = vld [vmem:[#allocation18_spill] sm:$0xff] }
 0x2d6   :  { %v1499_v52 = vadd.s32 1, %v4957_v60  ;;  %v1211_v38 = vcvt.s32.f32 %v1204_v18  ;;  %v1629_v39 = vxor.u32 2147483648, %v1628_v41  ;;  %v1301_v62 = vclz %v3067_v30 }
 0x2d7   :  { %vm4982_vm5 = vcmp.le.f32.partialorder %v6064_v2, 0.7853982  ;;  %v1496_v14 = vmul.u32 %v1489_v0, %v1480_v32  ;;  %vm1651_vm12 = vcmp.lt.s32.totalorder %v6067_v16, 0  ;;  %v1732_v15 = vmul.f32 %v1731_v10, %v1729_v33 }
 0x2d8   :  { %v1830_v37 = vadd.s32 127, %v1829_v47  ;;  %v1929_v25 = vsub.s32 32, %v4942_v3  ;;  %v1500_v53 = vsel %vm1498_vm3, %v1499_v52, %v4957_v60  ;;  %v1212_v50 = vmul.f32 %v1211_v38, %v1209_v55  ;;  %v6070_v60 = vld [vmem:[#allocation7_spill] sm:$0xff] }
 0x2d9   :  { %v1825_v28 = vsub.s32 32, %v4947_v4  ;;  %v3068_v29 = vadd.s32 4294967294, %v1301_v62  ;;  %v1501_v17 = vadd.s32 %v1500_v53, %v1496_v14  ;;  %v1417_v5 = vand.u32 2147483647, %v1416_v6  ;;  %v6071_v52 = vld [vmem:[#allocation15_spill] sm:$0xff] }
 0x2da   :  { %v1419_v40 = vcvt.s32.f32 %v1412_v21  ;;  %v1913_v35 = vadd.s32 %v4809_v11, %v4814_v26  ;;  %v1935_v61 = vshll.u32 %v1934_v56, 23  ;;  %v1630_v0 = vsel %vm1547_vm13, %v1629_v39, %v1628_v41 }
 0x2db   :  { %v1809_v45 = vadd.s32 %v6069_v49, %v6068_v7  ;;  %vm3069_vm1 = vcmp.lt.s32.totalorder %v3068_v29, 0  ;;  %v1502_v36 = vadd.s32 536870912, %v1501_v17  ;;  %vm1131_vm6 = vcmp.lt.s32.totalorder %v6070_v60, 0 }
 0x2dc   :  { %v1733_v8 = vxor.u32 2147483648, %v1732_v15  ;;  %v1831_v51 = vshll.u32 %v1830_v37, 23  ;;  %v1931_v57 = vshrl.u32 %v1913_v35, %v1929_v25  ;;  %v1304_v18 = vsel %vm3069_vm1, 0, %v3068_v29 }
 0x2dd   :  { %v1827_v44 = vshrl.u32 %v1809_v45, %v1825_v28  ;;  %v1289_v12 = vadd.s32 %v4879_v59, %v4871_v13  ;;  %v1305_v11 = vsub.s32 32, %v1304_v18  ;;  %v1309_v26 = vsub.s32 4294967266, %v1304_v18 }
 0x2de   :  { %v1420_v31 = vmul.f32 %v1419_v40, %v1417_v5  ;;  %v1930_v41 = vshll.u32 %v4894_v9, %v4942_v3  ;;  %v1936_v33 = vor.u32 4788187, %v1935_v61  ;;  %v5002_v47 = vshrl.u32 %v1502_v36, 30  ;;  %v6075_v61 = vld [vmem:[#allocation12_spill] sm:$0xff] }
 0x2df   :  { %v1633_v32 = vsel %vm4982_vm5, %v6063_v19, %v1630_v0  ;;  %v1826_v55 = vshll.u32 %v4820_v42, %v4947_v4  ;;  %v1307_v21 = vshrl.u32 %v1289_v12, %v1305_v11  ;;  %v1310_v30 = vadd.s32 127, %v1309_v26 }
 0x2e0   :  { %v1832_v6 = vor.u32 4788187, %v1831_v51  ;;  %v1932_v13 = vor.u32 %v1931_v57, %v1930_v41  ;;  %v1306_v59 = vshll.u32 %v4949_v58, %v1304_v18  ;;  %v1504_v2 = vshll.u32 %v5002_v47, 30  ;;  %v6079_v57 = vld [vmem:[#allocation9_spill] sm:$0xff]  ;;  %v6080_v18 = vld [vmem:[#allocation6_spill] sm:$0xff] }
 0x2e1   :  { %v1213_v10 = vxor.u32 2147483648, %v1212_v50  ;;  %v1734_v9 = vsel %vm1651_vm12, %v1733_v8, %v1732_v15  ;;  %v1828_v3 = vor.u32 %v1827_v44, %v1826_v55  ;;  %v1311_v56 = vshll.u32 %v1310_v30, 23 }
 0x2e2   :  { %vm1339_vm9 = vcmp.lt.s32.totalorder %v6071_v52, 0  ;;  %v1937_v38 = vand.u32 2147483647, %v1936_v33  ;;  %v1308_v39 = vor.u32 %v1307_v21, %v1306_v59  ;;  %v5014_v62 = vsub.s32 %v1501_v17, %v1504_v2 }
 0x2e3   :  { %v1421_v42 = vxor.u32 2147483648, %v1420_v31  ;;  %3301 = vcosq.f32 %v1633_v32  ;;  %v6072_v4 = vand.u32 2147483647, %v6067_v16  ;;  %v1312_v14 = vor.u32 4788187, %v1311_v56  ;;  %v6091_v56 = vld [vmem:[#allocation10_spill] sm:$0xff] }
 0x2e4   :  { %v1833_v37 = vand.u32 2147483647, %v1832_v6  ;;  %v1939_v25 = vcvt.s32.f32 %v1932_v13  ;;  %v1507_v53 = vsub.s32 0, %v5014_v62  ;;  %v1214_v28 = vsel %vm1131_vm6, %v1213_v10, %v1212_v50 }
 0x2e5   :  { %vm5018_vm10 = vcmp.le.f32.partialorder %v6072_v4, 0.7853982  ;;  %3303 = vsinq.f32 %v1633_v32  ;;  %v1835_v29 = vcvt.s32.f32 %v1828_v3  ;;  %v1313_v17 = vand.u32 2147483647, %v1312_v14  ;;  %v6087_v32 = vld [vmem:[#allocation16_spill] sm:$0xff] }
 0x2e6   :  { %v1737_v15 = vsel %vm5018_vm10, %v6067_v16, %v1734_v9  ;;  %v1940_v5 = vmul.f32 %v1939_v25, %v1937_v38  ;;  %v1315_v40 = vcvt.s32.f32 %v1308_v39  ;;  %v3075_v35 = vmin.u32 %v1507_v53, %v5014_v62 }
 0x2e7   :  { %v1215_v0 = vsub.s32 4, %v6075_v61  ;;  %v1422_v7 = vsel %vm1339_vm9, %v1421_v42, %v1420_v31  ;;  %3305 = vcosq.f32 %v1737_v15  ;;  %v6076_v49 = vand.u32 2147483647, %v6070_v60 }
 0x2e8   :  { %v1836_v50 = vmul.f32 %v1835_v29, %v1833_v37  ;;  %v1316_v36 = vmul.f32 %v1315_v40, %v1313_v17  ;;  %v1509_v8 = vclz %v3075_v35  ;;  %3307 = vsinq.f32 %v1737_v15 }
 0x2e9   :  { %vm5034_vm11 = vcmp.le.f32.partialorder %v6076_v49, 0.7853982  ;;  %vm1755_vm8 = vcmp.lt.s32.totalorder %v6079_v57, 0  ;;  %v6081_v44 = vand.u32 2147483647, %v6080_v18  ;;  %vm1235_vm15 = vcmp.lt.s32.totalorder %v6080_v18, 0 }
 0x2ea   :  { %v1217_v51 = vsel %vm5034_vm11, %v6070_v60, %v1214_v28  ;;  %v1941_v11 = vxor.u32 2147483648, %v1940_v5  ;;  %v3076_v26 = vadd.s32 4294967294, %v1509_v8  ;;  %v1216_v31 = vsel %vm1131_vm6, %v1215_v0, %v6075_v61 }
 0x2eb   :  { %vm5044_vm14 = vcmp.le.f32.partialorder %v6081_v44, 0.7853982  ;;  %v6084_v41 = vand.u32 2147483647, %v6071_v52  ;;  %vm1859_vm2 = vcmp.lt.s32.totalorder %v6087_v32, 0  ;;  %v1319_v55 = vsub.s32 4, %v4930_v22 }
 0x2ec   :  { %3309 = vcosq.f32 %v1217_v51  ;;  %v6088_v30 = vand.u32 2147483647, %v6079_v57  ;;  %v1837_v13 = vxor.u32 2147483648, %v1836_v50  ;;  %v1317_v59 = vxor.u32 2147483648, %v1316_v36 }
 0x2ed   :  { %vm5054_vm0 = vcmp.le.f32.partialorder %v6084_v41, 0.7853982  ;;  %vm3077_vm3 = vcmp.lt.s32.totalorder %v3076_v26, 0  ;;  %3311 = vsinq.f32 %v1217_v51  ;;  %v5069_v2 = vpop.eup %3301  ;;  %v1497_v10 = vadd.s32 %v4956_v43, %v4945_v34 }
 0x2ee   :  { %v1425_v21 = vsel %vm5054_vm0, %v6071_v52, %v1422_v7  ;;  %vm5065_vm4 = vcmp.le.f32.partialorder %v6088_v30, 0.7853982  ;;  %v1512_v9 = vsel %vm3077_vm3, 0, %v3076_v26  ;;  %v1218_v3 = vsel %vm5034_vm11, 0, %v1216_v31  ;;  %v6095_v7 = vld [vmem:[#allocation17_spill] sm:$0xff] }
 0x2ef   :  { %v1423_v38 = vsub.s32 4, %v6091_v56  ;;  %v1942_v39 = vsel %vm1859_vm2, %v1941_v11, %v1940_v5  ;;  %v1513_v42 = vsub.s32 32, %v1512_v9  ;;  %v1517_v4 = vsub.s32 4294967266, %v1512_v9  ;;  %v5078_v14 = vpop.eup %3303 }
 0x2f0   :  { %3313 = vcosq.f32 %v1425_v21  ;;  %v6092_v15 = vand.u32 2147483647, %v6087_v32  ;;  %v1320_v34 = vsel %vm1235_vm15, %v1319_v55, %v4930_v22  ;;  %v1527_v43 = vsub.s32 4, %v5002_v47 }
 0x2f1   :  { %3315 = vsinq.f32 %v1425_v21  ;;  %v1318_v25 = vsel %vm1235_vm15, %v1317_v59, %v1316_v36  ;;  %v1514_v53 = vshll.u32 %v5014_v62, %v1512_v9  ;;  %v1515_v28 = vshrl.u32 %v1497_v10, %v1513_v42  ;;  %v5093_v17 = vpop.eup %3305 }
 0x2f2   :  { %vm5082_vm1 = vcmp.le.f32.partialorder %v6092_v15, 0.7853982  ;;  %v1518_v29 = vadd.s32 127, %v1517_v4  ;;  %v1838_v5 = vsel %vm1755_vm8, %v1837_v13, %v1836_v50  ;;  %v1222_v22 = vadd.s32 3, %v1218_v3  ;;  %v5106_v45 = vpop.eup %3307 }
 0x2f3   :  { %v1945_v40 = vsel %vm5082_vm1, %v6087_v32, %v1942_v39  ;;  %v1424_v35 = vsel %vm1339_vm9, %v1423_v38, %v6091_v56  ;;  %v1322_v61 = vsel %vm5044_vm14, 0, %v1320_v34  ;;  %v1516_v62 = vor.u32 %v1515_v28, %v1514_v53  ;;  %v6098_v34 = vld [vmem:[#allocation13_spill] sm:$0xff] }
 0x2f4   :  { %v1519_v0 = vshll.u32 %v1518_v29, 23  ;;  %v1735_v49 = vsub.s32 4, %v6095_v7  ;;  %v1321_v50 = vsel %vm5044_vm14, %v6080_v18, %v1318_v25  ;;  %vm5113_vm6 = vcmp.le.f32.partialorder %v1441_v24, 0.7853982 }
 0x2f5   :  { %vm1443_vm9 = vcmp.lt.s32.totalorder %v4453_v23, 0  ;;  %v1943_v8 = vsub.s32 4, %v4868_v1  ;;  %3317 = vcosq.f32 %v1945_v40  ;;  %v1426_v12 = vsel %vm5054_vm0, 0, %v1424_v35 }
 0x2f6   :  { %v1520_v51 = vor.u32 4788187, %v1519_v0  ;;  %v1528_v44 = vsel %vm1443_vm9, %v1527_v43, %v5002_v47  ;;  %v3310_v11 = vpop.eup %3309  ;;  %v1841_v24 = vsel %vm5065_vm4, %v6079_v57, %v1838_v5  ;;  %3319 = vsinq.f32 %v1945_v40 }
 0x2f7   :  { %v1326_v26 = vadd.s32 3, %v1322_v61  ;;  %v1223_v31 = vand.u32 3, %v1222_v22  ;;  %v3312_v41 = vpop.eup %3311  ;;  %3321 = vcosq.f32 %v1321_v50  ;;  %v1523_v21 = vcvt.s32.f32 %v1516_v62 }
 0x2f8   :  { %v1521_v55 = vand.u32 2147483647, %v1520_v51  ;;  %v1736_v30 = vsel %vm1651_vm12, %v1735_v49, %v6095_v7  ;;  %3323 = vsinq.f32 %v1321_v50  ;;  %v1530_v47 = vsel %vm5113_vm6, 0, %v1528_v44 }
 0x2f9   :  { %v1430_v33 = vadd.s32 3, %v1426_v12  ;;  %v1944_v13 = vsel %vm1859_vm2, %v1943_v8, %v4868_v1  ;;  %3325 = vcosq.f32 %v1841_v24  ;;  %v1839_v9 = vsub.s32 4, %v4799_v63 }
 0x2fa   :  { %v3314_v59 = vpop.eup %3313  ;;  %v1524_v10 = vmul.f32 %v1523_v21, %v1521_v55  ;;  %3327 = vsinq.f32 %v1841_v24  ;;  %v1226_v56 = vxor.u32 2147483648, %v3312_v41  ;;  %v1229_v38 = vxor.u32 2147483648, %v3310_v11 }
 0x2fb   :  { %v3316_v3 = vpop.eup %3315  ;;  %v1738_v39 = vsel %vm5018_vm10, 0, %v1736_v30  ;;  %v1534_v4 = vadd.s32 3, %v1530_v47  ;;  %v1946_v15 = vsel %vm5082_vm1, 0, %v1944_v13  ;;  %v1631_v43 = vsub.s32 4, %v6098_v34 }
 0x2fc   :  { %v1525_v42 = vxor.u32 2147483648, %v1524_v10  ;;  %v5141_v1 = vand.u32 3, %v1326_v26  ;;  %vm1228_vm12 = vcmp.eq.s32.totalorder %v1223_v31, 2  ;;  %v1431_v25 = vand.u32 3, %v1430_v33 }
 0x2fd   :  { %v1437_v53 = vxor.u32 2147483648, %v3314_v59  ;;  %v1434_v29 = vxor.u32 2147483648, %v3316_v3  ;;  %v1742_v5 = vadd.s32 3, %v1738_v39  ;;  %v1840_v58 = vsel %vm1755_vm8, %v1839_v9, %v4799_v63 }
 0x2fe   :  { %v1526_v28 = vsel %vm1443_vm9, %v1525_v42, %v1524_v10  ;;  %vm1225_vm10 = vcmp.eq.s32.totalorder %v1223_v31, 0  ;;  %v1230_v40 = vsel %vm1228_vm12, %v1229_v38, %v3312_v41  ;;  %vm1429_vm11 = vweird.f32 %v6071_v52 }
 0x2ff   :  { %v1529_v37 = vsel %vm5113_vm6, %v4453_v23, %v1526_v28  ;;  %v1950_v22 = vadd.s32 3, %v1946_v15  ;;  %v3318_v35 = vpop.eup %3317  ;;  %v5152_v61 = vand.u32 3, %v1534_v4  ;;  %v1227_v62 = vsel %vm1225_vm10, %v3310_v11, %v1226_v56 }
 0x300   :  { %3329 = vcosq.f32 %v1529_v37  ;;  %v1632_v0 = vsel %vm1547_vm13, %v1631_v43, %v6098_v34  ;;  %v3320_v7 = vpop.eup %3319  ;;  %vm1329_vm8 = vcmp.eq.s32.totalorder %v5141_v1, 0  ;;  %vm1332_vm14 = vcmp.eq.s32.totalorder %v5141_v1, 2 }
 0x301   :  { %3331 = vsinq.f32 %v1529_v37  ;;  %vm1433_vm15 = vcmp.eq.s32.totalorder %v1431_v25, 0  ;;  %vm1436_vm0 = vcmp.eq.s32.totalorder %v1431_v25, 2  ;;  %v1842_v63 = vsel %vm5065_vm4, 0, %v1840_v58  ;;  %v3322_v49 = vpop.eup %3321 }
 0x302   :  { %vm1224_vm2 = vcmp.lt.s32.totalorder %v1223_v31, 2  ;;  %v1435_v50 = vsel %vm1433_vm15, %v3314_v59, %v1434_v29  ;;  %v1438_v36 = vsel %vm1436_vm0, %v1437_v53, %v3316_v3  ;;  %v1743_v8 = vand.u32 3, %v1742_v5  ;;  %v3324_v51 = vpop.eup %3323 }
 0x303   :  { %v5161_v44 = vsel %vm1224_vm2, %v1227_v62, %v1230_v40  ;;  %v1746_v12 = vxor.u32 2147483648, %v5106_v45  ;;  %v1951_v11 = vand.u32 3, %v1950_v22  ;;  %v1634_v24 = vsel %vm4982_vm5, 0, %v1632_v0  ;;  %v3326_v26 = vpop.eup %3325 }
 0x304   :  { %vm1328_vm13 = vcmp.lt.s32.totalorder %v5141_v1, 2  ;;  %vm1432_vm3 = vcmp.lt.s32.totalorder %v1431_v25, 2  ;;  %v1954_v6 = vxor.u32 2147483648, %v3320_v7  ;;  %v1957_v41 = vxor.u32 2147483648, %v3318_v35  ;;  %v3328_v31 = vpop.eup %3327 }
 0x305   :  { %v1846_v55 = vadd.s32 3, %v1842_v63  ;;  %vm1540_vm1 = vcmp.eq.s32.totalorder %v5152_v61, 2  ;;  %v1439_v21 = vsel %vm1432_vm3, %v1435_v50, %v1438_v36  ;;  %v1749_v30 = vxor.u32 2147483648, %v5093_v17 }
 0x306   :  { %vm1949_vm6 = vweird.f32 %v6087_v32  ;;  %v1330_v47 = vxor.u32 2147483648, %v3324_v51  ;;  %v1333_v20 = vxor.u32 2147483648, %v3322_v49  ;;  %vm1536_vm5 = vcmp.lt.s32.totalorder %v5152_v61, 2 }
 0x307   :  { %vm1744_vm9 = vcmp.lt.s32.totalorder %v1743_v8, 2  ;;  %v1638_v33 = vadd.s32 3, %v1634_v24  ;;  %vm1325_vm12 = vweird.f32 %v6080_v18  ;;  %vm1533_vm10 = vweird.f32 %v4453_v23 }
 0x308   :  { %vm1741_vm15 = vweird.f32 %v6067_v16  ;;  %vm1745_vm0 = vcmp.eq.s32.totalorder %v1743_v8, 0  ;;  %vm1748_vm2 = vcmp.eq.s32.totalorder %v1743_v8, 2  ;;  %vm1953_vm7 = vcmp.eq.s32.totalorder %v1951_v11, 0  ;;  %v1964_v8 = vld [vmem:[%s5900_s5 + $0x18] sm:$0xff] }
 0x309   :  { %vm1956_vm3 = vcmp.eq.s32.totalorder %v1951_v11, 2  ;;  %v1440_v13 = vsel %vm1429_vm11, nan, %v1439_v21  ;;  %v1955_v59 = vsel %vm1953_vm7, %v3318_v35, %v1954_v6  ;;  %v1847_v9 = vand.u32 3, %v1846_v55 }
 0x30a   :  { %v1958_v10 = vsel %vm1956_vm3, %v1957_v41, %v3320_v7  ;;  %v1747_v3 = vsel %vm1745_vm0, %v5093_v17, %v1746_v12  ;;  %v1750_v56 = vsel %vm1748_vm2, %v1749_v30, %v5106_v45  ;;  %v1850_v38 = vxor.u32 2147483648, %v3328_v31  ;;  %v3330_v42 = vpop.eup %3329  ;;  %v1977_v41 = vpop.permute.xlu1 %1976 }
 0x30b   :  { %v1853_v39 = vxor.u32 2147483648, %v3326_v26  ;;  %v1331_v4 = vsel %vm1329_vm8, %v3322_v49, %v1330_v47  ;;  %v1334_v15 = vsel %vm1332_vm14, %v1333_v20, %v3324_v51  ;;  %vm1952_vm4 = vcmp.lt.s32.totalorder %v1951_v11, 2  ;;  %v3332_v52 = vpop.eup %3331  ;;  %v1972_v51 = vpop.permute.xlu0 %1971 }
 0x30c   :  { %v1639_v34 = vand.u32 3, %v1638_v33  ;;  %v1541_v43 = vxor.u32 2147483648, %v3330_v42  ;;  %v1959_v25 = vsel %vm1952_vm4, %v1955_v59, %v1958_v10  ;;  %v1642_v53 = vxor.u32 2147483648, %v5078_v14 }
 0x30d   :  { %v1645_v17 = vxor.u32 2147483648, %v5069_v2  ;;  %v1538_v28 = vxor.u32 2147483648, %v3332_v52  ;;  %v1751_v45 = vsel %vm1744_vm9, %v1747_v3, %v1750_v56  ;;  %vm1849_vm7 = vcmp.eq.s32.totalorder %v1847_v9, 0 }
 0x30e   :  { %vm1852_vm11 = vcmp.eq.s32.totalorder %v1847_v9, 2  ;;  %v1335_v29 = vsel %vm1328_vm13, %v1331_v4, %v1334_v15  ;;  %v1542_v5 = vsel %vm1540_vm1, %v1541_v43, %v3332_v52  ;;  %v1851_v58 = vsel %vm1849_vm7, %v3326_v26, %v1850_v38 }
 0x30f   :  { %v1854_v37 = vsel %vm1852_vm11, %v1853_v39, %v3328_v31  ;;  %vm6099_vm8 = vcmp.eq.s32.totalorder %v5152_v61, 0  ;;  %v1960_v22 = vsel %vm1949_vm6, nan, %v1959_v25  ;;  %vm1641_vm14 = vcmp.eq.s32.totalorder %v1639_v34, 0 }
 0x310   :  { %v1539_v40 = vsel %vm6099_vm8, %v3330_v42, %v1538_v28  ;;  %vm1644_vm4 = vcmp.eq.s32.totalorder %v1639_v34, 2  ;;  %v1643_v62 = vsel %vm1641_vm14, %v5069_v2, %v1642_v53  ;;  %vm1848_vm13 = vcmp.lt.s32.totalorder %v1847_v9, 2 }
 0x311   :  { %v1543_v35 = vsel %vm1536_vm5, %v1539_v40, %v1542_v5  ;;  %v1646_v1 = vsel %vm1644_vm4, %v1645_v17, %v5078_v14  ;;  %v1336_v0 = vsel %vm1325_vm12, nan, %v1335_v29  ;;  %v1752_v32 = vsel %vm1741_vm15, nan, %v1751_v45 }
 0x312   :  { %v1544_v7 = vsel %vm1533_vm10, nan, %v1543_v35  ;;  %v1855_v63 = vsel %vm1848_vm13, %v1851_v58, %v1854_v37  ;;  %vm6100_vm1 = vweird.f32 %v6070_v60  ;;  %v3145_v50 = vpack.c.bf16 %v1960_v22, %v1752_v32  ;;  %v1961_v60 = vld [vmem:[%s5900_s5] sm:$0xff] }
 0x313   :  { %v3141_v49 = vpack.c.bf16 %v1544_v7, %v1336_v0  ;;  %v1232_v61 = vsel %vm6100_vm1, nan, %v5161_v44  ;;  %vm1640_vm6 = vcmp.lt.s32.totalorder %v1639_v34, 2  ;;  %vm1845_vm5 = vweird.f32 %v6079_v57  ;;  %v1962_v57 = vld [vmem:[%s5900_s5 + $0x8] sm:$0xff] }
 0x314   :  { %v3143_v2 = vpack.c.bf16 %v1440_v13, %v1232_v61  ;;  %v1647_v14 = vsel %vm1640_vm6, %v1643_v62, %v1646_v1  ;;  %v1856_v18 = vsel %vm1845_vm5, nan, %v1855_v63  ;;  %vm1637_vm9 = vweird.f32 %v6063_v19  ;;  %v1963_v19 = vld [vmem:[%s5900_s5 + $0x10] sm:$0xff] }
 0x315   :  { %3142 = vmatprep.subr.bf16.mxu1 %v3141_v49  ;;  %v1648_v23 = vsel %vm1637_vm9, nan, %v1647_v14  ;;  %vm6101_vm12 = vcmask 261120   ;;  %v6102_v36 = vmov 0.0   ;;  %v6106_v63 = vmov 920167782  }
 0x316   :  { %3144 = vmatpush1.bf16.msra.mxu1 %v3143_v2  ;;  %v3147_v16 = vpack.c.bf16 %v1856_v18, %v1648_v23  ;;  %vm6103_vm10 = vmmov %vm6101_vm12  ;;  %v6107_v23 = vmov 1326507024  }
 0x317   :  { %3146 = vmatprep.subr.bf16.mxu1 %v3145_v50  ;;  %vm6104_vm15 = vmmov %vm6103_vm10 }
 0x318   :  { %vm6105_vm0 = vmmov %vm6103_vm10 }
 0x31a   :  { %3148 = vmatpush1.bf16.msra.mxu1 %v3147_v16 }
 0x31d   :  { %3094 = vmatmul.mubr.msk.f32.vlgmr.msra.gmra.mrb[0].mxu1 %vm6101_vm12, %v1961_v60 }
 0x31e   :  { %2071 = vmatprep.mubr.f32.mxu1 %v6102_v36 }
 0x321   :  { %3095 = vmatmul.mubr.msk.f32.gmra.mrb[2].mxu1 %vm6103_vm10, %v1962_v57 }
 0x322   :  { %2077 = vmatprep.mubr.f32.mxu1 %v6102_v36 }
 0x325   :  { %3096 = vmatmul.mubr.msk.f32.gmra.mrb[4].mxu1 %vm6104_vm15, %v1963_v19 }
 0x326   :  { %2083 = vmatprep.mubr.f32.mxu1 %v6102_v36 }
 0x329   :  { %3097 = vmatmul.mubr.msk.f32.gmra.mrb[6].mxu1 %vm6105_vm0, %v1964_v8 }
 0x3f0   :  { %v2067_v44 = vpop.f32.mrb[0].mxu1 }
 0x3f1   :  { %v5229_v12 = vadd.f32 %v2067_v44, %v1972_v51  ;;  %v2069_v11 = vpop.f32.mrb[1].mxu1 }
 0x3f2   :  { %v5231_v24 = vadd.f32 %v2069_v11, %v1972_v51 }
 0x3f3   :  { %v2090_v26 = vand.u32 2147483647, %v5229_v12  ;;  %v2093_v6 = vand.u32 2139095040, %v5229_v12 }
 0x3f4   :  { %v2194_v55 = vand.u32 2147483647, %v5231_v24  ;;  %v2197_v31 = vand.u32 2139095040, %v5231_v24  ;;  %v2073_v21 = vpop.f32.mrb[2].mxu1 }
 0x3f5   :  { %v2094_v30 = vshrl.u32 %v2093_v6, 23  ;;  %v5237_v47 = vadd.f32 %v2073_v21, %v1977_v41  ;;  %v2075_v20 = vpop.f32.mrb[3].mxu1  ;;  %v2097_v33 = vand.u32 8388607, %v2090_v26 }
 0x3f6   :  { %v2198_v13 = vshrl.u32 %v2197_v31, 23  ;;  %v2201_v59 = vand.u32 8388607, %v2194_v55  ;;  %v5250_v45 = vadd.f32 %v2075_v20, %v1977_v41 }
 0x3f7   :  { %v3098_v10 = vadd.s32 4294967169, %v2094_v30  ;;  %v2301_v3 = vand.u32 2139095040, %v5237_v47  ;;  %v2098_v39 = vor.u32 8388608, %v2097_v33  ;;  %v5985_v40 = vand.u32 2147483647, %v5237_v47 }
 0x3f8   :  { %v3102_v9 = vadd.s32 4294967169, %v2198_v13  ;;  %v5244_v56 = vpop.f32.mrb[4].mxu1  ;;  %v2202_v42 = vor.u32 8388608, %v2201_v59 }
 0x3f9   :  { %v2100_v38 = vadd.s32 1, %v3098_v10  ;;  %v2302_v15 = vshrl.u32 %v2301_v3, 23  ;;  %v5246_v34 = vpop.f32.mrb[5].mxu1  ;;  %v5254_v5 = vshll.u32 %v2098_v39, 8 }
 0x3fa   :  { %v2204_v4 = vadd.s32 1, %v3102_v9  ;;  %v5258_v37 = vshll.u32 %v2202_v42, 8 }
 0x3fb   :  { %vm2101_vm2 = vcmp.gt.s32.totalorder %v2100_v38, 0  ;;  %v3106_v43 = vadd.s32 4294967169, %v2302_v15 }
 0x3fc   :  { %v2102_v52 = vsel %vm2101_vm2, %v2100_v38, 0  ;;  %vm2205_vm3 = vcmp.gt.s32.totalorder %v2204_v4, 0  ;;  %v5248_v25 = vpop.f32.mrb[6].mxu1 }
 0x3fd   :  { %v2103_v53 = vshrl.u32 %v2102_v52, 5  ;;  %v2104_v17 = vand.u32 31, %v2102_v52  ;;  %v2206_v28 = vsel %vm2205_vm3, %v2204_v4, 0  ;;  %v5252_v29 = vpop.f32.mrb[7].mxu1  ;;  %v5262_v1 = vadd.s32 1, %v3106_v43 }
 0x3fe   :  { %v5256_v58 = vshrl.u32 %v2206_v28, 5  ;;  %v2208_v62 = vand.u32 31, %v2206_v28 }
 0x3ff   :  { %v2105_v22 = vsub.s32 32, %v2104_v17  ;;  %v2107_v35 = vshll.u32 %v5997_v27, %v2104_v17  ;;  %v2110_v0 = vshll.u32 %v6004_v46, %v2104_v17  ;;  %v2113_v7 = vshll.u32 %v6001_v48, %v2104_v17 }
 0x400   :  { %v2116_v32 = vshll.u32 %v5998_v54, %v2104_v17  ;;  %v2119_v49 = vshll.u32 %v6106_v63, %v2104_v17  ;;  %vm2122_vm7 = vcmp.lt.s32.totalorder %v2103_v53, 1  ;;  %vm2123_vm11 = vcmp.lt.s32.totalorder %v2103_v53, 2 }
 0x401   :  { %v2108_v61 = vshrl.u32 %v6004_v46, %v2105_v22  ;;  %v2111_v50 = vshrl.u32 %v6001_v48, %v2105_v22  ;;  %v2114_v2 = vshrl.u32 %v5998_v54, %v2105_v22  ;;  %v2106_v14 = vshrl.u32 %v5997_v27, %v2105_v22 }
 0x402   :  { %v2117_v18 = vshrl.u32 %v6106_v63, %v2105_v22  ;;  %v2120_v16 = vshrl.u32 %v6107_v23, %v2105_v22  ;;  %v2209_v19 = vsub.s32 32, %v2208_v62  ;;  %vm2124_vm8 = vcmp.lt.s32.totalorder %v2103_v53, 3 }
 0x403   :  { %v2109_v60 = vor.u32 %v2108_v61, %v2107_v35  ;;  %v2112_v36 = vor.u32 %v2111_v50, %v2110_v0  ;;  %v2115_v57 = vor.u32 %v2114_v2, %v2113_v7  ;;  %vm2125_vm14 = vcmp.lt.s32.totalorder %v2103_v53, 4 }
 0x404   :  { %v2118_v8 = vor.u32 %v2117_v18, %v2116_v32  ;;  %v2121_v51 = vor.u32 %v2120_v16, %v2119_v49  ;;  %v2211_v20 = vshll.u32 %v5997_v27, %v2208_v62  ;;  %v2212_v59 = vshrl.u32 %v6004_v46, %v2209_v19 }
 0x405   :  { %v2126_v44 = vsel %vm2122_vm7, %v2106_v14, %v2109_v60  ;;  %v2127_v11 = vsel %vm2125_vm14, %v2115_v57, 2102212464  ;;  %v2130_v6 = vsel %vm2122_vm7, %v2109_v60, %v2112_v36  ;;  %v2134_v41 = vsel %vm2122_vm7, %v2112_v36, %v2115_v57 }
 0x406   :  { %v2128_v31 = vsel %vm2124_vm8, %v2112_v36, %v2127_v11  ;;  %v2131_v21 = vsel %vm2125_vm14, %v2118_v8, 920167782  ;;  %v2135_v30 = vsel %vm2125_vm14, %v2121_v51, 1326507024  ;;  %v2214_v10 = vshll.u32 %v6004_v46, %v2208_v62 }
 0x407   :  { %v2132_v33 = vsel %vm2124_vm8, %v2115_v57, %v2131_v21  ;;  %v2136_v13 = vsel %vm2124_vm8, %v2118_v8, %v2135_v30  ;;  %v2129_v9 = vsel %vm2123_vm11, %v2126_v44, %v2128_v31  ;;  %v2215_v39 = vshrl.u32 %v6001_v48, %v2209_v19 }
 0x408   :  { %v2133_v3 = vsel %vm2123_vm11, %v2130_v6, %v2132_v33  ;;  %v2137_v38 = vsel %vm2123_vm11, %v2134_v41, %v2136_v13  ;;  %v2213_v43 = vor.u32 %v2212_v59, %v2211_v20  ;;  %v2217_v28 = vshll.u32 %v6001_v48, %v2208_v62 }
 0x409   :  { %v5285_v42 = vmul.u32.u64.low %v5254_v5, %v2137_v38  ;;  %v5286_v4 = vmul.u32.u64.high %v5254_v5, %v2137_v38, %v5285_v42  ;;  %v5289_v15 = vmul.u32.u64.low %v5254_v5, %v2133_v3  ;;  %v5290_v52 = vmul.u32.u64.high %v5254_v5, %v2133_v3, %v5289_v15 }
 0x40a   :  { %v2216_v17 = vor.u32 %v2215_v39, %v2214_v10  ;;  %v2218_v22 = vshrl.u32 %v5998_v54, %v2209_v19  ;;  %v2210_v53 = vshrl.u32 %v5997_v27, %v2209_v19  ;;  %v2220_v35 = vshll.u32 %v5998_v54, %v2208_v62 }
 0x40b   :  { %v2221_v0 = vshrl.u32 %v6106_v63, %v2209_v19  ;;  %v2224_v7 = vshrl.u32 %v6107_v23, %v2209_v19  ;;  %v2145_v32 = vmul.u32 %v5254_v5, %v2129_v9  ;;  %v2223_v61 = vshll.u32 %v6106_v63, %v2208_v62 }
 0x40c   :  { %v2219_v49 = vor.u32 %v2218_v22, %v2217_v28  ;;  %vm2226_vm4 = vcmp.lt.s32.totalorder %v5256_v58, 1  ;;  %vm2147_vm13 = vc.u32 %v5286_v4, %v5289_v15  ;;  %v2148_v50 = vadd.s32 1, %v5290_v52 }
 0x40d   :  { %v2222_v2 = vor.u32 %v2221_v0, %v2220_v35  ;;  %vm2227_vm1 = vcmp.lt.s32.totalorder %v5256_v58, 2  ;;  %v2225_v14 = vor.u32 %v2224_v7, %v2223_v61  ;;  %vm2228_vm6 = vcmp.lt.s32.totalorder %v5256_v58, 3 }
 0x40e   :  { %vm2229_vm5 = vcmp.lt.s32.totalorder %v5256_v58, 4  ;;  %v2234_v18 = vsel %vm2226_vm4, %v2213_v43, %v2216_v17  ;;  %v2149_v5 = vsel %vm2147_vm13, %v2148_v50, %v5290_v52  ;;  %v2238_v60 = vsel %vm2226_vm4, %v2216_v17, %v2219_v49 }
 0x40f   :  { %v2231_v16 = vsel %vm2229_vm5, %v2219_v49, 2102212464  ;;  %v2235_v62 = vsel %vm2229_vm5, %v2222_v2, 920167782  ;;  %v2150_v36 = vadd.s32 %v2149_v5, %v2145_v32  ;;  %v2230_v57 = vsel %vm2226_vm4, %v2210_v53, %v2213_v43 }
 0x410   :  { %v2236_v19 = vsel %vm2228_vm6, %v2219_v49, %v2235_v62  ;;  %v2239_v8 = vsel %vm2229_vm5, %v2225_v14, 1326507024  ;;  %v2232_v51 = vsel %vm2228_vm6, %v2216_v17, %v2231_v16  ;;  %vm2309_vm9 = vcmp.gt.s32.totalorder %v5262_v1, 0 }
 0x411   :  { %v2237_v44 = vsel %vm2227_vm1, %v2234_v18, %v2236_v19  ;;  %v2240_v11 = vsel %vm2228_vm6, %v2222_v2, %v2239_v8  ;;  %v2151_v6 = vadd.s32 536870912, %v2150_v36  ;;  %v2305_v33 = vand.u32 8388607, %v5985_v40 }
 0x412   :  { %v2241_v41 = vsel %vm2227_vm1, %v2238_v60, %v2240_v11  ;;  %v5315_v31 = vmul.u32.u64.low %v5258_v37, %v2237_v44  ;;  %v5316_v21 = vmul.u32.u64.high %v5258_v37, %v2237_v44, %v5315_v31  ;;  %v2310_v13 = vsel %vm2309_vm9, %v5262_v1, 0 }
 0x413   :  { %v5320_v30 = vmul.u32.u64.low %v5258_v37, %v2241_v41  ;;  %v5321_v20 = vmul.u32.u64.high %v5258_v37, %v2241_v41, %v5320_v30  ;;  %v5326_v59 = vshrl.u32 %v2151_v6, 30  ;;  %v2233_v10 = vsel %vm2227_vm1, %v2230_v57, %v2232_v51 }
 0x414   :  { %v2312_v9 = vand.u32 31, %v2310_v13  ;;  %v2405_v3 = vand.u32 2139095040, %v5250_v45  ;;  %v2252_v39 = vadd.s32 1, %v5316_v21  ;;  %v2249_v52 = vmul.u32 %v5258_v37, %v2233_v10 }
 0x415   :  { %v2153_v38 = vshll.u32 %v5326_v59, 30  ;;  %vm2251_vm12 = vc.u32 %v5321_v20, %v5315_v31  ;;  %v2306_v43 = vor.u32 8388608, %v2305_v33  ;;  %v2311_v7 = vshrl.u32 %v2310_v13, 5 }
 0x416   :  { %v2313_v42 = vsub.s32 32, %v2312_v9  ;;  %v2253_v17 = vsel %vm2251_vm12, %v2252_v39, %v5316_v21  ;;  %v2406_v58 = vshrl.u32 %v2405_v3, 23  ;;  %v2315_v22 = vshll.u32 %v5997_v27, %v2312_v9 }
 0x417   :  { %v5336_v1 = vsub.s32 %v2150_v36, %v2153_v38  ;;  %v2254_v28 = vadd.s32 %v2253_v17, %v2249_v52  ;;  %v2318_v37 = vshll.u32 %v6004_v46, %v2312_v9  ;;  %v2321_v50 = vshll.u32 %v6001_v48, %v2312_v9 }
 0x418   :  { %v2316_v53 = vshrl.u32 %v6004_v46, %v2313_v42  ;;  %v2319_v35 = vshrl.u32 %v6001_v48, %v2313_v42  ;;  %v2322_v32 = vshrl.u32 %v5998_v54, %v2313_v42  ;;  %v2346_v2 = vshll.u32 %v2306_v43, 8 }
 0x419   :  { %v2156_v0 = vsub.s32 0, %v5336_v1  ;;  %v2255_v49 = vadd.s32 536870912, %v2254_v28  ;;  %v2324_v5 = vshll.u32 %v5998_v54, %v2312_v9  ;;  %v2325_v16 = vshrl.u32 %v6106_v63, %v2313_v42 }
 0x41a   :  { %v2317_v61 = vor.u32 %v2316_v53, %v2315_v22  ;;  %v2320_v18 = vor.u32 %v2319_v35, %v2318_v37  ;;  %v2323_v60 = vor.u32 %v2322_v32, %v2321_v50  ;;  %v2327_v36 = vshll.u32 %v6106_v63, %v2312_v9 }
 0x41b   :  { %v3099_v14 = vmin.u32 %v2156_v0, %v5336_v1  ;;  %v5349_v62 = vshrl.u32 %v2255_v49, 30  ;;  %v2328_v57 = vshrl.u32 %v6107_v23, %v2313_v42  ;;  %v2326_v8 = vor.u32 %v2325_v16, %v2324_v5 }
 0x41c   :  { %vm2330_vm10 = vcmp.lt.s32.totalorder %v2311_v7, 1  ;;  %v3110_v51 = vadd.s32 4294967169, %v2406_v58  ;;  %vm2331_vm15 = vcmp.lt.s32.totalorder %v2311_v7, 2  ;;  %vm2333_vm0 = vcmp.lt.s32.totalorder %v2311_v7, 4 }
 0x41d   :  { %v2158_v19 = vclz %v3099_v14  ;;  %v2257_v44 = vshll.u32 %v5349_v62, 30  ;;  %v2329_v11 = vor.u32 %v2328_v57, %v2327_v36  ;;  %vm2332_vm2 = vcmp.lt.s32.totalorder %v2311_v7, 3 }
 0x41e   :  { %v2338_v41 = vsel %vm2330_vm10, %v2317_v61, %v2320_v18  ;;  %v2339_v21 = vsel %vm2333_vm0, %v2326_v8, 920167782  ;;  %v2335_v33 = vsel %vm2333_vm0, %v2323_v60, 2102212464  ;;  %v2342_v10 = vsel %vm2330_vm10, %v2320_v18, %v2323_v60 }
 0x41f   :  { %v3100_v6 = vadd.s32 4294967294, %v2158_v19  ;;  %v5355_v30 = vsub.s32 %v2254_v28, %v2257_v44  ;;  %v2340_v13 = vsel %vm2332_vm2, %v2323_v60, %v2339_v21  ;;  %v2314_v9 = vshrl.u32 %v5997_v27, %v2313_v42 }
 0x420   :  { %v2341_v3 = vsel %vm2331_vm15, %v2338_v41, %v2340_v13  ;;  %v2343_v38 = vsel %vm2333_vm0, %v2329_v11, 1326507024  ;;  %v2412_v17 = vadd.s32 1, %v3110_v51  ;;  %v2336_v22 = vsel %vm2332_vm2, %v2320_v18, %v2335_v33  ;;  %v1982_v41 = vpop.permute.xlu0 %1981 }
 0x421   :  { %vm3101_vm3 = vcmp.lt.s32.totalorder %v3100_v6, 0  ;;  %v2260_v52 = vsub.s32 0, %v5355_v30  ;;  %v2344_v43 = vsel %vm2332_vm2, %v2326_v8, %v2343_v38  ;;  %v2334_v28 = vsel %vm2330_vm10, %v2314_v9, %v2317_v61 }
 0x422   :  { %v2161_v39 = vsel %vm3101_vm3, 0, %v3100_v6  ;;  %v2345_v53 = vsel %vm2331_vm15, %v2342_v10, %v2344_v43  ;;  %vm2413_vm7 = vcmp.gt.s32.totalorder %v2412_v17, 0  ;;  %v5984_v50 = vand.u32 2147483647, %v5250_v45 }
 0x423   :  { %v2166_v58 = vsub.s32 4294967266, %v2161_v39  ;;  %v3103_v35 = vmin.u32 %v2260_v52, %v5355_v30  ;;  %v5367_v0 = vmul.u32.u64.low %v2346_v2, %v2345_v53  ;;  %v5368_v42 = vmul.u32.u64.high %v2346_v2, %v2345_v53, %v5367_v0 }
 0x424   :  { %v5370_v37 = vmul.u32.u64.low %v2346_v2, %v2341_v3  ;;  %v5371_v32 = vmul.u32.u64.high %v2346_v2, %v2341_v3, %v5370_v37  ;;  %v2414_v14 = vsel %vm2413_vm7, %v2412_v17, 0  ;;  %v2162_v5 = vsub.s32 32, %v2161_v39 }
 0x425   :  { %v2262_v49 = vclz %v3103_v35  ;;  %v2167_v61 = vadd.s32 127, %v2166_v58  ;;  %v2337_v18 = vsel %vm2331_vm15, %v2334_v28, %v2336_v22  ;;  %v2416_v16 = vand.u32 31, %v2414_v14 }
 0x426   :  { %vm2355_vm11 = vc.u32 %v5368_v42, %v5370_v37  ;;  %v2146_v36 = vadd.s32 %v5289_v15, %v5286_v4  ;;  %v2356_v57 = vadd.s32 1, %v5371_v32  ;;  %v2353_v19 = vmul.u32 %v2346_v2, %v2337_v18 }
 0x427   :  { %v3104_v60 = vadd.s32 4294967294, %v2262_v49  ;;  %v2409_v8 = vand.u32 8388607, %v5984_v50  ;;  %v2168_v44 = vshll.u32 %v2167_v61, 23  ;;  %v2417_v11 = vsub.s32 32, %v2416_v16 }
 0x428   :  { %v2164_v51 = vshrl.u32 %v2146_v36, %v2162_v5  ;;  %v2357_v7 = vsel %vm2355_vm11, %v2356_v57, %v5371_v32  ;;  %v2163_v21 = vshll.u32 %v5336_v1, %v2161_v39  ;;  %v5386_v4 = vadd.f32 %v5244_v56, %v1982_v41 }
 0x429   :  { %vm3105_vm8 = vcmp.lt.s32.totalorder %v3104_v60, 0  ;;  %v2358_v6 = vadd.s32 %v2357_v7, %v2353_v19  ;;  %v2410_v10 = vor.u32 8388608, %v2409_v8  ;;  %v2169_v2 = vor.u32 4788187, %v2168_v44 }
 0x42a   :  { %v2265_v33 = vsel %vm3105_vm8, 0, %v3104_v60  ;;  %v2165_v15 = vor.u32 %v2164_v51, %v2163_v21  ;;  %v2420_v9 = vshrl.u32 %v6004_v46, %v2417_v11  ;;  %v2423_v3 = vshrl.u32 %v6001_v48, %v2417_v11 }
 0x42b   :  { %v2359_v13 = vadd.s32 536870912, %v2358_v6  ;;  %v2270_v38 = vsub.s32 4294967266, %v2265_v33  ;;  %v2426_v43 = vshrl.u32 %v5998_v54, %v2417_v11  ;;  %v2429_v17 = vshrl.u32 %v6106_v63, %v2417_v11 }
 0x42c   :  { %v2419_v1 = vshll.u32 %v5997_v27, %v2416_v16  ;;  %v2422_v39 = vshll.u32 %v6004_v46, %v2416_v16  ;;  %v2428_v56 = vshll.u32 %v5998_v54, %v2416_v16  ;;  %v2432_v58 = vshrl.u32 %v6107_v23, %v2417_v11 }
 0x42d   :  { %v5390_v52 = vshrl.u32 %v2359_v13, 30  ;;  %v2415_v22 = vshrl.u32 %v2414_v14, 5  ;;  %v2425_v53 = vshll.u32 %v6001_v48, %v2416_v16  ;;  %v5401_v35 = vadd.f32 %v5246_v34, %v1982_v41 }
 0x42e   :  { %v2421_v0 = vor.u32 %v2420_v9, %v2419_v1  ;;  %v2424_v32 = vor.u32 %v2423_v3, %v2422_v39  ;;  %v2430_v49 = vor.u32 %v2429_v17, %v2428_v56  ;;  %v2431_v5 = vshll.u32 %v6106_v63, %v2416_v16 }
 0x42f   :  { %v2361_v28 = vshll.u32 %v5390_v52, 30  ;;  %v2250_v61 = vadd.s32 %v5315_v31, %v5321_v20  ;;  %v2271_v18 = vadd.s32 127, %v2270_v38  ;;  %v2427_v36 = vor.u32 %v2426_v43, %v2425_v53 }
 0x430   :  { %v2170_v57 = vand.u32 2147483647, %v2169_v2  ;;  %v2172_v19 = vcvt.s32.f32 %v2165_v15  ;;  %v2433_v14 = vor.u32 %v2432_v58, %v2431_v5  ;;  %v2450_v8 = vshll.u32 %v2410_v10, 8 }
 0x431   :  { %v5406_v60 = vsub.s32 %v2358_v6, %v2361_v28  ;;  %v2266_v51 = vsub.s32 32, %v2265_v33  ;;  %vm2434_vm14 = vcmp.lt.s32.totalorder %v2415_v22, 1  ;;  %vm2437_vm4 = vcmp.lt.s32.totalorder %v2415_v22, 4 }
 0x432   :  { %v2418_v44 = vshrl.u32 %v5997_v27, %v2417_v11  ;;  %vm2436_vm13 = vcmp.lt.s32.totalorder %v2415_v22, 3  ;;  %v2442_v16 = vsel %vm2434_vm14, %v2421_v0, %v2424_v32  ;;  %v2443_v7 = vsel %vm2437_vm4, %v2430_v49, 920167782 }
 0x433   :  { %v2364_v34 = vsub.s32 0, %v5406_v60  ;;  %v2272_v31 = vshll.u32 %v2271_v18, 23  ;;  %vm2435_vm1 = vcmp.lt.s32.totalorder %v2415_v22, 2  ;;  %v2439_v20 = vsel %vm2437_vm4, %v2427_v36, 2102212464 }
 0x434   :  { %v2444_v6 = vsel %vm2436_vm13, %v2427_v36, %v2443_v7  ;;  %v2446_v13 = vsel %vm2434_vm14, %v2424_v32, %v2427_v36  ;;  %v2447_v10 = vsel %vm2437_vm4, %v2433_v14, 1326507024  ;;  %v2267_v15 = vshll.u32 %v5355_v30, %v2265_v33 }
 0x435   :  { %v3107_v41 = vmin.u32 %v2364_v34, %v5406_v60  ;;  %v2445_v21 = vsel %vm2435_vm1, %v2442_v16, %v2444_v6  ;;  %v2268_v2 = vshrl.u32 %v2250_v61, %v2266_v51  ;;  %v2438_v11 = vsel %vm2434_vm14, %v2418_v44, %v2421_v0  ;;  %v5441_v6 = vpop.permute.xlu1 %1986 }
 0x436   :  { %v2448_v9 = vsel %vm2436_vm13, %v2430_v49, %v2447_v10  ;;  %v2440_v3 = vsel %vm2436_vm13, %v2424_v32, %v2439_v20  ;;  %v5417_v43 = vmul.u32.u64.low %v2450_v8, %v2445_v21  ;;  %v5418_v17 = vmul.u32.u64.high %v2450_v8, %v2445_v21, %v5417_v43 }
 0x437   :  { %v2449_v38 = vsel %vm2435_vm1, %v2446_v13, %v2448_v9  ;;  %v2173_v1 = vmul.f32 %v2172_v19, %v2170_v57  ;;  %v2273_v39 = vor.u32 4788187, %v2272_v31  ;;  %v2366_v28 = vclz %v3107_v41 }
 0x438   :  { %v5421_v56 = vmul.u32.u64.low %v2450_v8, %v2449_v38  ;;  %v5422_v58 = vmul.u32.u64.high %v2450_v8, %v2449_v38, %v5421_v56  ;;  %v2509_v53 = vand.u32 2139095040, %v5386_v4  ;;  %v2269_v30 = vor.u32 %v2268_v2, %v2267_v15 }
 0x439   :  { %v2441_v33 = vsel %vm2435_vm1, %v2438_v11, %v2440_v3  ;;  %v2613_v0 = vand.u32 2139095040, %v5401_v35  ;;  %v2460_v32 = vadd.s32 1, %v5418_v17  ;;  %v2174_v5 = vxor.u32 2147483648, %v2173_v1 }
 0x43a   :  { %v2510_v49 = vshrl.u32 %v2509_v53, 23  ;;  %v2176_v61 = vsub.s32 4, %v5326_v59  ;;  %v2274_v18 = vand.u32 2147483647, %v2273_v39  ;;  %v5983_v36 = vand.u32 2147483647, %v5386_v4 }
 0x43b   :  { %v3108_v57 = vadd.s32 4294967294, %v2366_v28  ;;  %v2457_v19 = vmul.u32 %v2450_v8, %v2441_v33  ;;  %vm2459_vm6 = vc.u32 %v5422_v58, %v5417_v43  ;;  %v2276_v51 = vcvt.s32.f32 %v2269_v30 }
 0x43c   :  { %v3114_v14 = vadd.s32 4294967169, %v2510_v49  ;;  %v2461_v22 = vsel %vm2459_vm6, %v2460_v32, %v5418_v17  ;;  %v2614_v34 = vshrl.u32 %v2613_v0, 23  ;;  %vm2092_vm5 = vcmp.lt.s32.totalorder %v5229_v12, 0 }
 0x43d   :  { %v2462_v44 = vadd.s32 %v2461_v22, %v2457_v19  ;;  %v2175_v7 = vsel %vm2092_vm5, %v2174_v5, %v2173_v1  ;;  %v5435_v31 = vsel %vm2092_vm5, %v2176_v61, %v5326_v59  ;;  %v5437_v20 = vmul.f32 %v2276_v51, %v2274_v18 }
 0x43e   :  { %v2516_v16 = vadd.s32 1, %v3114_v14  ;;  %v2513_v8 = vand.u32 8388607, %v5983_v36  ;;  %vm3109_vm9 = vcmp.lt.s32.totalorder %v3108_v57, 0  ;;  %v3118_v21 = vadd.s32 4294967169, %v2614_v34 }
 0x43f   :  { %v2463_v41 = vadd.s32 536870912, %v2462_v44  ;;  %vm5445_vm10 = vcmp.le.f32.partialorder %v2090_v26, 0.7853982  ;;  %v5451_v59 = vadd.f32 %v5248_v25, %v5441_v6  ;;  %v5458_v2 = vadd.s32 %v5370_v37, %v5368_v42 }
 0x440   :  { %vm2517_vm12 = vcmp.gt.s32.totalorder %v2516_v16, 0  ;;  %v5465_v26 = vsel %vm5445_vm10, %v5229_v12, %v2175_v7  ;;  %v2278_v3 = vxor.u32 2147483648, %v5437_v20  ;;  %v5468_v25 = vsel %vm3109_vm9, 0, %v3108_v57 }
 0x441   :  { %v2518_v10 = vsel %vm2517_vm12, %v2516_v16, 0  ;;  %v5460_v11 = vshrl.u32 %v2463_v41, 30  ;;  %v2514_v1 = vor.u32 8388608, %v2513_v8  ;;  %v2620_v42 = vadd.s32 1, %v3118_v21 }
 0x442   :  { %v2520_v9 = vand.u32 31, %v2518_v10  ;;  %v2519_v37 = vshrl.u32 %v2518_v10, 5  ;;  %v5982_v51 = vand.u32 2147483647, %v5401_v35  ;;  %vm2196_vm15 = vcmp.lt.s32.totalorder %v5231_v24, 0 }
 0x443   :  { %v2465_v17 = vshll.u32 %v5460_v11, 30  ;;  %v2374_v22 = vsub.s32 4294967266, %v5468_v25  ;;  %v2554_v8 = vshll.u32 %v2514_v1, 8  ;;  %vm2621_vm2 = vcmp.gt.s32.totalorder %v2620_v42, 0 }
 0x444   :  { %v2521_v39 = vsub.s32 32, %v2520_v9  ;;  %v2523_v56 = vshll.u32 %v5997_v27, %v2520_v9  ;;  %v2526_v28 = vshll.u32 %v6004_v46, %v2520_v9  ;;  %v2529_v53 = vshll.u32 %v6001_v48, %v2520_v9 }
 0x445   :  { %v5475_v30 = vsub.s32 %v2462_v44, %v2465_v17  ;;  %v2532_v32 = vshll.u32 %v5998_v54, %v2520_v9  ;;  %v2535_v61 = vshll.u32 %v6106_v63, %v2520_v9  ;;  %vm2538_vm0 = vcmp.lt.s32.totalorder %v2519_v37, 1 }
 0x446   :  { %v2524_v33 = vshrl.u32 %v6004_v46, %v2521_v39  ;;  %v2527_v0 = vshrl.u32 %v6001_v48, %v2521_v39  ;;  %v2530_v49 = vshrl.u32 %v5998_v54, %v2521_v39  ;;  %v2533_v5 = vshrl.u32 %v6106_v63, %v2521_v39 }
 0x447   :  { %v2536_v18 = vshrl.u32 %v6107_v23, %v2521_v39  ;;  %v2468_v57 = vsub.s32 0, %v5475_v30  ;;  %v2522_v41 = vshrl.u32 %v5997_v27, %v2521_v39  ;;  %vm2539_vm3 = vcmp.lt.s32.totalorder %v2519_v37, 2 }
 0x448   :  { %v2525_v19 = vor.u32 %v2524_v33, %v2523_v56  ;;  %v2528_v14 = vor.u32 %v2527_v0, %v2526_v28  ;;  %v2531_v34 = vor.u32 %v2530_v49, %v2529_v53  ;;  %v2534_v44 = vor.u32 %v2533_v5, %v2532_v32 }
 0x449   :  { %v2537_v16 = vor.u32 %v2536_v18, %v2535_v61  ;;  %v3111_v7 = vmin.u32 %v2468_v57, %v5475_v30  ;;  %vm2541_vm7 = vcmp.lt.s32.totalorder %v2519_v37, 4  ;;  %vm2540_vm11 = vcmp.lt.s32.totalorder %v2519_v37, 3 }
 0x44a   :  { %v2546_v21 = vsel %vm2538_vm0, %v2525_v19, %v2528_v14  ;;  %v2543_v9 = vsel %vm2541_vm7, %v2531_v34, 2102212464  ;;  %v2547_v17 = vsel %vm2541_vm7, %v2534_v44, 920167782  ;;  %v2542_v56 = vsel %vm2538_vm0, %v2522_v41, %v2525_v19 }
 0x44b   :  { %v2470_v10 = vclz %v3111_v7  ;;  %v2548_v28 = vsel %vm2540_vm11, %v2531_v34, %v2547_v17  ;;  %v2550_v33 = vsel %vm2538_vm0, %v2528_v14, %v2531_v34  ;;  %v2551_v53 = vsel %vm2541_vm7, %v2537_v16, 1326507024 }
 0x44c   :  { %v2544_v32 = vsel %vm2540_vm11, %v2528_v14, %v2543_v9  ;;  %v2549_v49 = vsel %vm2539_vm3, %v2546_v21, %v2548_v28  ;;  %v2552_v5 = vsel %vm2540_vm11, %v2534_v44, %v2551_v53  ;;  %v2375_v1 = vadd.s32 127, %v2374_v22 }
 0x44d   :  { %v3112_v0 = vadd.s32 4294967294, %v2470_v10  ;;  %v2553_v61 = vsel %vm2539_vm3, %v2550_v33, %v2552_v5  ;;  %v5492_v39 = vmul.u32.u64.low %v2554_v8, %v2549_v49  ;;  %v5493_v18 = vmul.u32.u64.high %v2554_v8, %v2549_v49, %v5492_v39 }
 0x44e   :  { %v5496_v57 = vmul.u32.u64.low %v2554_v8, %v2553_v61  ;;  %v5497_v7 = vmul.u32.u64.high %v2554_v8, %v2553_v61, %v5496_v57  ;;  %v2622_v19 = vsel %vm2621_vm2, %v2620_v42, 0  ;;  %v2545_v14 = vsel %vm2539_vm3, %v2542_v56, %v2544_v32 }
 0x44f   :  { %vm3113_vm8 = vcmp.lt.s32.totalorder %v3112_v0, 0  ;;  %v2617_v44 = vand.u32 8388607, %v5982_v51  ;;  %v2624_v22 = vand.u32 31, %v2622_v19  ;;  %v5508_v16 = vsel %vm2196_vm15, %v2278_v3, %v5437_v20 }
 0x450   :  { %v5500_v34 = vsel %vm3113_vm8, 0, %v3112_v0  ;;  %v2370_v41 = vsub.s32 32, %v5468_v25  ;;  %v2717_v10 = vand.u32 2139095040, %v5451_v59  ;;  %v2564_v9 = vadd.s32 1, %v5493_v18 }
 0x451   :  { %v2478_v37 = vsub.s32 4294967266, %v5500_v34  ;;  %v2625_v17 = vsub.s32 32, %v2624_v22  ;;  %v2376_v56 = vshll.u32 %v2375_v1, 23  ;;  %v2458_v28 = vadd.s32 %v5417_v43, %v5422_v58 }
 0x452   :  { %v2561_v20 = vmul.u32 %v2554_v8, %v2545_v14  ;;  %vm2563_vm14 = vc.u32 %v5497_v7, %v5492_v39  ;;  %v2618_v33 = vor.u32 8388608, %v2617_v44  ;;  %v2474_v32 = vsub.s32 32, %v5500_v34 }
 0x453   :  { %v2565_v3 = vsel %vm2563_vm14, %v2564_v9, %v5493_v18  ;;  %v2628_v53 = vshrl.u32 %v6004_v46, %v2625_v17  ;;  %v2631_v0 = vshrl.u32 %v6001_v48, %v2625_v17  ;;  %v2623_v5 = vshrl.u32 %v2622_v19, 5 }
 0x454   :  { %v2566_v49 = vadd.s32 %v2565_v3, %v2561_v20  ;;  %v2718_v61 = vshrl.u32 %v2717_v10, 23  ;;  %v2479_v1 = vadd.s32 127, %v2478_v37  ;;  %v2627_v57 = vshll.u32 %v5997_v27, %v2624_v22 }
 0x455   :  { %v2630_v43 = vshll.u32 %v6004_v46, %v2624_v22  ;;  %v2634_v58 = vshrl.u32 %v5998_v54, %v2625_v17  ;;  %v2633_v18 = vshll.u32 %v6001_v48, %v2624_v22  ;;  %v2636_v14 = vshll.u32 %v5998_v54, %v2624_v22 }
 0x456   :  { %v2567_v8 = vadd.s32 536870912, %v2566_v49  ;;  %v2637_v44 = vshrl.u32 %v6106_v63, %v2625_v17  ;;  %vm5533_vm4 = vcmp.le.f32.partialorder %v2194_v55, 0.7853982  ;;  %v2629_v19 = vor.u32 %v2628_v53, %v2627_v57 }
 0x457   :  { %v2632_v10 = vor.u32 %v2631_v0, %v2630_v43  ;;  %v2639_v37 = vshll.u32 %v6106_v63, %v2624_v22  ;;  %v2640_v20 = vshrl.u32 %v6107_v23, %v2625_v17  ;;  %v2372_v3 = vshrl.u32 %v5458_v2, %v2370_v41 }
 0x458   :  { %v5540_v51 = vshrl.u32 %v2567_v8, 30  ;;  %v2635_v36 = vor.u32 %v2634_v58, %v2633_v18  ;;  %v2638_v15 = vor.u32 %v2637_v44, %v2636_v14  ;;  %v2377_v50 = vor.u32 4788187, %v2376_v56 }
 0x459   :  { %v2641_v40 = vor.u32 %v2640_v20, %v2639_v37  ;;  %v2658_v38 = vshll.u32 %v2618_v33, 8  ;;  %v3122_v21 = vadd.s32 4294967169, %v2718_v61  ;;  %v2480_v55 = vshll.u32 %v2479_v1, 23 }
 0x45a   :  { %v2569_v42 = vshll.u32 %v5540_v51, 30  ;;  %vm2642_vm13 = vcmp.lt.s32.totalorder %v2623_v5, 1  ;;  %vm2645_vm1 = vcmp.lt.s32.totalorder %v2623_v5, 4  ;;  %vm2300_vm6 = vcmp.lt.s32.totalorder %v5237_v47, 0 }
 0x45b   :  { %v2475_v22 = vshll.u32 %v5475_v30, %v5500_v34  ;;  %v2476_v53 = vshrl.u32 %v2458_v28, %v2474_v32  ;;  %v2650_v2 = vsel %vm2642_vm13, %v2629_v19, %v2632_v10  ;;  %v2651_v41 = vsel %vm2645_vm1, %v2638_v15, 920167782 }
 0x45c   :  { %v5547_v0 = vsub.s32 %v2566_v49, %v2569_v42  ;;  %v2626_v56 = vshrl.u32 %v5997_v27, %v2625_v17  ;;  %vm2644_vm5 = vcmp.lt.s32.totalorder %v2623_v5, 3  ;;  %v2647_v33 = vsel %vm2645_vm1, %v2635_v36, 2102212464 }
 0x45d   :  { %vm2643_vm9 = vcmp.lt.s32.totalorder %v2623_v5, 2  ;;  %v2652_v61 = vsel %vm2644_vm5, %v2635_v36, %v2651_v41  ;;  %v2654_v1 = vsel %vm2642_vm13, %v2632_v10, %v2635_v36  ;;  %v2655_v57 = vsel %vm2645_vm1, %v2641_v40, 1326507024 }
 0x45e   :  { %v2481_v43 = vor.u32 4788187, %v2480_v55  ;;  %v2572_v58 = vsub.s32 0, %v5547_v0  ;;  %v2646_v30 = vsel %vm2642_vm13, %v2626_v56, %v2629_v19  ;;  %v2653_v34 = vsel %vm2643_vm9, %v2650_v2, %v2652_v61 }
 0x45f   :  { %v2648_v28 = vsel %vm2644_vm5, %v2632_v10, %v2647_v33  ;;  %v2656_v32 = vsel %vm2644_vm5, %v2638_v15, %v2655_v57  ;;  %v5554_v42 = vmul.u32.u64.low %v2658_v38, %v2653_v34  ;;  %v5555_v49 = vmul.u32.u64.high %v2658_v38, %v2653_v34, %v5554_v42 }
 0x460   :  { %v2282_v17 = vsel %vm5533_vm4, %v5231_v24, %v5508_v16  ;;  %v3115_v40 = vmin.u32 %v2572_v58, %v5547_v0  ;;  %v2657_v36 = vsel %vm2643_vm9, %v2654_v1, %v2656_v32  ;;  %v2724_v8 = vadd.s32 1, %v3122_v21 }
 0x461   :  { %v6112_v18 = vshll.u32 %v5406_v60, %v5468_v25  ;;  %v2477_v44 = vor.u32 %v2476_v53, %v2475_v22  ;;  %v5567_v15 = vmul.u32.u64.low %v2658_v38, %v2657_v36  ;;  %v5568_v19 = vmul.u32.u64.high %v2658_v38, %v2657_v36, %v5567_v15 }
 0x462   :  { %v2378_v10 = vand.u32 2147483647, %v2377_v50  ;;  %v2574_v37 = vclz %v3115_v40  ;;  %v2649_v20 = vsel %vm2643_vm9, %v2646_v30, %v2648_v28  ;;  %vm2725_vm12 = vcmp.gt.s32.totalorder %v2724_v8, 0 }
 0x463   :  { %v2373_v14 = vor.u32 %v2372_v3, %v6112_v18  ;;  %v2482_v55 = vand.u32 2147483647, %v2481_v43  ;;  %v2668_v16 = vadd.s32 1, %v5555_v49  ;;  %v6113_v2 = vand.u32 2147483647, %v5451_v59 }
 0x464   :  { %v2726_v21 = vsel %vm2725_vm12, %v2724_v8, 0  ;;  %3333 = vcosq.f32 %v2282_v17  ;;  %v6114_v60 = vsub.s32 4, %v5390_v52  ;;  %v3116_v50 = vadd.s32 4294967294, %v2574_v37 }
 0x465   :  { %v2721_v41 = vand.u32 8388607, %v6113_v2  ;;  %v2728_v3 = vand.u32 31, %v2726_v21  ;;  %v2380_v5 = vcvt.s32.f32 %v2373_v14  ;;  %v2484_v22 = vcvt.s32.f32 %v2477_v44 }
 0x466   :  { %v5579_v25 = vsel %vm2300_vm6, %v6114_v60, %v5390_v52  ;;  %v2665_v53 = vmul.u32 %v2658_v38, %v2649_v20  ;;  %vm2667_vm0 = vc.u32 %v5568_v19, %v5554_v42  ;;  %3335 = vsinq.f32 %v2282_v17 }
 0x467   :  { %vm3117_vm2 = vcmp.lt.s32.totalorder %v3116_v50, 0  ;;  %v2669_v56 = vsel %vm2667_vm0, %v2668_v16, %v5555_v49  ;;  %v2729_v33 = vsub.s32 32, %v2728_v3  ;;  %v2381_v61 = vmul.f32 %v2380_v5, %v2378_v10 }
 0x468   :  { %v5584_v1 = vmul.f32 %v2484_v22, %v2482_v55  ;;  %v2670_v57 = vadd.s32 %v2669_v56, %v2665_v53  ;;  %v2722_v43 = vor.u32 8388608, %v2721_v41  ;;  %v5586_v52 = vsel %vm3117_vm2, 0, %v3116_v50 }
 0x469   :  { %v5588_v58 = vshrl.u32 %v2726_v21, 5  ;;  %v2737_v30 = vshll.u32 %v6001_v48, %v2728_v3  ;;  %v5593_v38 = vadd.f32 %v5252_v29, %v5441_v6  ;;  %v2732_v28 = vshrl.u32 %v6004_v46, %v2729_v33 }
 0x46a   :  { %v2671_v34 = vadd.s32 536870912, %v2670_v57  ;;  %v2735_v32 = vshrl.u32 %v6001_v48, %v2729_v33  ;;  %v2738_v49 = vshrl.u32 %v5998_v54, %v2729_v33  ;;  %v2731_v17 = vshll.u32 %v5997_v27, %v2728_v3 }
 0x46b   :  { %v2734_v40 = vshll.u32 %v6004_v46, %v2728_v3  ;;  %v2740_v36 = vshll.u32 %v5998_v54, %v2728_v3  ;;  %v2741_v8 = vshrl.u32 %v6106_v63, %v2729_v33  ;;  %v2382_v18 = vxor.u32 2147483648, %v2381_v61 }
 0x46c   :  { %v2486_v14 = vxor.u32 2147483648, %v5584_v1  ;;  %v5603_v29 = vshrl.u32 %v2671_v34, 30  ;;  %v2739_v6 = vor.u32 %v2738_v49, %v2737_v30  ;;  %v2582_v44 = vsub.s32 4294967266, %v5586_v52 }
 0x46d   :  { %v2733_v15 = vor.u32 %v2732_v28, %v2731_v17  ;;  %v2736_v10 = vor.u32 %v2735_v32, %v2734_v40  ;;  %v2742_v37 = vor.u32 %v2741_v8, %v2740_v36  ;;  %v6115_v20 = vand.u32 2147483647, %v5237_v47 }
 0x46e   :  { %v2673_v16 = vshll.u32 %v5603_v29, 30  ;;  %v2743_v2 = vshll.u32 %v6106_v63, %v2728_v3  ;;  %v2744_v41 = vshrl.u32 %v6107_v23, %v2729_v33  ;;  %v2762_v21 = vshll.u32 %v2722_v43, 8  ;;  %v5615_v60 = vpop.eup %3333 }
 0x46f   :  { %vm5608_vm3 = vcmp.le.f32.partialorder %v6115_v20, 0.7853982  ;;  %vm2404_vm7 = vcmp.lt.s32.totalorder %v5250_v45, 0  ;;  %v2578_v50 = vsub.s32 32, %v5586_v52  ;;  %v2730_v5 = vshrl.u32 %v5997_v27, %v2729_v33 }
 0x470   :  { %vm2749_vm11 = vcmp.lt.s32.totalorder %v5588_v58, 4  ;;  %v2821_v22 = vand.u32 2139095040, %v5593_v38  ;;  %v5622_v53 = vsub.s32 %v2670_v57, %v2673_v16  ;;  %v2745_v56 = vor.u32 %v2744_v41, %v2743_v2  ;;  %v5627_v43 = vpop.eup %3335 }
 0x471   :  { %vm2746_vm8 = vcmp.lt.s32.totalorder %v5588_v58, 1  ;;  %v2751_v3 = vsel %vm2749_vm11, %v2739_v6, 2102212464  ;;  %v2583_v30 = vadd.s32 127, %v2582_v44  ;;  %vm2748_vm14 = vcmp.lt.s32.totalorder %v5588_v58, 3 }
 0x472   :  { %v2754_v34 = vsel %vm2746_vm8, %v2733_v15, %v2736_v10  ;;  %v2755_v33 = vsel %vm2749_vm11, %v2742_v37, 920167782  ;;  %v6118_v28 = vand.u32 2147483647, %v5250_v45  ;;  %v2676_v32 = vsub.s32 0, %v5622_v53 }
 0x473   :  { %vm2747_vm1 = vcmp.lt.s32.totalorder %v5588_v58, 2  ;;  %v2756_v49 = vsel %vm2748_vm14, %v2739_v6, %v2755_v33  ;;  %v2758_v17 = vsel %vm2746_vm8, %v2736_v10, %v2739_v6  ;;  %v2750_v40 = vsel %vm2746_vm8, %v2730_v5, %v2733_v15 }
 0x474   :  { %vm5634_vm13 = vcmp.le.f32.partialorder %v6118_v28, 0.7853982  ;;  %v2752_v36 = vsel %vm2748_vm14, %v2736_v10, %v2751_v3  ;;  %v2757_v8 = vsel %vm2747_vm1, %v2754_v34, %v2756_v49  ;;  %v2759_v44 = vsel %vm2749_vm11, %v2745_v56, 1326507024 }
 0x475   :  { %v3119_v20 = vmin.u32 %v2676_v32, %v5622_v53  ;;  %v2760_v16 = vsel %vm2748_vm14, %v2742_v37, %v2759_v44  ;;  %v5645_v2 = vmul.u32.u64.low %v2762_v21, %v2757_v8  ;;  %v5646_v41 = vmul.u32.u64.high %v2762_v21, %v2757_v8, %v5645_v2 }
 0x476   :  { %v6121_v28 = vsel %vm5445_vm10, 0, %v5435_v31  ;;  %v2383_v6 = vsel %vm2300_vm6, %v2382_v18, %v2381_v61  ;;  %v2761_v15 = vsel %vm2747_vm1, %v2758_v17, %v2760_v16  ;;  %v2822_v10 = vshrl.u32 %v2821_v22, 23 }
 0x477   :  { %v5652_v33 = vadd.s32 3, %v6121_v28  ;;  %v2562_v5 = vadd.s32 %v5492_v39, %v5497_v7  ;;  %v2678_v37 = vclz %v3119_v20  ;;  %3337 = vcosq.f32 %v5465_v26 }
 0x478   :  { %v5660_v56 = vmul.u32.u64.low %v2762_v21, %v2761_v15  ;;  %v5661_v3 = vmul.u32.u64.high %v2762_v21, %v2761_v15, %v5660_v56  ;;  %v2387_v31 = vsel %vm5608_vm3, 0, %v5579_v25  ;;  %v2753_v13 = vsel %vm2747_vm1, %v2750_v40, %v2752_v36 }
 0x479   :  { %v3126_v61 = vadd.s32 4294967169, %v2822_v10  ;;  %v2487_v18 = vsel %vm2404_vm7, %v2486_v14, %v5584_v1  ;;  %v2580_v22 = vshrl.u32 %v2562_v5, %v2578_v50  ;;  %v2584_v39 = vshll.u32 %v2583_v30, 23 }
 0x47a   :  { %v2772_v7 = vadd.s32 1, %v5646_v41  ;;  %v2386_v34 = vsel %vm5608_vm3, %v5237_v47, %v2383_v6  ;;  %v2818_v32 = vand.u32 2147483647, %v5593_v38  ;;  %v2280_v25 = vsub.s32 4, %v5349_v62 }
 0x47b   :  { %v2828_v49 = vadd.s32 1, %v3126_v61  ;;  %v2579_v58 = vshll.u32 %v5547_v0, %v5586_v52  ;;  %v3120_v17 = vadd.s32 4294967294, %v2678_v37  ;;  %v2769_v40 = vmul.u32 %v2762_v21, %v2753_v13 }
 0x47c   :  { %vm2771_vm10 = vc.u32 %v5661_v3, %v5645_v2  ;;  %3339 = vsinq.f32 %v5465_v26  ;;  %v2490_v1 = vsel %vm5634_vm13, %v5250_v45, %v2487_v18  ;;  %v5688_v50 = vor.u32 4788187, %v2584_v39 }
 0x47d   :  { %v2773_v14 = vsel %vm2771_vm10, %v2772_v7, %v5646_v41  ;;  %vm2829_vm6 = vcmp.gt.s32.totalorder %v2828_v49, 0  ;;  %3341 = vcosq.f32 %v2386_v34  ;;  %v5686_v55 = vor.u32 %v2580_v22, %v2579_v58 }
 0x47e   :  { %v2774_v30 = vadd.s32 %v2773_v14, %v2769_v40  ;;  %3343 = vsinq.f32 %v2386_v34  ;;  %v5690_v0 = vadd.s32 3, %v2387_v31  ;;  %v2825_v52 = vand.u32 8388607, %v2818_v32 }
 0x47f   :  { %v2830_v26 = vsel %vm2829_vm6, %v2828_v49, 0  ;;  %3345 = vcosq.f32 %v2490_v1  ;;  %vm3121_vm5 = vcmp.lt.s32.totalorder %v3120_v17, 0  ;;  %v2281_v36 = vsel %vm2196_vm15, %v2280_v25, %v5349_v62 }
 0x480   :  { %v2775_v21 = vadd.s32 536870912, %v2774_v30  ;;  %3347 = vsinq.f32 %v2490_v1  ;;  %v5699_v8 = vadd.s32 %v5554_v42, %v5568_v19  ;;  %v2832_v44 = vand.u32 31, %v2830_v26 }
 0x481   :  { %v2291_v20 = vxor.u32 2147483648, %v5627_v43  ;;  %v2586_v16 = vand.u32 2147483647, %v5688_v50  ;;  %v2588_v41 = vcvt.s32.f32 %v5686_v55  ;;  %v2294_v6 = vxor.u32 2147483648, %v5615_v60  ;;  %v5707_v15 = vpop.eup %3337 }
 0x482   :  { %v5704_v28 = vshrl.u32 %v2775_v21, 30  ;;  %v5709_v10 = vsel %vm3121_vm5, 0, %v3120_v17  ;;  %v2826_v62 = vor.u32 8388608, %v2825_v52  ;;  %v2833_v5 = vsub.s32 32, %v2832_v44 }
 0x483   :  { %v2283_v42 = vsel %vm5533_vm4, 0, %v2281_v36  ;;  %v5714_v19 = vadd.s32 %v5645_v2, %v5661_v3  ;;  %v2835_v56 = vshll.u32 %v5997_v27, %v2832_v44  ;;  %v2488_v31 = vsub.s32 4, %v5460_v11 }
 0x484   :  { %v2777_v37 = vshll.u32 %v5704_v28, 30  ;;  %v2836_v13 = vshrl.u32 %v6004_v46, %v2833_v5  ;;  %v2838_v61 = vshll.u32 %v6004_v46, %v2832_v44  ;;  %v2839_v18 = vshrl.u32 %v6001_v48, %v2833_v5 }
 0x485   :  { %v2842_v22 = vshrl.u32 %v5998_v54, %v2833_v5  ;;  %v2686_v9 = vsub.s32 4294967266, %v5709_v10  ;;  %v2831_v2 = vshrl.u32 %v2830_v26, 5  ;;  %v2841_v3 = vshll.u32 %v6001_v48, %v2832_v44 }
 0x486   :  { %v5724_v39 = vsub.s32 %v2774_v30, %v2777_v37  ;;  %v5727_v7 = vpop.eup %3339  ;;  %v2682_v34 = vsub.s32 32, %v5709_v10  ;;  %v2837_v49 = vor.u32 %v2836_v13, %v2835_v56  ;;  %v2840_v25 = vor.u32 %v2839_v18, %v2838_v61 }
 0x487   :  { %v5730_v58 = vshll.u32 %v2826_v62, 8  ;;  %v5732_v46 = vpop.eup %3341  ;;  %v2843_v40 = vor.u32 %v2842_v22, %v2841_v3  ;;  %v2844_v1 = vshll.u32 %v5998_v54, %v2832_v44  ;;  %v2845_v14 = vshrl.u32 %v6106_v63, %v2833_v5 }
 0x488   :  { %v2780_v17 = vsub.s32 0, %v5724_v39  ;;  %v5737_v30 = vpop.eup %3343  ;;  %v2847_v48 = vshll.u32 %v6106_v63, %v2832_v44  ;;  %v2848_v52 = vshrl.u32 %v6107_v23, %v2833_v5  ;;  %v2287_v26 = vadd.s32 3, %v2283_v42 }
 0x489   :  { %v2489_v21 = vsel %vm2404_vm7, %v2488_v31, %v5460_v11  ;;  %v5744_v36 = vpop.eup %3345  ;;  %v2687_v62 = vadd.s32 127, %v2686_v9  ;;  %v2846_v56 = vor.u32 %v2845_v14, %v2844_v1  ;;  %vm2850_vm15 = vcmp.lt.s32.totalorder %v2831_v2, 1 }
 0x48a   :  { %v3123_v37 = vmin.u32 %v2780_v17, %v5724_v39  ;;  %v3348_v54 = vpop.eup %3347  ;;  %v2834_v13 = vshrl.u32 %v5997_v27, %v2833_v5  ;;  %v2849_v61 = vor.u32 %v2848_v52, %v2847_v48  ;;  %vm2853_vm4 = vcmp.lt.s32.totalorder %v2831_v2, 4 }
 0x48b   :  { %v2858_v63 = vsel %vm2850_vm15, %v2837_v49, %v2840_v25  ;;  %vm2852_vm9 = vcmp.lt.s32.totalorder %v2831_v2, 3  ;;  %v2855_v23 = vsel %vm2853_vm4, %v2843_v40, 2102212464  ;;  %v2859_v42 = vsel %vm2853_vm4, %v2846_v56, 920167782 }
 0x48c   :  { %v2782_v44 = vclz %v3123_v37  ;;  %vm2851_vm12 = vcmp.lt.s32.totalorder %v2831_v2, 2  ;;  %v2860_v18 = vsel %vm2852_vm9, %v2843_v40, %v2859_v42  ;;  %v2862_v11 = vsel %vm2850_vm15, %v2840_v25, %v2843_v40 }
 0x48d   :  { %v2288_v31 = vand.u32 3, %v2287_v26  ;;  %v2854_v9 = vsel %vm2850_vm15, %v2834_v13, %v2837_v49  ;;  %v2861_v3 = vsel %vm2851_vm12, %v2858_v63, %v2860_v18  ;;  %v2863_v17 = vsel %vm2853_vm4, %v2849_v61, 1326507024 }
 0x48e   :  { %v3124_v22 = vadd.s32 4294967294, %v2782_v44  ;;  %v2856_v1 = vsel %vm2852_vm9, %v2840_v25, %v2855_v23  ;;  %v2864_v14 = vsel %vm2852_vm9, %v2846_v56, %v2863_v17  ;;  %v2683_v48 = vshll.u32 %v5622_v53, %v5709_v10 }
 0x48f   :  { %v5750_v27 = vmul.u32.u64.low %v5730_v58, %v2861_v3  ;;  %v5751_v5 = vmul.u32.u64.high %v5730_v58, %v2861_v3, %v5750_v27  ;;  %v2865_v52 = vsel %vm2851_vm12, %v2862_v11, %v2864_v14  ;;  %v2491_v40 = vsel %vm5634_vm13, 0, %v2489_v21 }
 0x490   :  { %vm3125_vm0 = vcmp.lt.s32.totalorder %v3124_v22, 0  ;;  %v2684_v49 = vshrl.u32 %v5699_v8, %v2682_v34  ;;  %v5761_v25 = vmul.u32.u64.low %v5730_v58, %v2865_v52  ;;  %v5762_v37 = vmul.u32.u64.high %v5730_v58, %v2865_v52, %v5761_v25 }
 0x491   :  { %v2785_v26 = vsel %vm3125_vm0, 0, %v3124_v22  ;;  %vm2286_vm2 = vweird.f32 %v5231_v24  ;;  %vm2494_vm3 = vweird.f32 %v5250_v45  ;;  %v2688_v56 = vshll.u32 %v2687_v62, 23 }
 0x492   :  { %v2790_v13 = vsub.s32 4294967266, %v2785_v26  ;;  %v2857_v53 = vsel %vm2851_vm12, %v2854_v9, %v2856_v1  ;;  %v2499_v10 = vxor.u32 2147483648, %v3348_v54  ;;  %v2876_v61 = vadd.s32 1, %v5751_v5 }
 0x493   :  { %vm2290_vm7 = vcmp.eq.s32.totalorder %v2288_v31, 0  ;;  %vm2293_vm11 = vcmp.eq.s32.totalorder %v2288_v31, 2  ;;  %v2495_v57 = vadd.s32 3, %v2491_v40  ;;  %v2502_v62 = vxor.u32 2147483648, %v5744_v36 }
 0x494   :  { %v2791_v8 = vadd.s32 127, %v2790_v13  ;;  %v2292_v34 = vsel %vm2290_vm7, %v5615_v60, %v2291_v20  ;;  %v2295_v21 = vsel %vm2293_vm11, %v2294_v6, %v5627_v43  ;;  %v2685_v63 = vor.u32 %v2684_v49, %v2683_v48 }
 0x495   :  { %v2873_v2 = vmul.u32 %v5730_v58, %v2857_v53  ;;  %vm2875_vm8 = vc.u32 %v5762_v37, %v5750_v27  ;;  %v2496_v44 = vand.u32 3, %v2495_v57  ;;  %v2689_v23 = vor.u32 4788187, %v2688_v56 }
 0x496   :  { %v2786_v42 = vsub.s32 32, %v2785_v26  ;;  %v2877_v18 = vsel %vm2875_vm8, %v2876_v61, %v5751_v5  ;;  %vm2289_vm14 = vcmp.lt.s32.totalorder %v2288_v31, 2  ;;  %v2792_v60 = vshll.u32 %v2791_v8, 23 }
 0x497   :  { %v2878_v11 = vadd.s32 %v2877_v18, %v2873_v2  ;;  %v2296_v20 = vsel %vm2289_vm14, %v2292_v34, %v2295_v21  ;;  %vm2498_vm13 = vcmp.eq.s32.totalorder %v2496_v44, 0  ;;  %vm2501_vm1 = vcmp.eq.s32.totalorder %v2496_v44, 2 }
 0x498   :  { %vm2497_vm10 = vcmp.lt.s32.totalorder %v2496_v44, 2  ;;  %v2500_v43 = vsel %vm2498_vm13, %v5744_v36, %v2499_v10  ;;  %v2503_v6 = vsel %vm2501_vm1, %v2502_v62, %v3348_v54  ;;  %v2184_v9 = vand.u32 3, %v5652_v33 }
 0x499   :  { %v2879_v22 = vadd.s32 536870912, %v2878_v11  ;;  %v2504_v58 = vsel %vm2497_vm10, %v2500_v43, %v2503_v6  ;;  %v2187_v3 = vxor.u32 2147483648, %v5727_v7  ;;  %v2788_v17 = vshrl.u32 %v5714_v19, %v2786_v42 }
 0x49a   :  { %v2297_v31 = vsel %vm2286_vm2, nan, %v2296_v20  ;;  %v2505_v1 = vsel %vm2494_vm3, nan, %v2504_v58  ;;  %v2190_v14 = vxor.u32 2147483648, %v5707_v15  ;;  %v2787_v5 = vshll.u32 %v5724_v39, %v2785_v26 }
 0x49b   :  { %v5789_v36 = vshrl.u32 %v2879_v22, 30  ;;  %v3149_v54 = vpack.c.bf16 %v2505_v1, %v2297_v31  ;;  %vm2186_vm6 = vcmp.eq.s32.totalorder %v2184_v9, 0  ;;  %v2793_v48 = vor.u32 4788187, %v2792_v60 }
 0x49c   :  { %v2188_v33 = vsel %vm2186_vm6, %v5707_v15, %v2187_v3  ;;  %vm2189_vm5 = vcmp.eq.s32.totalorder %v2184_v9, 2  ;;  %v2392_v19 = vand.u32 3, %v5690_v0  ;;  %v2395_v52 = vxor.u32 2147483648, %v5737_v30 }
 0x49d   :  { %v2881_v24 = vshll.u32 %v5789_v36, 30  ;;  %3150 = vmatprep.subr.bf16.mxu0 %v3149_v54  ;;  %v2191_v45 = vsel %vm2189_vm5, %v2190_v14, %v5727_v7  ;;  %v2398_v40 = vxor.u32 2147483648, %v5732_v46  ;;  %v2690_v39 = vand.u32 2147483647, %v2689_v23 }
 0x49e   :  { %v2789_v49 = vor.u32 %v2788_v17, %v2787_v5  ;;  %vm2185_vm15 = vcmp.lt.s32.totalorder %v2184_v9, 2  ;;  %vm2394_vm4 = vcmp.eq.s32.totalorder %v2392_v19, 0  ;;  %vm2397_vm9 = vcmp.eq.s32.totalorder %v2392_v19, 2 }
 0x49f   :  { %v2882_v26 = vsub.s32 %v2878_v11, %v2881_v24  ;;  %v2192_v25 = vsel %vm2185_vm15, %v2188_v33, %v2191_v45  ;;  %v2396_v15 = vsel %vm2394_vm4, %v5732_v46, %v2395_v52  ;;  %v2692_v56 = vcvt.s32.f32 %v2685_v63 }
 0x4a0   :  { %v2794_v0 = vand.u32 2147483647, %v2793_v48  ;;  %vm2393_vm12 = vcmp.lt.s32.totalorder %v2392_v19, 2  ;;  %v2399_v13 = vsel %vm2397_vm9, %v2398_v40, %v5737_v30  ;;  %vm2182_vm0 = vweird.f32 %v5229_v12 }
 0x4a1   :  { %v2884_v53 = vsub.s32 0, %v2882_v26  ;;  %vm2390_vm2 = vweird.f32 %v5237_v47  ;;  %v2400_v7 = vsel %vm2393_vm12, %v2396_v15, %v2399_v13  ;;  %v2589_v10 = vmul.f32 %v2588_v41, %v2586_v16 }
 0x4a2   :  { %v2796_v61 = vcvt.s32.f32 %v2789_v49  ;;  %v2193_v57 = vsel %vm2182_vm0, nan, %v2192_v25  ;;  %v2401_v46 = vsel %vm2390_vm2, nan, %v2400_v7  ;;  %v2693_v8 = vmul.f32 %v2692_v56, %v2690_v39 }
 0x4a3   :  { %v3127_v34 = vmin.u32 %v2884_v53, %v2882_v26  ;;  %v3151_v21 = vpack.c.bf16 %v2401_v46, %v2193_v57  ;;  %v2590_v30 = vxor.u32 2147483648, %v2589_v10  ;;  %vm2508_vm3 = vcmp.lt.s32.totalorder %v5386_v4, 0 }
 0x4a4   :  { %v2797_v62 = vmul.f32 %v2796_v61, %v2794_v0  ;;  %v2694_v2 = vxor.u32 2147483648, %v2693_v8  ;;  %vm2612_vm11 = vcmp.lt.s32.totalorder %v5401_v35, 0  ;;  %vm2716_vm8 = vcmp.lt.s32.totalorder %v5451_v59, 0 }
 0x4a5   :  { %v2886_v63 = vclz %v3127_v34  ;;  %3152 = vmatpush1.bf16.msra.mxu0 %v3151_v21  ;;  %v2591_v47 = vsel %vm2508_vm3, %v2590_v30, %v2589_v10  ;;  %v2874_v16 = vadd.s32 %v5750_v27, %v5762_v37  ;;  %v6122_v42 = vand.u32 2147483647, %v5386_v4 }
 0x4a6   :  { %v2798_v44 = vxor.u32 2147483648, %v2797_v62  ;;  %v2695_v50 = vsel %vm2612_vm11, %v2694_v2, %v2693_v8  ;;  %v6125_v11 = vand.u32 2147483647, %v5401_v35  ;;  %v6128_v58 = vand.u32 2147483647, %v5451_v59 }
 0x4a7   :  { %v3128_v12 = vadd.s32 4294967294, %v2886_v63  ;;  %vm5816_vm14 = vcmp.le.f32.partialorder %v6122_v42, 0.7853982  ;;  %v2800_v1 = vsub.s32 4, %v5704_v28  ;;  %v2696_v5 = vsub.s32 4, %v5603_v29 }
 0x4a8   :  { %vm5822_vm13 = vcmp.le.f32.partialorder %v6125_v11, 0.7853982  ;;  %v2799_v60 = vsel %vm2716_vm8, %v2798_v44, %v2797_v62  ;;  %v2594_v27 = vsel %vm5816_vm14, %v5386_v4, %v2591_v47  ;;  %vm5836_vm1 = vcmp.le.f32.partialorder %v6128_v58, 0.7853982 }
 0x4a9   :  { %vm3129_vm7 = vcmp.lt.s32.totalorder %v3128_v12, 0  ;;  %v2698_v22 = vsel %vm5822_vm13, %v5401_v35, %v2695_v50  ;;  %v2802_v3 = vsel %vm5836_vm1, %v5451_v59, %v2799_v60  ;;  %3349 = vcosq.f32 %v2594_v27 }
 0x4aa   :  { %v2889_v55 = vsel %vm3129_vm7, 0, %v3128_v12  ;;  %3351 = vcosq.f32 %v2698_v22  ;;  %v2592_v54 = vsub.s32 4, %v5540_v51  ;;  %v2801_v19 = vsel %vm2716_vm8, %v2800_v1, %v5704_v28 }
 0x4ab   :  { %v2890_v41 = vsub.s32 32, %v2889_v55  ;;  %v2894_v23 = vsub.s32 4294967266, %v2889_v55  ;;  %v2891_v37 = vshll.u32 %v2882_v26, %v2889_v55  ;;  %3353 = vcosq.f32 %v2802_v3 }
 0x4ac   :  { %3355 = vsinq.f32 %v2802_v3  ;;  %v2904_v45 = vsub.s32 4, %v5789_v36  ;;  %v2697_v52 = vsel %vm2612_vm11, %v2696_v5, %v5603_v29  ;;  %v2593_v40 = vsel %vm2508_vm3, %v2592_v54, %v5540_v51  ;;  %v2922_v5 = vld [vmem:[%s5902_s7] sm:$0x7] }
 0x4ad   :  { %v2892_v43 = vshrl.u32 %v2874_v16, %v2890_v41  ;;  %v2895_v6 = vadd.s32 127, %v2894_v23  ;;  %3357 = vsinq.f32 %v2698_v22  ;;  %v2803_v49 = vsel %vm5836_vm1, 0, %v2801_v19 }
 0x4ae   :  { %3359 = vsinq.f32 %v2594_v27  ;;  %vm2820_vm10 = vcmp.lt.s32.totalorder %v5593_v38, 0  ;;  %vm5861_vm6 = vcmp.le.f32.partialorder %v2818_v32, 0.7853982  ;;  %v2699_v29 = vsel %vm5822_vm13, 0, %v2697_v52 }
 0x4af   :  { %v2893_v17 = vor.u32 %v2892_v43, %v2891_v37  ;;  %v2896_v31 = vshll.u32 %v2895_v6, 23  ;;  %v2905_v25 = vsel %vm2820_vm10, %v2904_v45, %v5789_v36  ;;  %v2595_v51 = vsel %vm5816_vm14, 0, %v2593_v40 }
 0x4b0   :  { %v2807_v13 = vadd.s32 3, %v2803_v49  ;;  %v2703_v53 = vadd.s32 3, %v2699_v29  ;;  %v2907_v7 = vsel %vm5861_vm6, 0, %v2905_v25  ;;  %v2599_v61 = vadd.s32 3, %v2595_v51 }
 0x4b1   :  { %v2897_v14 = vor.u32 4788187, %v2896_v31  ;;  %v2900_v33 = vcvt.s32.f32 %v2893_v17  ;;  %v2911_v46 = vadd.s32 3, %v2907_v7  ;;  %vm2806_vm13 = vweird.f32 %v5451_v59 }
 0x4b2   :  { %v2808_v8 = vand.u32 3, %v2807_v13  ;;  %v2704_v34 = vand.u32 3, %v2703_v53  ;;  %v2600_v2 = vand.u32 3, %v2599_v61  ;;  %vm2702_vm1 = vweird.f32 %v5401_v35  ;;  %v2927_v35 = vpop.permute.xlu0 %2926 }
 0x4b3   :  { %v2898_v48 = vand.u32 2147483647, %v2897_v14  ;;  %v3350_v15 = vpop.eup %3349  ;;  %v2912_v47 = vand.u32 3, %v2911_v46 }
 0x4b4   :  { %v3352_v0 = vpop.eup %3351  ;;  %v2606_v44 = vxor.u32 2147483648, %v3350_v15  ;;  %vm2810_vm5 = vcmp.eq.s32.totalorder %v2808_v8, 0  ;;  %vm2813_vm15 = vcmp.eq.s32.totalorder %v2808_v8, 2  ;;  %vm2706_vm4 = vcmp.eq.s32.totalorder %v2704_v34, 0 }
 0x4b5   :  { %v2901_v24 = vmul.f32 %v2900_v33, %v2898_v48  ;;  %v3354_v32 = vpop.eup %3353  ;;  %v2710_v30 = vxor.u32 2147483648, %v3352_v0  ;;  %vm2709_vm9 = vcmp.eq.s32.totalorder %v2704_v34, 2  ;;  %vm2602_vm12 = vcmp.eq.s32.totalorder %v2600_v2, 0 }
 0x4b6   :  { %v3356_v10 = vpop.eup %3355  ;;  %v2814_v62 = vxor.u32 2147483648, %v3354_v32  ;;  %vm2605_vm0 = vcmp.eq.s32.totalorder %v2600_v2, 2  ;;  %vm2809_vm2 = vcmp.lt.s32.totalorder %v2808_v8, 2  ;;  %vm2705_vm3 = vcmp.lt.s32.totalorder %v2704_v34, 2 }
 0x4b7   :  { %v2902_v39 = vxor.u32 2147483648, %v2901_v24  ;;  %v3358_v36 = vpop.eup %3357  ;;  %v2811_v21 = vxor.u32 2147483648, %v3356_v10  ;;  %vm2917_vm7 = vcmp.eq.s32.totalorder %v2912_v47, 2  ;;  %vm2914_vm11 = vcmp.eq.s32.totalorder %v2912_v47, 0 }
 0x4b8   :  { %v3360_v57 = vpop.eup %3359  ;;  %v2707_v63 = vxor.u32 2147483648, %v3358_v36  ;;  %v2815_v50 = vsel %vm2813_vm15, %v2814_v62, %v3356_v10  ;;  %v2711_v23 = vsel %vm2709_vm9, %v2710_v30, %v3358_v36  ;;  %vm2601_vm8 = vcmp.lt.s32.totalorder %v2600_v2, 2 }
 0x4b9   :  { %v2903_v26 = vsel %vm2820_vm10, %v2902_v39, %v2901_v24  ;;  %v2603_v12 = vxor.u32 2147483648, %v3360_v57  ;;  %v2812_v55 = vsel %vm2810_vm5, %v3354_v32, %v2811_v21  ;;  %v2607_v20 = vsel %vm2605_vm0, %v2606_v44, %v3360_v57 }
 0x4ba   :  { %v2906_v56 = vsel %vm5861_vm6, %v5593_v38, %v2903_v26  ;;  %v2708_v41 = vsel %vm2706_vm4, %v3352_v0, %v2707_v63  ;;  %v2816_v27 = vsel %vm2809_vm2, %v2812_v55, %v2815_v50  ;;  %vm2913_vm14 = vcmp.lt.s32.totalorder %v2912_v47, 2 }
 0x4bb   :  { %3361 = vcosq.f32 %v2906_v56  ;;  %v2604_v11 = vsel %vm2602_vm12, %v3350_v15, %v2603_v12  ;;  %v2712_v37 = vsel %vm2705_vm3, %v2708_v41, %v2711_v23  ;;  %vm2910_vm10 = vweird.f32 %v5593_v38 }
 0x4bc   :  { %3363 = vsinq.f32 %v2906_v56  ;;  %v2608_v22 = vsel %vm2601_vm8, %v2604_v11, %v2607_v20  ;;  %v2817_v9 = vsel %vm2806_vm13, nan, %v2816_v27  ;;  %v2713_v3 = vsel %vm2702_vm1, nan, %v2712_v37 }
 0x4bd   :  { %vm2598_vm6 = vweird.f32 %v5386_v4  ;;  %vm6133_vm5 = vcmask 261120  }
 0x4be   :  { %v2609_v1 = vsel %vm2598_vm6, nan, %v2608_v22 }
 0x4bf   :  { %v3155_v14 = vpack.c.bf16 %v2817_v9, %v2609_v1 }
 0x4c5   :  { %v3362_v16 = vpop.eup %3361 }
 0x4c6   :  { %v3364_v42 = vpop.eup %3363  ;;  %v2918_v18 = vxor.u32 2147483648, %v3362_v16 }
 0x4c7   :  { %v2915_v60 = vxor.u32 2147483648, %v3364_v42 }
 0x4c8   :  { %v2919_v43 = vsel %vm2917_vm7, %v2918_v18, %v3364_v42 }
 0x4c9   :  { %v2916_v6 = vsel %vm2914_vm11, %v3362_v16, %v2915_v60 }
 0x4ca   :  { %v2920_v58 = vsel %vm2913_vm14, %v2916_v6, %v2919_v43 }
 0x4cb   :  { %v2921_v17 = vsel %vm2910_vm10, nan, %v2920_v58 }
 0x4cc   :  { %v3153_v31 = vpack.c.bf16 %v2921_v17, %v2713_v3 }
 0x4ce   :  { %3154 = vmatprep.subr.bf16.mxu0 %v3153_v31 }
 0x4cf   :  { %3156 = vmatpush1.bf16.msra.mxu0 %v3155_v14 }
 0x4d2   :  { %3130 = vmatmul.mubr.msk.f32.vlgmr.msra.gmra.mrb[8].mxu0 %vm6133_vm5, %v2922_v5 }
 0x5a5   :  { %v2998_v59 = vpop.f32.mrb[8].mxu0 }
 0x5a6   :  { %v2999_v38 = vadd.f32 %v2998_v59, %v2927_v35  ;;  %v3000_v54 = vpop.f32.mrb[9].mxu0 }
 0x5a7   :  { %v3001_v48 = vadd.f32 %v3000_v54, %v2927_v35 }
 0x5a8   :  { %v3131_v33 = vclamps-f32 %v2999_v38, 1.0 }
 0x5a9   :  { %v3132_v4 = vclamps-f32 %v3001_v48, 1.0 }
 0x5ab   :  { %v3009_v19 = vcombine.low %v3131_v33, %v3132_v4 }
 0x5ad   :  { %3011 = vst [vmem:[#allocation2] sm:$0x77] %v3009_v19 }
 0x5ae   :  { %3376 = shalt.err (!%p3373_p4)
}
 0x5af   :  { %s3377_s15 = scalar_lea.hbm %s5904_s9, 128 }
 0x5b0   :  { %p3378_p5 = scmp.ne.s32.totalorder %s5904_s9, %s3377_s15  ;;  %p3381_p6 = scmp.lt.u32.totalorder %s3377_s15, %s5904_s9 }
 0x5b2   :  { %p3383_p7 = pnand %p3381_p6, %p3378_p5 }
 0x5b4   :  { %3386 = shalt.err (!%p3383_p7)
}
 0x5b5   :  { %3021 = dma.vmem_to_hbm [thread:$0]  %s3019_s13, 128, %s5904_s9, [#allocation3]  }
 0x5b6   :  { %3387 = dma.done.wait [#allocation3], 128  }
 0x5b7   :  { %3388 = vsyncadd [#allocation3], 4294967168 }
 0x5b8   :  { %3025 = vsyncpa [#allocation3], 1 }

</bundles_post_ra>
